<compile_context>
chip_gen: v6e
topology: v6e:2x2x1
jax: 0.10.0
libtpu: 0.0.40
codegen_flags: <defaults>
</compile_context>

<pallas_src>
import math
import numpy as np
import jax
import jax.numpy as jnp
from jax import lax
from jax.experimental import pallas as pl
from jax.experimental.pallas import tpu as pltpu

# ---------------- config (small synthetic shapes) ----------------
B = 2            # batch
N = 8            # sequence length
EMBED = 32       # config.embed_dim
HEADS = 4        # config.attention_heads
HEAD_DIM = EMBED // HEADS
FFN = 64         # config.ffn_embed_dim
LAYERS = 2       # config.encoder_layers
KNUM = 16        # config.kernel_num
NODE_IN = 21     # h_V feature dim (dihedrals + directions)
NUM_CLASSES = 33
DATA_W = NODE_IN + 3 + 1        # packed per-token input: [h_V | CA xyz | pad-column mask]

_LN_EPS = 1e-5
_SQRT_2PI = math.sqrt(2.0 * math.pi)
_GELU_C = math.sqrt(2.0 / math.pi)


# ---------------- parameter slab layout (static, shared by host packer & kernel) ----------------
def _align8(x):
    return (x + 7) & ~7


def _build_slab_layout():
    entries = []

    def add(name, r, c):
        entries.append((name, r, c))

    add('node_w', NODE_IN, EMBED); add('node_b', 1, EMBED)
    add('pred_w', EMBED, NUM_CLASSES); add('pred_b', 1, NUM_CLASSES)
    add('gbf_mean', 1, KNUM); add('gbf_std', 1, KNUM); add('gbf_mulbias', 1, 2)
    add('gbf_w1', KNUM, KNUM); add('gbf_b1', 1, KNUM)
    add('gbf_w2', KNUM, HEADS); add('gbf_b2', 1, HEADS)
    add('emb_ln_g', 1, EMBED); add('emb_ln_b', 1, EMBED)
    for l in range(LAYERS):
        add(f'attn_ln_g{l}', 1, EMBED); add(f'attn_ln_b{l}', 1, EMBED)
        add(f'in_w{l}', EMBED, 3 * EMBED); add(f'in_b{l}', 1, 3 * EMBED)
        add(f'out_w{l}', EMBED, EMBED); add(f'out_b{l}', 1, EMBED)
        add(f'ffn_ln_g{l}', 1, EMBED); add(f'ffn_ln_b{l}', 1, EMBED)
        add(f'fc1_w{l}', EMBED, FFN); add(f'fc1_b{l}', 1, FFN)
        add(f'fc2_w{l}', FFN, EMBED); add(f'fc2_b{l}', 1, EMBED)
    add('final_ln_g', 1, EMBED); add('final_ln_b', 1, EMBED)
    add('head_ln_g', 1, HEADS); add('head_ln_b', 1, HEADS)

    table = {}
    off = 0
    for name, r, c in entries:
        table[name] = (off, r, c)          # row offset (8-aligned), rows, lanes
        off = _align8(off + r)
    return table, _align8(off)


_SLAB_OFF, _SLAB_ROWS = _build_slab_layout()
_SLAB_W = 128                              # one lane-dense slab, every param at lane 0


def pack_params(params):
    """Pack every parameter into one (rows, 128) f32 slab.  Done ONCE at model load
    (host-side numpy, outside the jitted forward)."""
    slab = np.zeros((_SLAB_ROWS, _SLAB_W), np.float32)

    def put(name, a):
        off, r, c = _SLAB_OFF[name]
        slab[off:off + r, :c] = np.asarray(a, np.float32).reshape(r, c)

    put('node_w', params['node_w']); put('node_b', params['node_b'])
    put('pred_w', params['pred_w']); put('pred_b', params['pred_b'])
    put('gbf_mean', params['gbf_means']); put('gbf_std', params['gbf_stds'])
    put('gbf_mulbias', params['gbf_mulbias'])
    put('gbf_w1', params['gbf_proj_w1']); put('gbf_b1', params['gbf_proj_b1'])
    put('gbf_w2', params['gbf_proj_w2']); put('gbf_b2', params['gbf_proj_b2'])
    put('emb_ln_g', params['emb_ln_g']); put('emb_ln_b', params['emb_ln_b'])
    for l, lyr in enumerate(params['layers']):
        put(f'attn_ln_g{l}', lyr['attn_ln_g']); put(f'attn_ln_b{l}', lyr['attn_ln_b'])
        # weights are stored in right-multiply layout (in_features, out_features);
        # transpose here if loading real torch (out, in) weights.
        put(f'in_w{l}', lyr['in_proj_w']); put(f'in_b{l}', lyr['in_proj_b'])
        put(f'out_w{l}', lyr['out_proj_w']); put(f'out_b{l}', lyr['out_proj_b'])
        put(f'ffn_ln_g{l}', lyr['ffn_ln_g']); put(f'ffn_ln_b{l}', lyr['ffn_ln_b'])
        put(f'fc1_w{l}', lyr['fc1_w']); put(f'fc1_b{l}', lyr['fc1_b'])
        put(f'fc2_w{l}', lyr['fc2_w']); put(f'fc2_b{l}', lyr['fc2_b'])
    put('final_ln_g', params['final_ln_g']); put('final_ln_b', params['final_ln_b'])
    put('head_ln_g', params['head_ln_g']); put('head_ln_b', params['head_ln_b'])
    return jnp.asarray(slab)


# ---------------- in-kernel helpers ----------------
def _gelu(x):
    # tanh-approx GELU (EUP tanh + a few VPU ops); differs from torch's exact-erf GELU
    # only at the ~1e-3 relative level.
    return 0.5 * x * (1.0 + jnp.tanh(_GELU_C * (x + 0.044715 * x * x * x)))


def _ln(x, g, b):
    mu = jnp.mean(x, axis=-1, keepdims=True)
    xc = x - mu
    var = jnp.mean(xc * xc, axis=-1, keepdims=True)
    return xc * lax.rsqrt(var + _LN_EPS) * g + b


# ---------------- the fused forward kernel (one batch element per grid step) ----------------
def _e3pifold_kernel(data_ref, pad_row_ref, slab_ref, logp_ref, xfin_ref, aux_ref):
    def P(name):                                   # static-offset parameter read from the slab
        off, r, c = _SLAB_OFF[name]
        return slab_ref[off:off + r, 0:c]

    data = data_ref[0]                             # (N, DATA_W)
    n = data.shape[0]
    hv = data[:, 0:NODE_IN]                        # (N, 21)
    xca = data[:, NODE_IN:NODE_IN + 3]             # (N, 3)  CA coordinates
    pad_col = data[:, NODE_IN + 3:NODE_IN + 4]     # (N, 1)  padding (query rows)
    pad_row = pad_row_ref[0]                       # (1, N)  padding (key columns)
    tm_col = 1.0 - pad_col
    tm_row = 1.0 - pad_row
    key_pad = pad_row > 0.0
    NEG_INF = float('-inf')

    # ---------------- node embedding + predictor (fused log_softmax) ----------------
    h_node = jnp.dot(hv, P('node_w'), preferred_element_type=jnp.float32) + P('node_b')
    # As in the reference forward, the predictor is applied to the embedder output x
    # (the node embedding), NOT the encoder representation.
    logits = jnp.dot(h_node, P('pred_w'), preferred_element_type=jnp.float32) + P('pred_b')
    lmax = jnp.max(logits, axis=-1, keepdims=True)
    lz = logits - lmax
    logp_ref[0] = lz - jnp.log(jnp.sum(jnp.exp(lz), axis=-1, keepdims=True))

    # ---------------- Gaussian pairwise-distance embedder (2-D (N*N, K) pipeline) ----------------
    # TODO(synk): exact GaussianEncoder definition (use_product branch / pair_mask handling)
    # is not in the reference file; the standard Uni-Mol use_dist path is implemented.
    xsq = xca * xca
    sq_col = jnp.sum(xsq, axis=-1, keepdims=True)                              # (N, 1)
    sq_row = lax.dot_general(jnp.ones((1, 3), jnp.float32), xsq,
                             (((1,), (1,)), ((), ())),
                             preferred_element_type=jnp.float32)               # (1, N)
    gram = lax.dot_general(xca, xca, (((1,), (1,)), ((), ())),
                           preferred_element_type=jnp.float32)                 # (N, N)
    dist = jnp.sqrt(jnp.maximum(sq_col + sq_row - 2.0 * gram, 0.0))            # (N, N)

    mulb = P('gbf_mulbias')                                                    # (1, 2)
    psi = mulb[:, 0:1] * dist + mulb[:, 1:2]                                   # (N, N)
    mean = P('gbf_mean')                                                       # (1, K)
    std = jnp.abs(P('gbf_std')) + 1e-5                                         # (1, K)
    zg = (psi[:, :, None] - mean[None, :, :]) / std[None, :, :]                # (N, N, K)
    g = jnp.exp(-0.5 * zg * zg) / (_SQRT_2PI * std[None, :, :])
    g2 = g.reshape(n * n, KNUM)                                                # safe major-dim collapse

    # NonLinearHead: one (N*N,K)x(K,K) matmul + GELU + one (N*N,K)x(K,H) matmul.
    h1 = _gelu(jnp.dot(g2, P('gbf_w1'), preferred_element_type=jnp.float32) + P('gbf_b1'))
    bias_all = jnp.dot(h1, P('gbf_w2'), preferred_element_type=jnp.float32) + P('gbf_b2')  # (N*N, H)
    bias3 = bias_all.reshape(n, n, HEADS)                                      # safe major-dim expand

    bias = []                                   # per-head (N, N) attention bias, stays in vregs
    for h in range(HEADS):
        sel = lax.broadcasted_iota(jnp.int32, (n, n, HEADS), 2) == h
        bh = jnp.sum(jnp.where(sel, bias3, 0.0), axis=-1)                      # (N, N)
        bias.append(jnp.where(key_pad, NEG_INF, bh))                           # -inf at padded keys
    input_bias = list(bias)                     # matches PyTorch's in-place masked_fill_ aliasing

    # ---------------- TransformerEncoderWithPair ----------------
    x = _ln(h_node, P('emb_ln_g'), P('emb_ln_b')) * tm_col
    scaling = HEAD_DIM ** -0.5

    for l in range(LAYERS):
        # --- self-attention block (pre-LN), single fused QKV matmul ---
        residual = x
        hx = _ln(x, P(f'attn_ln_g{l}'), P(f'attn_ln_b{l}'))
        qkv = jnp.dot(hx, P(f'in_w{l}'), preferred_element_type=jnp.float32) + P(f'in_b{l}')  # (N, 3E)
        new_bias = []
        o_heads = []
        for h in range(HEADS):
            q = qkv[:, h * HEAD_DIM:(h + 1) * HEAD_DIM] * scaling
            k = qkv[:, EMBED + h * HEAD_DIM:EMBED + (h + 1) * HEAD_DIM]
            v = qkv[:, 2 * EMBED + h * HEAD_DIM:2 * EMBED + (h + 1) * HEAD_DIM]
            s = lax.dot_general(q, k, (((1,), (1,)), ((), ())),
                                preferred_element_type=jnp.float32) + bias[h]   # (N, N)
            new_bias.append(s)                          # pre-softmax logits = pair update
            smax = jnp.maximum(jnp.max(s, axis=-1, keepdims=True), -1e30)       # all-masked-row guard
            p = jnp.exp(s - smax)
            p = p / (jnp.sum(p, axis=-1, keepdims=True) + 1e-30)
            o_heads.append(jnp.dot(p, v, preferred_element_type=jnp.float32))   # (N, D)
        bias = new_bias
        o_cat = jnp.concatenate(o_heads, axis=-1)                               # (N, E)
        attn_out = jnp.dot(o_cat, P(f'out_w{l}'),
                           preferred_element_type=jnp.float32) + P(f'out_b{l}')
        x = residual + attn_out
        # --- FFN block (pre-LN), GELU fused ---
        residual = x
        hx = _ln(x, P(f'ffn_ln_g{l}'), P(f'ffn_ln_b{l}'))
        hx = _gelu(jnp.dot(hx, P(f'fc1_w{l}'), preferred_element_type=jnp.float32) + P(f'fc1_b{l}'))
        hx = jnp.dot(hx, P(f'fc2_w{l}'), preferred_element_type=jnp.float32) + P(f'fc2_b{l}')
        x = residual + hx

    # ---------------- epilogue: norm statistics, final / head LayerNorms ----------------
    xn = jnp.sqrt(jnp.sum(x * x, axis=-1, keepdims=True) + 1e-10)               # (N, 1)
    xloss = jnp.maximum(jnp.abs(xn - EMBED ** 0.5) - 1.0, 0.0)
    xnorm = (jnp.sum(tm_col * xloss, axis=0, keepdims=True)
             / (1e-10 + jnp.sum(tm_col, axis=0, keepdims=True)))                # (1, 1)

    xfin_ref[0] = _ln(x, P('final_ln_g'), P('final_ln_b'))

    # delta pair representation: mask padded key columns to 0 BEFORE subtracting so the
    # reference's (-inf) - (-inf) = NaN (subsequently filled with 0) can never appear.
    delta = []
    for h in range(HEADS):
        fh = jnp.where(key_pad, 0.0, bias[h])
        ih = jnp.where(key_pad, 0.0, input_bias[h])
        delta.append(fh - ih)

    pair_mask2 = tm_col * tm_row                                                # (N, N)
    d2s = delta[0] * delta[0]
    for h in range(1, HEADS):
        d2s = d2s + delta[h] * delta[h]
    dn = jnp.sqrt(d2s + 1e-10)
    dloss = jnp.maximum(jnp.abs(dn - HEADS ** 0.5) - 1.0, 0.0)
    dnum = jnp.sum(jnp.sum(pair_mask2 * dloss, axis=-1, keepdims=True), axis=0, keepdims=True)
    dden = 1e-10 + jnp.sum(jnp.sum(pair_mask2, axis=-1, keepdims=True), axis=0, keepdims=True)
    dnorm = dnum / dden                                                         # (1, 1)

    # head LayerNorm (normalizes over the head dimension of delta)
    mu = delta[0]
    for h in range(1, HEADS):
        mu = mu + delta[h]
    mu = mu * (1.0 / HEADS)
    var = (delta[0] - mu) * (delta[0] - mu)
    for h in range(1, HEADS):
        var = var + (delta[h] - mu) * (delta[h] - mu)
    var = var * (1.0 / HEADS)
    inv = lax.rsqrt(var + _LN_EPS)
    hg = P('head_ln_g')                                                         # (1, H)
    hb = P('head_ln_b')
    dln_list = [(delta[h] - mu) * inv * hg[:, h:h + 1] + hb[:, h:h + 1] for h in range(HEADS)]

    # pack pair (H*N rows), head-LN'd delta (H*N rows) and the 2 scalars into ONE aux slab
    # and write it with a single store -> one output writeback DMA per grid step.
    ri = lax.broadcasted_iota(jnp.int32, (8, n), 0)
    ci = lax.broadcasted_iota(jnp.int32, (8, n), 1)
    stats = (jnp.where((ri == 0) & (ci == 0), xnorm, 0.0)
             + jnp.where((ri == 0) & (ci == 1), dnorm, 0.0))                    # (8, N)
    aux_ref[0] = jnp.concatenate(bias + dln_list + [stats], axis=0)             # (2*H*N + 8, N)


# ---------------- model forward: one fused pallas_call + tiny XLA glue ----------------
def e3pifold_forward(slab, batch):
    X_ca = batch['X'][:, :, 1]                          # CA coordinates (B, N, 3)
    h_V = batch['h_V']                                  # (B, N, 21) precomputed node features
    seq_mask = batch['mask']                            # (B, N)
    Bb, Nn, _ = h_V.shape

    padding = 1.0 - seq_mask
    data = jnp.concatenate([h_V, X_ca, padding[..., None]], axis=-1)   # (B, N, DATA_W)
    pad_row = padding[:, None, :]                                      # (B, 1, N)

    aux_rows = 2 * HEADS * Nn + 8
    out_shape = (
        jax.ShapeDtypeStruct((Bb, Nn, NUM_CLASSES), jnp.float32),      # log_probs
        jax.ShapeDtypeStruct((Bb, Nn, EMBED), jnp.float32),            # encoder_rep
        jax.ShapeDtypeStruct((Bb, aux_rows, Nn), jnp.float32),         # packed pair/delta/stats
    )
    in_specs = [
        pl.BlockSpec((1, Nn, DATA_W), lambda b: (b, 0, 0)),
        pl.BlockSpec((1, 1, Nn), lambda b: (b, 0, 0)),
        pl.BlockSpec((_SLAB_ROWS, _SLAB_W), lambda b: (0, 0)),         # parameter slab, grid-invariant
    ]
    out_specs = (
        pl.BlockSpec((1, Nn, NUM_CLASSES), lambda b: (b, 0, 0)),
        pl.BlockSpec((1, Nn, EMBED), lambda b: (b, 0, 0)),
        pl.BlockSpec((1, aux_rows, Nn), lambda b: (b, 0, 0)),
    )

    logp, xfin, aux = pl.pallas_call(
        _e3pifold_kernel,
        grid=(Bb,),
        in_specs=in_specs,
        out_specs=out_specs,
        out_shape=out_shape,
        compiler_params=pltpu.CompilerParams(dimension_semantics=("parallel",)),
    )(data, pad_row, slab)

    # cheap XLA glue on the tiny auxiliary outputs (reference layout reconstruction)
    HN = HEADS * Nn
    pair = aux[:, :HN, :].reshape(Bb, HEADS, Nn, Nn).transpose(0, 2, 3, 1)       # (B, N, N, H)
    delta_ln = aux[:, HN:2 * HN, :].reshape(Bb, HEADS, Nn, Nn).transpose(0, 2, 3, 1)
    x_norm = jnp.mean(aux[:, 2 * HN, 0])
    delta_norm = jnp.mean(aux[:, 2 * HN, 1])
    enc_out = (xfin, pair, delta_ln, x_norm, delta_norm)
    return {'log_probs': logp}, enc_out


# ---------------- deterministic parameter init (PyTorch-like layouts) ----------------
def init_params(key):
    def w(k, shape, scale=0.1):
        return scale * jax.random.normal(k, shape, jnp.float32)

    ks = jax.random.split(key, 8)
    params = {
        'node_w': w(ks[0], (NODE_IN, EMBED)), 'node_b': jnp.zeros((1, EMBED), jnp.float32),
        'gbf_means': jax.random.uniform(ks[1], (1, KNUM), jnp.float32, 0.0, 3.0),
        'gbf_stds': jax.random.uniform(ks[2], (1, KNUM), jnp.float32, 0.5, 2.0),
        'gbf_mulbias': jnp.array([1.0, 0.0], jnp.float32),
        'gbf_proj_w1': w(ks[3], (KNUM, KNUM)), 'gbf_proj_b1': jnp.zeros((1, KNUM), jnp.float32),
        'gbf_proj_w2': w(ks[4], (KNUM, HEADS)), 'gbf_proj_b2': jnp.zeros((1, HEADS), jnp.float32),
        'emb_ln_g': jnp.ones((1, EMBED), jnp.float32), 'emb_ln_b': jnp.zeros((1, EMBED), jnp.float32),
        'final_ln_g': jnp.ones((1, EMBED), jnp.float32), 'final_ln_b': jnp.zeros((1, EMBED), jnp.float32),
        'head_ln_g': jnp.ones((1, HEADS), jnp.float32), 'head_ln_b': jnp.zeros((1, HEADS), jnp.float32),
        'pred_w': w(ks[5], (EMBED, NUM_CLASSES)), 'pred_b': jnp.zeros((1, NUM_CLASSES), jnp.float32),
    }
    layers = []
    for i in range(LAYERS):
        kk = jax.random.split(jax.random.fold_in(key, 100 + i), 4)
        layers.append({
            'attn_ln_g': jnp.ones((1, EMBED), jnp.float32), 'attn_ln_b': jnp.zeros((1, EMBED), jnp.float32),
            'in_proj_w': w(kk[0], (EMBED, 3 * EMBED)), 'in_proj_b': jnp.zeros((1, 3 * EMBED), jnp.float32),
            'out_proj_w': w(kk[1], (EMBED, EMBED)), 'out_proj_b': jnp.zeros((1, EMBED), jnp.float32),
            'ffn_ln_g': jnp.ones((1, EMBED), jnp.float32), 'ffn_ln_b': jnp.zeros((1, EMBED), jnp.float32),
            'fc1_w': w(kk[2], (EMBED, FFN)), 'fc1_b': jnp.zeros((1, FFN), jnp.float32),
            'fc2_w': w(kk[3], (FFN, EMBED)), 'fc2_b': jnp.zeros((1, EMBED), jnp.float32),
        })
    params['layers'] = layers
    return params


# ---------------- main ----------------
if __name__ == "__main__":
    key = jax.random.PRNGKey(0)
    kparam, kx, kh = jax.random.split(key, 3)
    params = init_params(kparam)
    slab = pack_params(params)          # done ONCE at model load, outside the jitted forward

    X = 3.0 * jax.random.normal(kx, (B, N, 4, 3), jnp.float32)   # backbone coords (N, CA, C, O)
    # TODO(synk): _get_features (top-k graph + dihedral/orientation features) is host-side
    # preprocessing in the reference; h_V is passed in precomputed here.
    h_V = jax.random.normal(kh, (B, N, NODE_IN), jnp.float32)
    mask = jnp.ones((B, N), jnp.float32).at[1, 6:].set(0.0)      # last two tokens of batch 1 padded
    batch = {'X': X, 'h_V': h_V, 'mask': mask}

    fwd = jax.jit(e3pifold_forward)
    out, enc_aux = fwd(slab, batch)
    jax.block_until_ready((out, enc_aux))

    lp = out['log_probs']
    assert lp.shape == (B, N, NUM_CLASSES)
    assert bool(jnp.all(jnp.isfinite(lp)))

    x_final, pair_rep, delta_ln, x_norm, delta_norm = enc_aux
    assert x_final.shape == (B, N, EMBED)
    assert pair_rep.shape == (B, N, N, HEADS)       # keeps reference's -inf at padded keys
    assert delta_ln.shape == (B, N, N, HEADS)
    assert bool(jnp.all(jnp.isfinite(x_final)))
    assert bool(jnp.all(jnp.isfinite(delta_ln)))
    assert bool(jnp.isfinite(x_norm)) and bool(jnp.isfinite(delta_norm))
    print("KERNEL_OK")
</pallas_src>

<mosaic_0001>
module attributes {stable_mosaic.version = 11 : i64} {
  func.func @_e3pifold_kernel(%arg0: i32, %arg1: memref<1x8x25xf32, #tpu.memory_space<vmem>>, %arg2: memref<1x1x8xf32, #tpu.memory_space<vmem>>, %arg3: memref<640x128xf32, #tpu.memory_space<vmem>>, %arg4: memref<1x8x33xf32, #tpu.memory_space<vmem>>, %arg5: memref<1x8x32xf32, #tpu.memory_space<vmem>>, %arg6: memref<1x72x8xf32, #tpu.memory_space<vmem>>) attributes {dimension_semantics = [#tpu.dimension_semantics<parallel>], iteration_bounds = array<i64: 2>, scalar_prefetch = 0 : i64, scratch_operands = 0 : i64, tpu.core_type = #tpu.core_type<tc>, window_params = [{transform_indices = @transform_0, window_bounds = array<i64: 1, 8, 25>}, {transform_indices = @transform_1, window_bounds = array<i64: 1, 1, 8>}, {pipeline_mode = #tpu.pipeline_mode<synchronous>, transform_indices = @transform_2, window_bounds = array<i64: 640, 128>}, {transform_indices = @transform_3, window_bounds = array<i64: 1, 8, 33>}, {transform_indices = @transform_4, window_bounds = array<i64: 1, 8, 32>}, {transform_indices = @transform_5, window_bounds = array<i64: 1, 72, 8>}]} {
    %c0 = arith.constant 0 : index
    %c0_0 = arith.constant 0 : index
    %c0_1 = arith.constant 0 : index
    %0 = vector.load %arg1[%c0, %c0_0, %c0_1] : memref<1x8x25xf32, #tpu.memory_space<vmem>>, vector<1x8x25xf32>
    %1 = vector.shape_cast %0 : vector<1x8x25xf32> to vector<8x25xf32>
    %2 = vector.extract_strided_slice %1 {offsets = [0, 0], sizes = [8, 21], strides = [1, 1]} : vector<8x25xf32> to vector<8x21xf32>
    %3 = vector.extract_strided_slice %1 {offsets = [0, 21], sizes = [8, 3], strides = [1, 1]} : vector<8x25xf32> to vector<8x3xf32>
    %4 = vector.extract_strided_slice %1 {offsets = [0, 24], sizes = [8, 1], strides = [1, 1]} : vector<8x25xf32> to vector<8x1xf32>
    %c0_2 = arith.constant 0 : index
    %c0_3 = arith.constant 0 : index
    %c0_4 = arith.constant 0 : index
    %5 = vector.load %arg2[%c0_2, %c0_3, %c0_4] : memref<1x1x8xf32, #tpu.memory_space<vmem>>, vector<1x1x8xf32>
    %6 = vector.shape_cast %5 : vector<1x1x8xf32> to vector<1x8xf32>
    %cst = arith.constant 1.000000e+00 : f32
    %7 = vector.broadcast %cst : f32 to vector<8x1xf32>
    %8 = arith.subf %7, %4 : vector<8x1xf32>
    %cst_5 = arith.constant 1.000000e+00 : f32
    %9 = vector.broadcast %cst_5 : f32 to vector<1x8xf32>
    %10 = arith.subf %9, %6 : vector<1x8xf32>
    %cst_6 = arith.constant 0.000000e+00 : f32
    %11 = vector.broadcast %cst_6 : f32 to vector<1x8xf32>
    %12 = arith.cmpf ogt, %6, %11 : vector<1x8xf32>
    %c0_7 = arith.constant 0 : index
    %c0_8 = arith.constant 0 : index
    %13 = vector.load %arg3[%c0_7, %c0_8] : memref<640x128xf32, #tpu.memory_space<vmem>>, vector<21x32xf32>
    %cst_9 = arith.constant dense<0.000000e+00> : vector<8x32xf32>
    %14 = tpu.matmul %2, %13, %cst_9 {dimension_numbers = #tpu.dot_dimension_numbers<[1], [0], [0], [1], [0, 0, 1, 1], [], []>} : vector<8x21xf32>, vector<21x32xf32>, vector<8x32xf32> -> vector<8x32xf32>
    %c24 = arith.constant 24 : index
    %c0_10 = arith.constant 0 : index
    %15 = vector.load %arg3[%c24, %c0_10] : memref<640x128xf32, #tpu.memory_space<vmem>>, vector<1x32xf32>
    %16 = vector.broadcast %15 : vector<1x32xf32> to vector<8x32xf32>
    %17 = arith.addf %14, %16 : vector<8x32xf32>
    %c32 = arith.constant 32 : index
    %c0_11 = arith.constant 0 : index
    %18 = vector.load %arg3[%c32, %c0_11] : memref<640x128xf32, #tpu.memory_space<vmem>>, vector<32x33xf32>
    %cst_12 = arith.constant dense<0.000000e+00> : vector<8x33xf32>
    %19 = tpu.matmul %17, %18, %cst_12 {dimension_numbers = #tpu.dot_dimension_numbers<[1], [0], [0], [1], [0, 0, 1, 1], [], []>} : vector<8x32xf32>, vector<32x33xf32>, vector<8x33xf32> -> vector<8x33xf32>
    %c64 = arith.constant 64 : index
    %c0_13 = arith.constant 0 : index
    %20 = vector.load %arg3[%c64, %c0_13] : memref<640x128xf32, #tpu.memory_space<vmem>>, vector<1x33xf32>
    %21 = vector.broadcast %20 : vector<1x33xf32> to vector<8x33xf32>
    %22 = arith.addf %19, %21 : vector<8x33xf32>
    %cst_14 = arith.constant dense<0xFF800000> : vector<8xf32>
    %23 = vector.multi_reduction <maximumf>, %22, %cst_14 [1] : vector<8x33xf32> to vector<8xf32>
    %24 = vector.shape_cast %23 : vector<8xf32> to vector<8x1xf32>
    %25 = vector.broadcast %24 : vector<8x1xf32> to vector<8x33xf32>
    %26 = arith.subf %22, %25 : vector<8x33xf32>
    %27 = math.exp %26 : vector<8x33xf32>
    %cst_15 = arith.constant dense<0.000000e+00> : vector<8xf32>
    %28 = vector.multi_reduction <add>, %27, %cst_15 [1] : vector<8x33xf32> to vector<8xf32>
    %29 = vector.shape_cast %28 : vector<8xf32> to vector<8x1xf32>
    %30 = math.log %29 : vector<8x1xf32>
    %31 = vector.broadcast %30 : vector<8x1xf32> to vector<8x33xf32>
    %32 = arith.subf %26, %31 : vector<8x33xf32>
    %c0_16 = arith.constant 0 : index
    %c0_17 = arith.constant 0 : index
    %c0_18 = arith.constant 0 : index
    %33 = vector.load %arg4[%c0_16, %c0_17, %c0_18] : memref<1x8x33xf32, #tpu.memory_space<vmem>>, vector<1x8x33xf32>
    %34 = vector.shape_cast %33 : vector<1x8x33xf32> to vector<8x33xf32>
    %35 = vector.shape_cast %32 : vector<8x33xf32> to vector<1x8x33xf32>
    tpu.vector_store %arg4[%c0_16, %c0_17, %c0_18], %35 {strides = array<i32>} : memref<1x8x33xf32, #tpu.memory_space<vmem>>, vector<1x8x33xf32>,
    %36 = arith.mulf %3, %3 : vector<8x3xf32>
    %cst_19 = arith.constant dense<0.000000e+00> : vector<8xf32>
    %37 = vector.multi_reduction <add>, %36, %cst_19 [1] : vector<8x3xf32> to vector<8xf32>
    %38 = vector.shape_cast %37 : vector<8xf32> to vector<8x1xf32>
    %cst_20 = arith.constant 1.000000e+00 : f32
    %39 = vector.broadcast %cst_20 : f32 to vector<1x3xf32>
    %cst_21 = arith.constant dense<0.000000e+00> : vector<1x8xf32>
    %40 = tpu.matmul %39, %36, %cst_21 {dimension_numbers = #tpu.dot_dimension_numbers<[1], [1], [0], [0], [0, 0, 1, 0], [], []>} : vector<1x3xf32>, vector<8x3xf32>, vector<1x8xf32> -> vector<1x8xf32>
    %cst_22 = arith.constant dense<0.000000e+00> : vector<8x8xf32>
    %41 = tpu.matmul %3, %3, %cst_22 {dimension_numbers = #tpu.dot_dimension_numbers<[1], [1], [0], [0], [0, 0, 1, 0], [], []>} : vector<8x3xf32>, vector<8x3xf32>, vector<8x8xf32> -> vector<8x8xf32>
    %42 = vector.broadcast %38 : vector<8x1xf32> to vector<8x8xf32>
    %43 = vector.broadcast %40 : vector<1x8xf32> to vector<8x8xf32>
    %44 = arith.addf %42, %43 : vector<8x8xf32>
    %cst_23 = arith.constant 2.000000e+00 : f32
    %45 = vector.broadcast %cst_23 : f32 to vector<8x8xf32>
    %46 = arith.mulf %45, %41 : vector<8x8xf32>
    %47 = arith.subf %44, %46 : vector<8x8xf32>
    %cst_24 = arith.constant 0.000000e+00 : f32
    %48 = vector.broadcast %cst_24 : f32 to vector<8x8xf32>
    %49 = arith.maximumf %47, %48 : vector<8x8xf32>
    %50 = math.sqrt %49 : vector<8x8xf32>
    %c88 = arith.constant 88 : index
    %c0_25 = arith.constant 0 : index
    %51 = vector.load %arg3[%c88, %c0_25] : memref<640x128xf32, #tpu.memory_space<vmem>>, vector<1x2xf32>
    %52 = vector.extract_strided_slice %51 {offsets = [0, 0], sizes = [1, 1], strides = [1, 1]} : vector<1x2xf32> to vector<1x1xf32>
    %53 = vector.broadcast %52 : vector<1x1xf32> to vector<8x8xf32>
    %54 = arith.mulf %53, %50 : vector<8x8xf32>
    %55 = vector.extract_strided_slice %51 {offsets = [0, 1], sizes = [1, 1], strides = [1, 1]} : vector<1x2xf32> to vector<1x1xf32>
    %56 = vector.broadcast %55 : vector<1x1xf32> to vector<8x8xf32>
    %57 = arith.addf %54, %56 : vector<8x8xf32>
    %c72 = arith.constant 72 : index
    %c0_26 = arith.constant 0 : index
    %58 = vector.load %arg3[%c72, %c0_26] : memref<640x128xf32, #tpu.memory_space<vmem>>, vector<1x16xf32>
    %c80 = arith.constant 80 : index
    %c0_27 = arith.constant 0 : index
    %59 = vector.load %arg3[%c80, %c0_27] : memref<640x128xf32, #tpu.memory_space<vmem>>, vector<1x16xf32>
    %60 = math.absf %59 : vector<1x16xf32>
    %cst_28 = arith.constant 9.99999974E-6 : f32
    %61 = vector.broadcast %cst_28 : f32 to vector<1x16xf32>
    %62 = arith.addf %60, %61 : vector<1x16xf32>
    %63 = vector.shape_cast %57 : vector<8x8xf32> to vector<8x8x1xf32>
    %64 = vector.shape_cast %58 : vector<1x16xf32> to vector<1x1x16xf32>
    %65 = vector.broadcast %63 : vector<8x8x1xf32> to vector<8x8x16xf32>
    %66 = vector.broadcast %64 : vector<1x1x16xf32> to vector<8x8x16xf32>
    %67 = arith.subf %65, %66 : vector<8x8x16xf32>
    %68 = vector.shape_cast %62 : vector<1x16xf32> to vector<1x1x16xf32>
    %69 = vector.broadcast %68 : vector<1x1x16xf32> to vector<8x8x16xf32>
    %70 = arith.divf %67, %69 : vector<8x8x16xf32>
    %cst_29 = arith.constant -5.000000e-01 : f32
    %71 = vector.broadcast %cst_29 : f32 to vector<8x8x16xf32>
    %72 = arith.mulf %71, %70 : vector<8x8x16xf32>
    %73 = arith.mulf %72, %70 : vector<8x8x16xf32>
    %74 = math.exp %73 : vector<8x8x16xf32>
    %75 = vector.shape_cast %62 : vector<1x16xf32> to vector<1x1x16xf32>
    %cst_30 = arith.constant 2.50662827 : f32
    %76 = vector.broadcast %cst_30 : f32 to vector<1x1x16xf32>
    %77 = arith.mulf %76, %75 : vector<1x1x16xf32>
    %78 = vector.broadcast %77 : vector<1x1x16xf32> to vector<8x8x16xf32>
    %79 = arith.divf %74, %78 : vector<8x8x16xf32>
    %80 = vector.shape_cast %79 : vector<8x8x16xf32> to vector<64x16xf32>
    %c96 = arith.constant 96 : index
    %c0_31 = arith.constant 0 : index
    %81 = vector.load %arg3[%c96, %c0_31] : memref<640x128xf32, #tpu.memory_space<vmem>>, vector<16x16xf32>
    %cst_32 = arith.constant dense<0.000000e+00> : vector<64x16xf32>
    %82 = tpu.matmul %80, %81, %cst_32 {dimension_numbers = #tpu.dot_dimension_numbers<[1], [0], [0], [1], [0, 0, 1, 1], [], []>} : vector<64x16xf32>, vector<16x16xf32>, vector<64x16xf32> -> vector<64x16xf32>
    %c112 = arith.constant 112 : index
    %c0_33 = arith.constant 0 : index
    %83 = vector.load %arg3[%c112, %c0_33] : memref<640x128xf32, #tpu.memory_space<vmem>>, vector<1x16xf32>
    %84 = vector.broadcast %83 : vector<1x16xf32> to vector<64x16xf32>
    %85 = arith.addf %82, %84 : vector<64x16xf32>
    %cst_34 = arith.constant 5.000000e-01 : f32
    %86 = vector.broadcast %cst_34 : f32 to vector<64x16xf32>
    %87 = arith.mulf %86, %85 : vector<64x16xf32>
    %cst_35 = arith.constant 4.471500e-02 : f32
    %88 = vector.broadcast %cst_35 : f32 to vector<64x16xf32>
    %89 = arith.mulf %88, %85 : vector<64x16xf32>
    %90 = arith.mulf %89, %85 : vector<64x16xf32>
    %91 = arith.mulf %90, %85 : vector<64x16xf32>
    %92 = arith.addf %85, %91 : vector<64x16xf32>
    %cst_36 = arith.constant 0.797884583 : f32
    %93 = vector.broadcast %cst_36 : f32 to vector<64x16xf32>
    %94 = arith.mulf %93, %92 : vector<64x16xf32>
    %95 = math.tanh %94 : vector<64x16xf32>
    %cst_37 = arith.constant 1.000000e+00 : f32
    %96 = vector.broadcast %cst_37 : f32 to vector<64x16xf32>
    %97 = arith.addf %96, %95 : vector<64x16xf32>
    %98 = arith.mulf %87, %97 : vector<64x16xf32>
    %c120 = arith.constant 120 : index
    %c0_38 = arith.constant 0 : index
    %99 = vector.load %arg3[%c120, %c0_38] : memref<640x128xf32, #tpu.memory_space<vmem>>, vector<16x4xf32>
    %cst_39 = arith.constant dense<0.000000e+00> : vector<64x4xf32>
    %100 = tpu.matmul %98, %99, %cst_39 {dimension_numbers = #tpu.dot_dimension_numbers<[1], [0], [0], [1], [0, 0, 1, 1], [], []>} : vector<64x16xf32>, vector<16x4xf32>, vector<64x4xf32> -> vector<64x4xf32>
    %c136 = arith.constant 136 : index
    %c0_40 = arith.constant 0 : index
    %101 = vector.load %arg3[%c136, %c0_40] : memref<640x128xf32, #tpu.memory_space<vmem>>, vector<1x4xf32>
    %102 = vector.broadcast %101 : vector<1x4xf32> to vector<64x4xf32>
    %103 = arith.addf %100, %102 : vector<64x4xf32>
    %104 = vector.shape_cast %103 : vector<64x4xf32> to vector<8x8x4xf32>
    %105 = tpu.iota {dimensions = array<i32: 2>} : vector<8x8x4xi32>
    %c0_i32 = arith.constant 0 : i32
    %106 = vector.broadcast %c0_i32 : i32 to vector<8x8x4xi32>
    %107 = arith.cmpi eq, %105, %106 : vector<8x8x4xi32>
    %cst_41 = arith.constant 0.000000e+00 : f32
    %108 = vector.broadcast %cst_41 : f32 to vector<8x8x4xf32>
    %109 = arith.select %107, %104, %108 : vector<8x8x4xi1>, vector<8x8x4xf32>
    %cst_42 = arith.constant dense<0.000000e+00> : vector<8x8xf32>
    %110 = vector.multi_reduction <add>, %109, %cst_42 [2] : vector<8x8x4xf32> to vector<8x8xf32>
    %cst_43 = arith.constant 0xFF800000 : f32
    %111 = vector.shape_cast %12 : vector<1x8xi1> to vector<1x8xi1>
    %112 = vector.broadcast %111 : vector<1x8xi1> to vector<8x8xi1>
    %113 = vector.broadcast %cst_43 : f32 to vector<8x8xf32>
    %114 = arith.select %112, %113, %110 : vector<8x8xi1>, vector<8x8xf32>
    %115 = tpu.iota {dimensions = array<i32: 2>} : vector<8x8x4xi32>
    %c1_i32 = arith.constant 1 : i32
    %116 = vector.broadcast %c1_i32 : i32 to vector<8x8x4xi32>
    %117 = arith.cmpi eq, %115, %116 : vector<8x8x4xi32>
    %cst_44 = arith.constant 0.000000e+00 : f32
    %118 = vector.broadcast %cst_44 : f32 to vector<8x8x4xf32>
    %119 = arith.select %117, %104, %118 : vector<8x8x4xi1>, vector<8x8x4xf32>
    %cst_45 = arith.constant dense<0.000000e+00> : vector<8x8xf32>
    %120 = vector.multi_reduction <add>, %119, %cst_45 [2] : vector<8x8x4xf32> to vector<8x8xf32>
    %cst_46 = arith.constant 0xFF800000 : f32
    %121 = vector.shape_cast %12 : vector<1x8xi1> to vector<1x8xi1>
    %122 = vector.broadcast %121 : vector<1x8xi1> to vector<8x8xi1>
    %123 = vector.broadcast %cst_46 : f32 to vector<8x8xf32>
    %124 = arith.select %122, %123, %120 : vector<8x8xi1>, vector<8x8xf32>
    %125 = tpu.iota {dimensions = array<i32: 2>} : vector<8x8x4xi32>
    %c2_i32 = arith.constant 2 : i32
    %126 = vector.broadcast %c2_i32 : i32 to vector<8x8x4xi32>
    %127 = arith.cmpi eq, %125, %126 : vector<8x8x4xi32>
    %cst_47 = arith.constant 0.000000e+00 : f32
    %128 = vector.broadcast %cst_47 : f32 to vector<8x8x4xf32>
    %129 = arith.select %127, %104, %128 : vector<8x8x4xi1>, vector<8x8x4xf32>
    %cst_48 = arith.constant dense<0.000000e+00> : vector<8x8xf32>
    %130 = vector.multi_reduction <add>, %129, %cst_48 [2] : vector<8x8x4xf32> to vector<8x8xf32>
    %cst_49 = arith.constant 0xFF800000 : f32
    %131 = vector.shape_cast %12 : vector<1x8xi1> to vector<1x8xi1>
    %132 = vector.broadcast %131 : vector<1x8xi1> to vector<8x8xi1>
    %133 = vector.broadcast %cst_49 : f32 to vector<8x8xf32>
    %134 = arith.select %132, %133, %130 : vector<8x8xi1>, vector<8x8xf32>
    %135 = tpu.iota {dimensions = array<i32: 2>} : vector<8x8x4xi32>
    %c3_i32 = arith.constant 3 : i32
    %136 = vector.broadcast %c3_i32 : i32 to vector<8x8x4xi32>
    %137 = arith.cmpi eq, %135, %136 : vector<8x8x4xi32>
    %cst_50 = arith.constant 0.000000e+00 : f32
    %138 = vector.broadcast %cst_50 : f32 to vector<8x8x4xf32>
    %139 = arith.select %137, %104, %138 : vector<8x8x4xi1>, vector<8x8x4xf32>
    %cst_51 = arith.constant dense<0.000000e+00> : vector<8x8xf32>
    %140 = vector.multi_reduction <add>, %139, %cst_51 [2] : vector<8x8x4xf32> to vector<8x8xf32>
    %cst_52 = arith.constant 0xFF800000 : f32
    %141 = vector.shape_cast %12 : vector<1x8xi1> to vector<1x8xi1>
    %142 = vector.broadcast %141 : vector<1x8xi1> to vector<8x8xi1>
    %143 = vector.broadcast %cst_52 : f32 to vector<8x8xf32>
    %144 = arith.select %142, %143, %140 : vector<8x8xi1>, vector<8x8xf32>
    %c144 = arith.constant 144 : index
    %c0_53 = arith.constant 0 : index
    %145 = vector.load %arg3[%c144, %c0_53] : memref<640x128xf32, #tpu.memory_space<vmem>>, vector<1x32xf32>
    %c152 = arith.constant 152 : index
    %c0_54 = arith.constant 0 : index
    %146 = vector.load %arg3[%c152, %c0_54] : memref<640x128xf32, #tpu.memory_space<vmem>>, vector<1x32xf32>
    %cst_55 = arith.constant dense<0.000000e+00> : vector<8xf32>
    %147 = vector.multi_reduction <add>, %17, %cst_55 [1] : vector<8x32xf32> to vector<8xf32>
    %148 = vector.shape_cast %147 : vector<8xf32> to vector<8x1xf32>
    %cst_56 = arith.constant 3.200000e+01 : f32
    %149 = vector.broadcast %cst_56 : f32 to vector<8x1xf32>
    %150 = arith.divf %148, %149 : vector<8x1xf32>
    %151 = vector.broadcast %150 : vector<8x1xf32> to vector<8x32xf32>
    %152 = arith.subf %17, %151 : vector<8x32xf32>
    %153 = arith.mulf %152, %152 : vector<8x32xf32>
    %cst_57 = arith.constant dense<0.000000e+00> : vector<8xf32>
    %154 = vector.multi_reduction <add>, %153, %cst_57 [1] : vector<8x32xf32> to vector<8xf32>
    %155 = vector.shape_cast %154 : vector<8xf32> to vector<8x1xf32>
    %cst_58 = arith.constant 3.200000e+01 : f32
    %156 = vector.broadcast %cst_58 : f32 to vector<8x1xf32>
    %157 = arith.divf %155, %156 : vector<8x1xf32>
    %cst_59 = arith.constant 9.99999974E-6 : f32
    %158 = vector.broadcast %cst_59 : f32 to vector<8x1xf32>
    %159 = arith.addf %157, %158 : vector<8x1xf32>
    %160 = math.rsqrt %159 : vector<8x1xf32>
    %161 = vector.broadcast %160 : vector<8x1xf32> to vector<8x32xf32>
    %162 = arith.mulf %152, %161 : vector<8x32xf32>
    %163 = vector.broadcast %145 : vector<1x32xf32> to vector<8x32xf32>
    %164 = arith.mulf %162, %163 : vector<8x32xf32>
    %165 = vector.broadcast %146 : vector<1x32xf32> to vector<8x32xf32>
    %166 = arith.addf %164, %165 : vector<8x32xf32>
    %167 = vector.broadcast %8 : vector<8x1xf32> to vector<8x32xf32>
    %168 = arith.mulf %166, %167 : vector<8x32xf32>
    %c160 = arith.constant 160 : index
    %c0_60 = arith.constant 0 : index
    %169 = vector.load %arg3[%c160, %c0_60] : memref<640x128xf32, #tpu.memory_space<vmem>>, vector<1x32xf32>
    %c168 = arith.constant 168 : index
    %c0_61 = arith.constant 0 : index
    %170 = vector.load %arg3[%c168, %c0_61] : memref<640x128xf32, #tpu.memory_space<vmem>>, vector<1x32xf32>
    %cst_62 = arith.constant dense<0.000000e+00> : vector<8xf32>
    %171 = vector.multi_reduction <add>, %168, %cst_62 [1] : vector<8x32xf32> to vector<8xf32>
    %172 = vector.shape_cast %171 : vector<8xf32> to vector<8x1xf32>
    %cst_63 = arith.constant 3.200000e+01 : f32
    %173 = vector.broadcast %cst_63 : f32 to vector<8x1xf32>
    %174 = arith.divf %172, %173 : vector<8x1xf32>
    %175 = vector.broadcast %174 : vector<8x1xf32> to vector<8x32xf32>
    %176 = arith.subf %168, %175 : vector<8x32xf32>
    %177 = arith.mulf %176, %176 : vector<8x32xf32>
    %cst_64 = arith.constant dense<0.000000e+00> : vector<8xf32>
    %178 = vector.multi_reduction <add>, %177, %cst_64 [1] : vector<8x32xf32> to vector<8xf32>
    %179 = vector.shape_cast %178 : vector<8xf32> to vector<8x1xf32>
    %cst_65 = arith.constant 3.200000e+01 : f32
    %180 = vector.broadcast %cst_65 : f32 to vector<8x1xf32>
    %181 = arith.divf %179, %180 : vector<8x1xf32>
    %cst_66 = arith.constant 9.99999974E-6 : f32
    %182 = vector.broadcast %cst_66 : f32 to vector<8x1xf32>
    %183 = arith.addf %181, %182 : vector<8x1xf32>
    %184 = math.rsqrt %183 : vector<8x1xf32>
    %185 = vector.broadcast %184 : vector<8x1xf32> to vector<8x32xf32>
    %186 = arith.mulf %176, %185 : vector<8x32xf32>
    %187 = vector.broadcast %169 : vector<1x32xf32> to vector<8x32xf32>
    %188 = arith.mulf %186, %187 : vector<8x32xf32>
    %189 = vector.broadcast %170 : vector<1x32xf32> to vector<8x32xf32>
    %190 = arith.addf %188, %189 : vector<8x32xf32>
    %c176 = arith.constant 176 : index
    %c0_67 = arith.constant 0 : index
    %191 = vector.load %arg3[%c176, %c0_67] : memref<640x128xf32, #tpu.memory_space<vmem>>, vector<32x96xf32>
    %cst_68 = arith.constant dense<0.000000e+00> : vector<8x96xf32>
    %192 = tpu.matmul %190, %191, %cst_68 {dimension_numbers = #tpu.dot_dimension_numbers<[1], [0], [0], [1], [0, 0, 1, 1], [], []>} : vector<8x32xf32>, vector<32x96xf32>, vector<8x96xf32> -> vector<8x96xf32>
    %c208 = arith.constant 208 : index
    %c0_69 = arith.constant 0 : index
    %193 = vector.load %arg3[%c208, %c0_69] : memref<640x128xf32, #tpu.memory_space<vmem>>, vector<1x96xf32>
    %194 = vector.broadcast %193 : vector<1x96xf32> to vector<8x96xf32>
    %195 = arith.addf %192, %194 : vector<8x96xf32>
    %196 = vector.extract_strided_slice %195 {offsets = [0, 0], sizes = [8, 8], strides = [1, 1]} : vector<8x96xf32> to vector<8x8xf32>
    %cst_70 = arith.constant 0.353553385 : f32
    %197 = vector.broadcast %cst_70 : f32 to vector<8x8xf32>
    %198 = arith.mulf %196, %197 : vector<8x8xf32>
    %199 = vector.extract_strided_slice %195 {offsets = [0, 32], sizes = [8, 8], strides = [1, 1]} : vector<8x96xf32> to vector<8x8xf32>
    %200 = vector.extract_strided_slice %195 {offsets = [0, 64], sizes = [8, 8], strides = [1, 1]} : vector<8x96xf32> to vector<8x8xf32>
    %cst_71 = arith.constant dense<0.000000e+00> : vector<8x8xf32>
    %201 = tpu.matmul %198, %199, %cst_71 {dimension_numbers = #tpu.dot_dimension_numbers<[1], [1], [0], [0], [0, 0, 1, 0], [], []>} : vector<8x8xf32>, vector<8x8xf32>, vector<8x8xf32> -> vector<8x8xf32>
    %202 = arith.addf %201, %114 : vector<8x8xf32>
    %cst_72 = arith.constant dense<0xFF800000> : vector<8xf32>
    %203 = vector.multi_reduction <maximumf>, %202, %cst_72 [1] : vector<8x8xf32> to vector<8xf32>
    %204 = vector.shape_cast %203 : vector<8xf32> to vector<8x1xf32>
    %cst_73 = arith.constant -1.000000e+30 : f32
    %205 = vector.broadcast %cst_73 : f32 to vector<8x1xf32>
    %206 = arith.maximumf %204, %205 : vector<8x1xf32>
    %207 = vector.broadcast %206 : vector<8x1xf32> to vector<8x8xf32>
    %208 = arith.subf %202, %207 : vector<8x8xf32>
    %209 = math.exp %208 : vector<8x8xf32>
    %cst_74 = arith.constant dense<0.000000e+00> : vector<8xf32>
    %210 = vector.multi_reduction <add>, %209, %cst_74 [1] : vector<8x8xf32> to vector<8xf32>
    %211 = vector.shape_cast %210 : vector<8xf32> to vector<8x1xf32>
    %cst_75 = arith.constant 1.000000e-30 : f32
    %212 = vector.broadcast %cst_75 : f32 to vector<8x1xf32>
    %213 = arith.addf %211, %212 : vector<8x1xf32>
    %214 = vector.broadcast %213 : vector<8x1xf32> to vector<8x8xf32>
    %215 = arith.divf %209, %214 : vector<8x8xf32>
    %cst_76 = arith.constant dense<0.000000e+00> : vector<8x8xf32>
    %216 = tpu.matmul %215, %200, %cst_76 {dimension_numbers = #tpu.dot_dimension_numbers<[1], [0], [0], [1], [0, 0, 1, 1], [], []>} : vector<8x8xf32>, vector<8x8xf32>, vector<8x8xf32> -> vector<8x8xf32>
    %217 = vector.extract_strided_slice %195 {offsets = [0, 8], sizes = [8, 8], strides = [1, 1]} : vector<8x96xf32> to vector<8x8xf32>
    %cst_77 = arith.constant 0.353553385 : f32
    %218 = vector.broadcast %cst_77 : f32 to vector<8x8xf32>
    %219 = arith.mulf %217, %218 : vector<8x8xf32>
    %220 = vector.extract_strided_slice %195 {offsets = [0, 40], sizes = [8, 8], strides = [1, 1]} : vector<8x96xf32> to vector<8x8xf32>
    %221 = vector.extract_strided_slice %195 {offsets = [0, 72], sizes = [8, 8], strides = [1, 1]} : vector<8x96xf32> to vector<8x8xf32>
    %cst_78 = arith.constant dense<0.000000e+00> : vector<8x8xf32>
    %222 = tpu.matmul %219, %220, %cst_78 {dimension_numbers = #tpu.dot_dimension_numbers<[1], [1], [0], [0], [0, 0, 1, 0], [], []>} : vector<8x8xf32>, vector<8x8xf32>, vector<8x8xf32> -> vector<8x8xf32>
    %223 = arith.addf %222, %124 : vector<8x8xf32>
    %cst_79 = arith.constant dense<0xFF800000> : vector<8xf32>
    %224 = vector.multi_reduction <maximumf>, %223, %cst_79 [1] : vector<8x8xf32> to vector<8xf32>
    %225 = vector.shape_cast %224 : vector<8xf32> to vector<8x1xf32>
    %cst_80 = arith.constant -1.000000e+30 : f32
    %226 = vector.broadcast %cst_80 : f32 to vector<8x1xf32>
    %227 = arith.maximumf %225, %226 : vector<8x1xf32>
    %228 = vector.broadcast %227 : vector<8x1xf32> to vector<8x8xf32>
    %229 = arith.subf %223, %228 : vector<8x8xf32>
    %230 = math.exp %229 : vector<8x8xf32>
    %cst_81 = arith.constant dense<0.000000e+00> : vector<8xf32>
    %231 = vector.multi_reduction <add>, %230, %cst_81 [1] : vector<8x8xf32> to vector<8xf32>
    %232 = vector.shape_cast %231 : vector<8xf32> to vector<8x1xf32>
    %cst_82 = arith.constant 1.000000e-30 : f32
    %233 = vector.broadcast %cst_82 : f32 to vector<8x1xf32>
    %234 = arith.addf %232, %233 : vector<8x1xf32>
    %235 = vector.broadcast %234 : vector<8x1xf32> to vector<8x8xf32>
    %236 = arith.divf %230, %235 : vector<8x8xf32>
    %cst_83 = arith.constant dense<0.000000e+00> : vector<8x8xf32>
    %237 = tpu.matmul %236, %221, %cst_83 {dimension_numbers = #tpu.dot_dimension_numbers<[1], [0], [0], [1], [0, 0, 1, 1], [], []>} : vector<8x8xf32>, vector<8x8xf32>, vector<8x8xf32> -> vector<8x8xf32>
    %238 = vector.extract_strided_slice %195 {offsets = [0, 16], sizes = [8, 8], strides = [1, 1]} : vector<8x96xf32> to vector<8x8xf32>
    %cst_84 = arith.constant 0.353553385 : f32
    %239 = vector.broadcast %cst_84 : f32 to vector<8x8xf32>
    %240 = arith.mulf %238, %239 : vector<8x8xf32>
    %241 = vector.extract_strided_slice %195 {offsets = [0, 48], sizes = [8, 8], strides = [1, 1]} : vector<8x96xf32> to vector<8x8xf32>
    %242 = vector.extract_strided_slice %195 {offsets = [0, 80], sizes = [8, 8], strides = [1, 1]} : vector<8x96xf32> to vector<8x8xf32>
    %cst_85 = arith.constant dense<0.000000e+00> : vector<8x8xf32>
    %243 = tpu.matmul %240, %241, %cst_85 {dimension_numbers = #tpu.dot_dimension_numbers<[1], [1], [0], [0], [0, 0, 1, 0], [], []>} : vector<8x8xf32>, vector<8x8xf32>, vector<8x8xf32> -> vector<8x8xf32>
    %244 = arith.addf %243, %134 : vector<8x8xf32>
    %cst_86 = arith.constant dense<0xFF800000> : vector<8xf32>
    %245 = vector.multi_reduction <maximumf>, %244, %cst_86 [1] : vector<8x8xf32> to vector<8xf32>
    %246 = vector.shape_cast %245 : vector<8xf32> to vector<8x1xf32>
    %cst_87 = arith.constant -1.000000e+30 : f32
    %247 = vector.broadcast %cst_87 : f32 to vector<8x1xf32>
    %248 = arith.maximumf %246, %247 : vector<8x1xf32>
    %249 = vector.broadcast %248 : vector<8x1xf32> to vector<8x8xf32>
    %250 = arith.subf %244, %249 : vector<8x8xf32>
    %251 = math.exp %250 : vector<8x8xf32>
    %cst_88 = arith.constant dense<0.000000e+00> : vector<8xf32>
    %252 = vector.multi_reduction <add>, %251, %cst_88 [1] : vector<8x8xf32> to vector<8xf32>
    %253 = vector.shape_cast %252 : vector<8xf32> to vector<8x1xf32>
    %cst_89 = arith.constant 1.000000e-30 : f32
    %254 = vector.broadcast %cst_89 : f32 to vector<8x1xf32>
    %255 = arith.addf %253, %254 : vector<8x1xf32>
    %256 = vector.broadcast %255 : vector<8x1xf32> to vector<8x8xf32>
    %257 = arith.divf %251, %256 : vector<8x8xf32>
    %cst_90 = arith.constant dense<0.000000e+00> : vector<8x8xf32>
    %258 = tpu.matmul %257, %242, %cst_90 {dimension_numbers = #tpu.dot_dimension_numbers<[1], [0], [0], [1], [0, 0, 1, 1], [], []>} : vector<8x8xf32>, vector<8x8xf32>, vector<8x8xf32> -> vector<8x8xf32>
    %259 = vector.extract_strided_slice %195 {offsets = [0, 24], sizes = [8, 8], strides = [1, 1]} : vector<8x96xf32> to vector<8x8xf32>
    %cst_91 = arith.constant 0.353553385 : f32
    %260 = vector.broadcast %cst_91 : f32 to vector<8x8xf32>
    %261 = arith.mulf %259, %260 : vector<8x8xf32>
    %262 = vector.extract_strided_slice %195 {offsets = [0, 56], sizes = [8, 8], strides = [1, 1]} : vector<8x96xf32> to vector<8x8xf32>
    %263 = vector.extract_strided_slice %195 {offsets = [0, 88], sizes = [8, 8], strides = [1, 1]} : vector<8x96xf32> to vector<8x8xf32>
    %cst_92 = arith.constant dense<0.000000e+00> : vector<8x8xf32>
    %264 = tpu.matmul %261, %262, %cst_92 {dimension_numbers = #tpu.dot_dimension_numbers<[1], [1], [0], [0], [0, 0, 1, 0], [], []>} : vector<8x8xf32>, vector<8x8xf32>, vector<8x8xf32> -> vector<8x8xf32>
    %265 = arith.addf %264, %144 : vector<8x8xf32>
    %cst_93 = arith.constant dense<0xFF800000> : vector<8xf32>
    %266 = vector.multi_reduction <maximumf>, %265, %cst_93 [1] : vector<8x8xf32> to vector<8xf32>
    %267 = vector.shape_cast %266 : vector<8xf32> to vector<8x1xf32>
    %cst_94 = arith.constant -1.000000e+30 : f32
    %268 = vector.broadcast %cst_94 : f32 to vector<8x1xf32>
    %269 = arith.maximumf %267, %268 : vector<8x1xf32>
    %270 = vector.broadcast %269 : vector<8x1xf32> to vector<8x8xf32>
    %271 = arith.subf %265, %270 : vector<8x8xf32>
    %272 = math.exp %271 : vector<8x8xf32>
    %cst_95 = arith.constant dense<0.000000e+00> : vector<8xf32>
    %273 = vector.multi_reduction <add>, %272, %cst_95 [1] : vector<8x8xf32> to vector<8xf32>
    %274 = vector.shape_cast %273 : vector<8xf32> to vector<8x1xf32>
    %cst_96 = arith.constant 1.000000e-30 : f32
    %275 = vector.broadcast %cst_96 : f32 to vector<8x1xf32>
    %276 = arith.addf %274, %275 : vector<8x1xf32>
    %277 = vector.broadcast %276 : vector<8x1xf32> to vector<8x8xf32>
    %278 = arith.divf %272, %277 : vector<8x8xf32>
    %cst_97 = arith.constant dense<0.000000e+00> : vector<8x8xf32>
    %279 = tpu.matmul %278, %263, %cst_97 {dimension_numbers = #tpu.dot_dimension_numbers<[1], [0], [0], [1], [0, 0, 1, 1], [], []>} : vector<8x8xf32>, vector<8x8xf32>, vector<8x8xf32> -> vector<8x8xf32>
    %280 = tpu.concatenate %216, %237, %258, %279 in 1 : vector<8x8xf32>, vector<8x8xf32>, vector<8x8xf32>, vector<8x8xf32> -> vector<8x32xf32>
    %c216 = arith.constant 216 : index
    %c0_98 = arith.constant 0 : index
    %281 = vector.load %arg3[%c216, %c0_98] : memref<640x128xf32, #tpu.memory_space<vmem>>, vector<32x32xf32>
    %cst_99 = arith.constant dense<0.000000e+00> : vector<8x32xf32>
    %282 = tpu.matmul %280, %281, %cst_99 {dimension_numbers = #tpu.dot_dimension_numbers<[1], [0], [0], [1], [0, 0, 1, 1], [], []>} : vector<8x32xf32>, vector<32x32xf32>, vector<8x32xf32> -> vector<8x32xf32>
    %c248 = arith.constant 248 : index
    %c0_100 = arith.constant 0 : index
    %283 = vector.load %arg3[%c248, %c0_100] : memref<640x128xf32, #tpu.memory_space<vmem>>, vector<1x32xf32>
    %284 = vector.broadcast %283 : vector<1x32xf32> to vector<8x32xf32>
    %285 = arith.addf %282, %284 : vector<8x32xf32>
    %286 = arith.addf %168, %285 : vector<8x32xf32>
    %c256 = arith.constant 256 : index
    %c0_101 = arith.constant 0 : index
    %287 = vector.load %arg3[%c256, %c0_101] : memref<640x128xf32, #tpu.memory_space<vmem>>, vector<1x32xf32>
    %c264 = arith.constant 264 : index
    %c0_102 = arith.constant 0 : index
    %288 = vector.load %arg3[%c264, %c0_102] : memref<640x128xf32, #tpu.memory_space<vmem>>, vector<1x32xf32>
    %cst_103 = arith.constant dense<0.000000e+00> : vector<8xf32>
    %289 = vector.multi_reduction <add>, %286, %cst_103 [1] : vector<8x32xf32> to vector<8xf32>
    %290 = vector.shape_cast %289 : vector<8xf32> to vector<8x1xf32>
    %cst_104 = arith.constant 3.200000e+01 : f32
    %291 = vector.broadcast %cst_104 : f32 to vector<8x1xf32>
    %292 = arith.divf %290, %291 : vector<8x1xf32>
    %293 = vector.broadcast %292 : vector<8x1xf32> to vector<8x32xf32>
    %294 = arith.subf %286, %293 : vector<8x32xf32>
    %295 = arith.mulf %294, %294 : vector<8x32xf32>
    %cst_105 = arith.constant dense<0.000000e+00> : vector<8xf32>
    %296 = vector.multi_reduction <add>, %295, %cst_105 [1] : vector<8x32xf32> to vector<8xf32>
    %297 = vector.shape_cast %296 : vector<8xf32> to vector<8x1xf32>
    %cst_106 = arith.constant 3.200000e+01 : f32
    %298 = vector.broadcast %cst_106 : f32 to vector<8x1xf32>
    %299 = arith.divf %297, %298 : vector<8x1xf32>
    %cst_107 = arith.constant 9.99999974E-6 : f32
    %300 = vector.broadcast %cst_107 : f32 to vector<8x1xf32>
    %301 = arith.addf %299, %300 : vector<8x1xf32>
    %302 = math.rsqrt %301 : vector<8x1xf32>
    %303 = vector.broadcast %302 : vector<8x1xf32> to vector<8x32xf32>
    %304 = arith.mulf %294, %303 : vector<8x32xf32>
    %305 = vector.broadcast %287 : vector<1x32xf32> to vector<8x32xf32>
    %306 = arith.mulf %304, %305 : vector<8x32xf32>
    %307 = vector.broadcast %288 : vector<1x32xf32> to vector<8x32xf32>
    %308 = arith.addf %306, %307 : vector<8x32xf32>
    %c272 = arith.constant 272 : index
    %c0_108 = arith.constant 0 : index
    %309 = vector.load %arg3[%c272, %c0_108] : memref<640x128xf32, #tpu.memory_space<vmem>>, vector<32x64xf32>
    %cst_109 = arith.constant dense<0.000000e+00> : vector<8x64xf32>
    %310 = tpu.matmul %308, %309, %cst_109 {dimension_numbers = #tpu.dot_dimension_numbers<[1], [0], [0], [1], [0, 0, 1, 1], [], []>} : vector<8x32xf32>, vector<32x64xf32>, vector<8x64xf32> -> vector<8x64xf32>
    %c304 = arith.constant 304 : index
    %c0_110 = arith.constant 0 : index
    %311 = vector.load %arg3[%c304, %c0_110] : memref<640x128xf32, #tpu.memory_space<vmem>>, vector<1x64xf32>
    %312 = vector.broadcast %311 : vector<1x64xf32> to vector<8x64xf32>
    %313 = arith.addf %310, %312 : vector<8x64xf32>
    %cst_111 = arith.constant 5.000000e-01 : f32
    %314 = vector.broadcast %cst_111 : f32 to vector<8x64xf32>
    %315 = arith.mulf %314, %313 : vector<8x64xf32>
    %cst_112 = arith.constant 4.471500e-02 : f32
    %316 = vector.broadcast %cst_112 : f32 to vector<8x64xf32>
    %317 = arith.mulf %316, %313 : vector<8x64xf32>
    %318 = arith.mulf %317, %313 : vector<8x64xf32>
    %319 = arith.mulf %318, %313 : vector<8x64xf32>
    %320 = arith.addf %313, %319 : vector<8x64xf32>
    %cst_113 = arith.constant 0.797884583 : f32
    %321 = vector.broadcast %cst_113 : f32 to vector<8x64xf32>
    %322 = arith.mulf %321, %320 : vector<8x64xf32>
    %323 = math.tanh %322 : vector<8x64xf32>
    %cst_114 = arith.constant 1.000000e+00 : f32
    %324 = vector.broadcast %cst_114 : f32 to vector<8x64xf32>
    %325 = arith.addf %324, %323 : vector<8x64xf32>
    %326 = arith.mulf %315, %325 : vector<8x64xf32>
    %c312 = arith.constant 312 : index
    %c0_115 = arith.constant 0 : index
    %327 = vector.load %arg3[%c312, %c0_115] : memref<640x128xf32, #tpu.memory_space<vmem>>, vector<64x32xf32>
    %cst_116 = arith.constant dense<0.000000e+00> : vector<8x32xf32>
    %328 = tpu.matmul %326, %327, %cst_116 {dimension_numbers = #tpu.dot_dimension_numbers<[1], [0], [0], [1], [0, 0, 1, 1], [], []>} : vector<8x64xf32>, vector<64x32xf32>, vector<8x32xf32> -> vector<8x32xf32>
    %c376 = arith.constant 376 : index
    %c0_117 = arith.constant 0 : index
    %329 = vector.load %arg3[%c376, %c0_117] : memref<640x128xf32, #tpu.memory_space<vmem>>, vector<1x32xf32>
    %330 = vector.broadcast %329 : vector<1x32xf32> to vector<8x32xf32>
    %331 = arith.addf %328, %330 : vector<8x32xf32>
    %332 = arith.addf %286, %331 : vector<8x32xf32>
    %c384 = arith.constant 384 : index
    %c0_118 = arith.constant 0 : index
    %333 = vector.load %arg3[%c384, %c0_118] : memref<640x128xf32, #tpu.memory_space<vmem>>, vector<1x32xf32>
    %c392 = arith.constant 392 : index
    %c0_119 = arith.constant 0 : index
    %334 = vector.load %arg3[%c392, %c0_119] : memref<640x128xf32, #tpu.memory_space<vmem>>, vector<1x32xf32>
    %cst_120 = arith.constant dense<0.000000e+00> : vector<8xf32>
    %335 = vector.multi_reduction <add>, %332, %cst_120 [1] : vector<8x32xf32> to vector<8xf32>
    %336 = vector.shape_cast %335 : vector<8xf32> to vector<8x1xf32>
    %cst_121 = arith.constant 3.200000e+01 : f32
    %337 = vector.broadcast %cst_121 : f32 to vector<8x1xf32>
    %338 = arith.divf %336, %337 : vector<8x1xf32>
    %339 = vector.broadcast %338 : vector<8x1xf32> to vector<8x32xf32>
    %340 = arith.subf %332, %339 : vector<8x32xf32>
    %341 = arith.mulf %340, %340 : vector<8x32xf32>
    %cst_122 = arith.constant dense<0.000000e+00> : vector<8xf32>
    %342 = vector.multi_reduction <add>, %341, %cst_122 [1] : vector<8x32xf32> to vector<8xf32>
    %343 = vector.shape_cast %342 : vector<8xf32> to vector<8x1xf32>
    %cst_123 = arith.constant 3.200000e+01 : f32
    %344 = vector.broadcast %cst_123 : f32 to vector<8x1xf32>
    %345 = arith.divf %343, %344 : vector<8x1xf32>
    %cst_124 = arith.constant 9.99999974E-6 : f32
    %346 = vector.broadcast %cst_124 : f32 to vector<8x1xf32>
    %347 = arith.addf %345, %346 : vector<8x1xf32>
    %348 = math.rsqrt %347 : vector<8x1xf32>
    %349 = vector.broadcast %348 : vector<8x1xf32> to vector<8x32xf32>
    %350 = arith.mulf %340, %349 : vector<8x32xf32>
    %351 = vector.broadcast %333 : vector<1x32xf32> to vector<8x32xf32>
    %352 = arith.mulf %350, %351 : vector<8x32xf32>
    %353 = vector.broadcast %334 : vector<1x32xf32> to vector<8x32xf32>
    %354 = arith.addf %352, %353 : vector<8x32xf32>
    %c400 = arith.constant 400 : index
    %c0_125 = arith.constant 0 : index
    %355 = vector.load %arg3[%c400, %c0_125] : memref<640x128xf32, #tpu.memory_space<vmem>>, vector<32x96xf32>
    %cst_126 = arith.constant dense<0.000000e+00> : vector<8x96xf32>
    %356 = tpu.matmul %354, %355, %cst_126 {dimension_numbers = #tpu.dot_dimension_numbers<[1], [0], [0], [1], [0, 0, 1, 1], [], []>} : vector<8x32xf32>, vector<32x96xf32>, vector<8x96xf32> -> vector<8x96xf32>
    %c432 = arith.constant 432 : index
    %c0_127 = arith.constant 0 : index
    %357 = vector.load %arg3[%c432, %c0_127] : memref<640x128xf32, #tpu.memory_space<vmem>>, vector<1x96xf32>
    %358 = vector.broadcast %357 : vector<1x96xf32> to vector<8x96xf32>
    %359 = arith.addf %356, %358 : vector<8x96xf32>
    %360 = vector.extract_strided_slice %359 {offsets = [0, 0], sizes = [8, 8], strides = [1, 1]} : vector<8x96xf32> to vector<8x8xf32>
    %cst_128 = arith.constant 0.353553385 : f32
    %361 = vector.broadcast %cst_128 : f32 to vector<8x8xf32>
    %362 = arith.mulf %360, %361 : vector<8x8xf32>
    %363 = vector.extract_strided_slice %359 {offsets = [0, 32], sizes = [8, 8], strides = [1, 1]} : vector<8x96xf32> to vector<8x8xf32>
    %364 = vector.extract_strided_slice %359 {offsets = [0, 64], sizes = [8, 8], strides = [1, 1]} : vector<8x96xf32> to vector<8x8xf32>
    %cst_129 = arith.constant dense<0.000000e+00> : vector<8x8xf32>
    %365 = tpu.matmul %362, %363, %cst_129 {dimension_numbers = #tpu.dot_dimension_numbers<[1], [1], [0], [0], [0, 0, 1, 0], [], []>} : vector<8x8xf32>, vector<8x8xf32>, vector<8x8xf32> -> vector<8x8xf32>
    %366 = arith.addf %365, %202 : vector<8x8xf32>
    %cst_130 = arith.constant dense<0xFF800000> : vector<8xf32>
    %367 = vector.multi_reduction <maximumf>, %366, %cst_130 [1] : vector<8x8xf32> to vector<8xf32>
    %368 = vector.shape_cast %367 : vector<8xf32> to vector<8x1xf32>
    %cst_131 = arith.constant -1.000000e+30 : f32
    %369 = vector.broadcast %cst_131 : f32 to vector<8x1xf32>
    %370 = arith.maximumf %368, %369 : vector<8x1xf32>
    %371 = vector.broadcast %370 : vector<8x1xf32> to vector<8x8xf32>
    %372 = arith.subf %366, %371 : vector<8x8xf32>
    %373 = math.exp %372 : vector<8x8xf32>
    %cst_132 = arith.constant dense<0.000000e+00> : vector<8xf32>
    %374 = vector.multi_reduction <add>, %373, %cst_132 [1] : vector<8x8xf32> to vector<8xf32>
    %375 = vector.shape_cast %374 : vector<8xf32> to vector<8x1xf32>
    %cst_133 = arith.constant 1.000000e-30 : f32
    %376 = vector.broadcast %cst_133 : f32 to vector<8x1xf32>
    %377 = arith.addf %375, %376 : vector<8x1xf32>
    %378 = vector.broadcast %377 : vector<8x1xf32> to vector<8x8xf32>
    %379 = arith.divf %373, %378 : vector<8x8xf32>
    %cst_134 = arith.constant dense<0.000000e+00> : vector<8x8xf32>
    %380 = tpu.matmul %379, %364, %cst_134 {dimension_numbers = #tpu.dot_dimension_numbers<[1], [0], [0], [1], [0, 0, 1, 1], [], []>} : vector<8x8xf32>, vector<8x8xf32>, vector<8x8xf32> -> vector<8x8xf32>
    %381 = vector.extract_strided_slice %359 {offsets = [0, 8], sizes = [8, 8], strides = [1, 1]} : vector<8x96xf32> to vector<8x8xf32>
    %cst_135 = arith.constant 0.353553385 : f32
    %382 = vector.broadcast %cst_135 : f32 to vector<8x8xf32>
    %383 = arith.mulf %381, %382 : vector<8x8xf32>
    %384 = vector.extract_strided_slice %359 {offsets = [0, 40], sizes = [8, 8], strides = [1, 1]} : vector<8x96xf32> to vector<8x8xf32>
    %385 = vector.extract_strided_slice %359 {offsets = [0, 72], sizes = [8, 8], strides = [1, 1]} : vector<8x96xf32> to vector<8x8xf32>
    %cst_136 = arith.constant dense<0.000000e+00> : vector<8x8xf32>
    %386 = tpu.matmul %383, %384, %cst_136 {dimension_numbers = #tpu.dot_dimension_numbers<[1], [1], [0], [0], [0, 0, 1, 0], [], []>} : vector<8x8xf32>, vector<8x8xf32>, vector<8x8xf32> -> vector<8x8xf32>
    %387 = arith.addf %386, %223 : vector<8x8xf32>
    %cst_137 = arith.constant dense<0xFF800000> : vector<8xf32>
    %388 = vector.multi_reduction <maximumf>, %387, %cst_137 [1] : vector<8x8xf32> to vector<8xf32>
    %389 = vector.shape_cast %388 : vector<8xf32> to vector<8x1xf32>
    %cst_138 = arith.constant -1.000000e+30 : f32
    %390 = vector.broadcast %cst_138 : f32 to vector<8x1xf32>
    %391 = arith.maximumf %389, %390 : vector<8x1xf32>
    %392 = vector.broadcast %391 : vector<8x1xf32> to vector<8x8xf32>
    %393 = arith.subf %387, %392 : vector<8x8xf32>
    %394 = math.exp %393 : vector<8x8xf32>
    %cst_139 = arith.constant dense<0.000000e+00> : vector<8xf32>
    %395 = vector.multi_reduction <add>, %394, %cst_139 [1] : vector<8x8xf32> to vector<8xf32>
    %396 = vector.shape_cast %395 : vector<8xf32> to vector<8x1xf32>
    %cst_140 = arith.constant 1.000000e-30 : f32
    %397 = vector.broadcast %cst_140 : f32 to vector<8x1xf32>
    %398 = arith.addf %396, %397 : vector<8x1xf32>
    %399 = vector.broadcast %398 : vector<8x1xf32> to vector<8x8xf32>
    %400 = arith.divf %394, %399 : vector<8x8xf32>
    %cst_141 = arith.constant dense<0.000000e+00> : vector<8x8xf32>
    %401 = tpu.matmul %400, %385, %cst_141 {dimension_numbers = #tpu.dot_dimension_numbers<[1], [0], [0], [1], [0, 0, 1, 1], [], []>} : vector<8x8xf32>, vector<8x8xf32>, vector<8x8xf32> -> vector<8x8xf32>
    %402 = vector.extract_strided_slice %359 {offsets = [0, 16], sizes = [8, 8], strides = [1, 1]} : vector<8x96xf32> to vector<8x8xf32>
    %cst_142 = arith.constant 0.353553385 : f32
    %403 = vector.broadcast %cst_142 : f32 to vector<8x8xf32>
    %404 = arith.mulf %402, %403 : vector<8x8xf32>
    %405 = vector.extract_strided_slice %359 {offsets = [0, 48], sizes = [8, 8], strides = [1, 1]} : vector<8x96xf32> to vector<8x8xf32>
    %406 = vector.extract_strided_slice %359 {offsets = [0, 80], sizes = [8, 8], strides = [1, 1]} : vector<8x96xf32> to vector<8x8xf32>
    %cst_143 = arith.constant dense<0.000000e+00> : vector<8x8xf32>
    %407 = tpu.matmul %404, %405, %cst_143 {dimension_numbers = #tpu.dot_dimension_numbers<[1], [1], [0], [0], [0, 0, 1, 0], [], []>} : vector<8x8xf32>, vector<8x8xf32>, vector<8x8xf32> -> vector<8x8xf32>
    %408 = arith.addf %407, %244 : vector<8x8xf32>
    %cst_144 = arith.constant dense<0xFF800000> : vector<8xf32>
    %409 = vector.multi_reduction <maximumf>, %408, %cst_144 [1] : vector<8x8xf32> to vector<8xf32>
    %410 = vector.shape_cast %409 : vector<8xf32> to vector<8x1xf32>
    %cst_145 = arith.constant -1.000000e+30 : f32
    %411 = vector.broadcast %cst_145 : f32 to vector<8x1xf32>
    %412 = arith.maximumf %410, %411 : vector<8x1xf32>
    %413 = vector.broadcast %412 : vector<8x1xf32> to vector<8x8xf32>
    %414 = arith.subf %408, %413 : vector<8x8xf32>
    %415 = math.exp %414 : vector<8x8xf32>
    %cst_146 = arith.constant dense<0.000000e+00> : vector<8xf32>
    %416 = vector.multi_reduction <add>, %415, %cst_146 [1] : vector<8x8xf32> to vector<8xf32>
    %417 = vector.shape_cast %416 : vector<8xf32> to vector<8x1xf32>
    %cst_147 = arith.constant 1.000000e-30 : f32
    %418 = vector.broadcast %cst_147 : f32 to vector<8x1xf32>
    %419 = arith.addf %417, %418 : vector<8x1xf32>
    %420 = vector.broadcast %419 : vector<8x1xf32> to vector<8x8xf32>
    %421 = arith.divf %415, %420 : vector<8x8xf32>
    %cst_148 = arith.constant dense<0.000000e+00> : vector<8x8xf32>
    %422 = tpu.matmul %421, %406, %cst_148 {dimension_numbers = #tpu.dot_dimension_numbers<[1], [0], [0], [1], [0, 0, 1, 1], [], []>} : vector<8x8xf32>, vector<8x8xf32>, vector<8x8xf32> -> vector<8x8xf32>
    %423 = vector.extract_strided_slice %359 {offsets = [0, 24], sizes = [8, 8], strides = [1, 1]} : vector<8x96xf32> to vector<8x8xf32>
    %cst_149 = arith.constant 0.353553385 : f32
    %424 = vector.broadcast %cst_149 : f32 to vector<8x8xf32>
    %425 = arith.mulf %423, %424 : vector<8x8xf32>
    %426 = vector.extract_strided_slice %359 {offsets = [0, 56], sizes = [8, 8], strides = [1, 1]} : vector<8x96xf32> to vector<8x8xf32>
    %427 = vector.extract_strided_slice %359 {offsets = [0, 88], sizes = [8, 8], strides = [1, 1]} : vector<8x96xf32> to vector<8x8xf32>
    %cst_150 = arith.constant dense<0.000000e+00> : vector<8x8xf32>
    %428 = tpu.matmul %425, %426, %cst_150 {dimension_numbers = #tpu.dot_dimension_numbers<[1], [1], [0], [0], [0, 0, 1, 0], [], []>} : vector<8x8xf32>, vector<8x8xf32>, vector<8x8xf32> -> vector<8x8xf32>
    %429 = arith.addf %428, %265 : vector<8x8xf32>
    %cst_151 = arith.constant dense<0xFF800000> : vector<8xf32>
    %430 = vector.multi_reduction <maximumf>, %429, %cst_151 [1] : vector<8x8xf32> to vector<8xf32>
    %431 = vector.shape_cast %430 : vector<8xf32> to vector<8x1xf32>
    %cst_152 = arith.constant -1.000000e+30 : f32
    %432 = vector.broadcast %cst_152 : f32 to vector<8x1xf32>
    %433 = arith.maximumf %431, %432 : vector<8x1xf32>
    %434 = vector.broadcast %433 : vector<8x1xf32> to vector<8x8xf32>
    %435 = arith.subf %429, %434 : vector<8x8xf32>
    %436 = math.exp %435 : vector<8x8xf32>
    %cst_153 = arith.constant dense<0.000000e+00> : vector<8xf32>
    %437 = vector.multi_reduction <add>, %436, %cst_153 [1] : vector<8x8xf32> to vector<8xf32>
    %438 = vector.shape_cast %437 : vector<8xf32> to vector<8x1xf32>
    %cst_154 = arith.constant 1.000000e-30 : f32
    %439 = vector.broadcast %cst_154 : f32 to vector<8x1xf32>
    %440 = arith.addf %438, %439 : vector<8x1xf32>
    %441 = vector.broadcast %440 : vector<8x1xf32> to vector<8x8xf32>
    %442 = arith.divf %436, %441 : vector<8x8xf32>
    %cst_155 = arith.constant dense<0.000000e+00> : vector<8x8xf32>
    %443 = tpu.matmul %442, %427, %cst_155 {dimension_numbers = #tpu.dot_dimension_numbers<[1], [0], [0], [1], [0, 0, 1, 1], [], []>} : vector<8x8xf32>, vector<8x8xf32>, vector<8x8xf32> -> vector<8x8xf32>
    %444 = tpu.concatenate %380, %401, %422, %443 in 1 : vector<8x8xf32>, vector<8x8xf32>, vector<8x8xf32>, vector<8x8xf32> -> vector<8x32xf32>
    %c440 = arith.constant 440 : index
    %c0_156 = arith.constant 0 : index
    %445 = vector.load %arg3[%c440, %c0_156] : memref<640x128xf32, #tpu.memory_space<vmem>>, vector<32x32xf32>
    %cst_157 = arith.constant dense<0.000000e+00> : vector<8x32xf32>
    %446 = tpu.matmul %444, %445, %cst_157 {dimension_numbers = #tpu.dot_dimension_numbers<[1], [0], [0], [1], [0, 0, 1, 1], [], []>} : vector<8x32xf32>, vector<32x32xf32>, vector<8x32xf32> -> vector<8x32xf32>
    %c472 = arith.constant 472 : index
    %c0_158 = arith.constant 0 : index
    %447 = vector.load %arg3[%c472, %c0_158] : memref<640x128xf32, #tpu.memory_space<vmem>>, vector<1x32xf32>
    %448 = vector.broadcast %447 : vector<1x32xf32> to vector<8x32xf32>
    %449 = arith.addf %446, %448 : vector<8x32xf32>
    %450 = arith.addf %332, %449 : vector<8x32xf32>
    %c480 = arith.constant 480 : index
    %c0_159 = arith.constant 0 : index
    %451 = vector.load %arg3[%c480, %c0_159] : memref<640x128xf32, #tpu.memory_space<vmem>>, vector<1x32xf32>
    %c488 = arith.constant 488 : index
    %c0_160 = arith.constant 0 : index
    %452 = vector.load %arg3[%c488, %c0_160] : memref<640x128xf32, #tpu.memory_space<vmem>>, vector<1x32xf32>
    %cst_161 = arith.constant dense<0.000000e+00> : vector<8xf32>
    %453 = vector.multi_reduction <add>, %450, %cst_161 [1] : vector<8x32xf32> to vector<8xf32>
    %454 = vector.shape_cast %453 : vector<8xf32> to vector<8x1xf32>
    %cst_162 = arith.constant 3.200000e+01 : f32
    %455 = vector.broadcast %cst_162 : f32 to vector<8x1xf32>
    %456 = arith.divf %454, %455 : vector<8x1xf32>
    %457 = vector.broadcast %456 : vector<8x1xf32> to vector<8x32xf32>
    %458 = arith.subf %450, %457 : vector<8x32xf32>
    %459 = arith.mulf %458, %458 : vector<8x32xf32>
    %cst_163 = arith.constant dense<0.000000e+00> : vector<8xf32>
    %460 = vector.multi_reduction <add>, %459, %cst_163 [1] : vector<8x32xf32> to vector<8xf32>
    %461 = vector.shape_cast %460 : vector<8xf32> to vector<8x1xf32>
    %cst_164 = arith.constant 3.200000e+01 : f32
    %462 = vector.broadcast %cst_164 : f32 to vector<8x1xf32>
    %463 = arith.divf %461, %462 : vector<8x1xf32>
    %cst_165 = arith.constant 9.99999974E-6 : f32
    %464 = vector.broadcast %cst_165 : f32 to vector<8x1xf32>
    %465 = arith.addf %463, %464 : vector<8x1xf32>
    %466 = math.rsqrt %465 : vector<8x1xf32>
    %467 = vector.broadcast %466 : vector<8x1xf32> to vector<8x32xf32>
    %468 = arith.mulf %458, %467 : vector<8x32xf32>
    %469 = vector.broadcast %451 : vector<1x32xf32> to vector<8x32xf32>
    %470 = arith.mulf %468, %469 : vector<8x32xf32>
    %471 = vector.broadcast %452 : vector<1x32xf32> to vector<8x32xf32>
    %472 = arith.addf %470, %471 : vector<8x32xf32>
    %c496 = arith.constant 496 : index
    %c0_166 = arith.constant 0 : index
    %473 = vector.load %arg3[%c496, %c0_166] : memref<640x128xf32, #tpu.memory_space<vmem>>, vector<32x64xf32>
    %cst_167 = arith.constant dense<0.000000e+00> : vector<8x64xf32>
    %474 = tpu.matmul %472, %473, %cst_167 {dimension_numbers = #tpu.dot_dimension_numbers<[1], [0], [0], [1], [0, 0, 1, 1], [], []>} : vector<8x32xf32>, vector<32x64xf32>, vector<8x64xf32> -> vector<8x64xf32>
    %c528 = arith.constant 528 : index
    %c0_168 = arith.constant 0 : index
    %475 = vector.load %arg3[%c528, %c0_168] : memref<640x128xf32, #tpu.memory_space<vmem>>, vector<1x64xf32>
    %476 = vector.broadcast %475 : vector<1x64xf32> to vector<8x64xf32>
    %477 = arith.addf %474, %476 : vector<8x64xf32>
    %cst_169 = arith.constant 5.000000e-01 : f32
    %478 = vector.broadcast %cst_169 : f32 to vector<8x64xf32>
    %479 = arith.mulf %478, %477 : vector<8x64xf32>
    %cst_170 = arith.constant 4.471500e-02 : f32
    %480 = vector.broadcast %cst_170 : f32 to vector<8x64xf32>
    %481 = arith.mulf %480, %477 : vector<8x64xf32>
    %482 = arith.mulf %481, %477 : vector<8x64xf32>
    %483 = arith.mulf %482, %477 : vector<8x64xf32>
    %484 = arith.addf %477, %483 : vector<8x64xf32>
    %cst_171 = arith.constant 0.797884583 : f32
    %485 = vector.broadcast %cst_171 : f32 to vector<8x64xf32>
    %486 = arith.mulf %485, %484 : vector<8x64xf32>
    %487 = math.tanh %486 : vector<8x64xf32>
    %cst_172 = arith.constant 1.000000e+00 : f32
    %488 = vector.broadcast %cst_172 : f32 to vector<8x64xf32>
    %489 = arith.addf %488, %487 : vector<8x64xf32>
    %490 = arith.mulf %479, %489 : vector<8x64xf32>
    %c536 = arith.constant 536 : index
    %c0_173 = arith.constant 0 : index
    %491 = vector.load %arg3[%c536, %c0_173] : memref<640x128xf32, #tpu.memory_space<vmem>>, vector<64x32xf32>
    %cst_174 = arith.constant dense<0.000000e+00> : vector<8x32xf32>
    %492 = tpu.matmul %490, %491, %cst_174 {dimension_numbers = #tpu.dot_dimension_numbers<[1], [0], [0], [1], [0, 0, 1, 1], [], []>} : vector<8x64xf32>, vector<64x32xf32>, vector<8x32xf32> -> vector<8x32xf32>
    %c600 = arith.constant 600 : index
    %c0_175 = arith.constant 0 : index
    %493 = vector.load %arg3[%c600, %c0_175] : memref<640x128xf32, #tpu.memory_space<vmem>>, vector<1x32xf32>
    %494 = vector.broadcast %493 : vector<1x32xf32> to vector<8x32xf32>
    %495 = arith.addf %492, %494 : vector<8x32xf32>
    %496 = arith.addf %450, %495 : vector<8x32xf32>
    %497 = arith.mulf %496, %496 : vector<8x32xf32>
    %cst_176 = arith.constant dense<0.000000e+00> : vector<8xf32>
    %498 = vector.multi_reduction <add>, %497, %cst_176 [1] : vector<8x32xf32> to vector<8xf32>
    %499 = vector.shape_cast %498 : vector<8xf32> to vector<8x1xf32>
    %cst_177 = arith.constant 1.000000e-10 : f32
    %500 = vector.broadcast %cst_177 : f32 to vector<8x1xf32>
    %501 = arith.addf %499, %500 : vector<8x1xf32>
    %502 = math.sqrt %501 : vector<8x1xf32>
    %cst_178 = arith.constant 5.65685415 : f32
    %503 = vector.broadcast %cst_178 : f32 to vector<8x1xf32>
    %504 = arith.subf %502, %503 : vector<8x1xf32>
    %505 = math.absf %504 : vector<8x1xf32>
    %cst_179 = arith.constant 1.000000e+00 : f32
    %506 = vector.broadcast %cst_179 : f32 to vector<8x1xf32>
    %507 = arith.subf %505, %506 : vector<8x1xf32>
    %cst_180 = arith.constant 0.000000e+00 : f32
    %508 = vector.broadcast %cst_180 : f32 to vector<8x1xf32>
    %509 = arith.maximumf %507, %508 : vector<8x1xf32>
    %510 = arith.mulf %8, %509 : vector<8x1xf32>
    %cst_181 = arith.constant dense<0.000000e+00> : vector<1xf32>
    %511 = vector.multi_reduction <add>, %510, %cst_181 [0] : vector<8x1xf32> to vector<1xf32>
    %512 = vector.shape_cast %511 : vector<1xf32> to vector<1x1xf32>
    %cst_182 = arith.constant dense<0.000000e+00> : vector<1xf32>
    %513 = vector.multi_reduction <add>, %8, %cst_182 [0] : vector<8x1xf32> to vector<1xf32>
    %514 = vector.shape_cast %513 : vector<1xf32> to vector<1x1xf32>
    %cst_183 = arith.constant 1.000000e-10 : f32
    %515 = vector.broadcast %cst_183 : f32 to vector<1x1xf32>
    %516 = arith.addf %515, %514 : vector<1x1xf32>
    %517 = arith.divf %512, %516 : vector<1x1xf32>
    %c608 = arith.constant 608 : index
    %c0_184 = arith.constant 0 : index
    %518 = vector.load %arg3[%c608, %c0_184] : memref<640x128xf32, #tpu.memory_space<vmem>>, vector<1x32xf32>
    %c616 = arith.constant 616 : index
    %c0_185 = arith.constant 0 : index
    %519 = vector.load %arg3[%c616, %c0_185] : memref<640x128xf32, #tpu.memory_space<vmem>>, vector<1x32xf32>
    %cst_186 = arith.constant dense<0.000000e+00> : vector<8xf32>
    %520 = vector.multi_reduction <add>, %496, %cst_186 [1] : vector<8x32xf32> to vector<8xf32>
    %521 = vector.shape_cast %520 : vector<8xf32> to vector<8x1xf32>
    %cst_187 = arith.constant 3.200000e+01 : f32
    %522 = vector.broadcast %cst_187 : f32 to vector<8x1xf32>
    %523 = arith.divf %521, %522 : vector<8x1xf32>
    %524 = vector.broadcast %523 : vector<8x1xf32> to vector<8x32xf32>
    %525 = arith.subf %496, %524 : vector<8x32xf32>
    %526 = arith.mulf %525, %525 : vector<8x32xf32>
    %cst_188 = arith.constant dense<0.000000e+00> : vector<8xf32>
    %527 = vector.multi_reduction <add>, %526, %cst_188 [1] : vector<8x32xf32> to vector<8xf32>
    %528 = vector.shape_cast %527 : vector<8xf32> to vector<8x1xf32>
    %cst_189 = arith.constant 3.200000e+01 : f32
    %529 = vector.broadcast %cst_189 : f32 to vector<8x1xf32>
    %530 = arith.divf %528, %529 : vector<8x1xf32>
    %cst_190 = arith.constant 9.99999974E-6 : f32
    %531 = vector.broadcast %cst_190 : f32 to vector<8x1xf32>
    %532 = arith.addf %530, %531 : vector<8x1xf32>
    %533 = math.rsqrt %532 : vector<8x1xf32>
    %534 = vector.broadcast %533 : vector<8x1xf32> to vector<8x32xf32>
    %535 = arith.mulf %525, %534 : vector<8x32xf32>
    %536 = vector.broadcast %518 : vector<1x32xf32> to vector<8x32xf32>
    %537 = arith.mulf %535, %536 : vector<8x32xf32>
    %538 = vector.broadcast %519 : vector<1x32xf32> to vector<8x32xf32>
    %539 = arith.addf %537, %538 : vector<8x32xf32>
    %c0_191 = arith.constant 0 : index
    %c0_192 = arith.constant 0 : index
    %c0_193 = arith.constant 0 : index
    %540 = vector.load %arg5[%c0_191, %c0_192, %c0_193] : memref<1x8x32xf32, #tpu.memory_space<vmem>>, vector<1x8x32xf32>
    %541 = vector.shape_cast %540 : vector<1x8x32xf32> to vector<8x32xf32>
    %542 = vector.shape_cast %539 : vector<8x32xf32> to vector<1x8x32xf32>
    tpu.vector_store %arg5[%c0_191, %c0_192, %c0_193], %542 {strides = array<i32>} : memref<1x8x32xf32, #tpu.memory_space<vmem>>, vector<1x8x32xf32>,
    %cst_194 = arith.constant 0.000000e+00 : f32
    %543 = vector.shape_cast %12 : vector<1x8xi1> to vector<1x8xi1>
    %544 = vector.broadcast %543 : vector<1x8xi1> to vector<8x8xi1>
    %545 = vector.broadcast %cst_194 : f32 to vector<8x8xf32>
    %546 = arith.select %544, %545, %366 : vector<8x8xi1>, vector<8x8xf32>
    %cst_195 = arith.constant 0.000000e+00 : f32
    %547 = vector.shape_cast %12 : vector<1x8xi1> to vector<1x8xi1>
    %548 = vector.broadcast %547 : vector<1x8xi1> to vector<8x8xi1>
    %549 = vector.broadcast %cst_195 : f32 to vector<8x8xf32>
    %550 = arith.select %548, %549, %114 : vector<8x8xi1>, vector<8x8xf32>
    %551 = arith.subf %546, %550 : vector<8x8xf32>
    %cst_196 = arith.constant 0.000000e+00 : f32
    %552 = vector.shape_cast %12 : vector<1x8xi1> to vector<1x8xi1>
    %553 = vector.broadcast %552 : vector<1x8xi1> to vector<8x8xi1>
    %554 = vector.broadcast %cst_196 : f32 to vector<8x8xf32>
    %555 = arith.select %553, %554, %387 : vector<8x8xi1>, vector<8x8xf32>
    %cst_197 = arith.constant 0.000000e+00 : f32
    %556 = vector.shape_cast %12 : vector<1x8xi1> to vector<1x8xi1>
    %557 = vector.broadcast %556 : vector<1x8xi1> to vector<8x8xi1>
    %558 = vector.broadcast %cst_197 : f32 to vector<8x8xf32>
    %559 = arith.select %557, %558, %124 : vector<8x8xi1>, vector<8x8xf32>
    %560 = arith.subf %555, %559 : vector<8x8xf32>
    %cst_198 = arith.constant 0.000000e+00 : f32
    %561 = vector.shape_cast %12 : vector<1x8xi1> to vector<1x8xi1>
    %562 = vector.broadcast %561 : vector<1x8xi1> to vector<8x8xi1>
    %563 = vector.broadcast %cst_198 : f32 to vector<8x8xf32>
    %564 = arith.select %562, %563, %408 : vector<8x8xi1>, vector<8x8xf32>
    %cst_199 = arith.constant 0.000000e+00 : f32
    %565 = vector.shape_cast %12 : vector<1x8xi1> to vector<1x8xi1>
    %566 = vector.broadcast %565 : vector<1x8xi1> to vector<8x8xi1>
    %567 = vector.broadcast %cst_199 : f32 to vector<8x8xf32>
    %568 = arith.select %566, %567, %134 : vector<8x8xi1>, vector<8x8xf32>
    %569 = arith.subf %564, %568 : vector<8x8xf32>
    %cst_200 = arith.constant 0.000000e+00 : f32
    %570 = vector.shape_cast %12 : vector<1x8xi1> to vector<1x8xi1>
    %571 = vector.broadcast %570 : vector<1x8xi1> to vector<8x8xi1>
    %572 = vector.broadcast %cst_200 : f32 to vector<8x8xf32>
    %573 = arith.select %571, %572, %429 : vector<8x8xi1>, vector<8x8xf32>
    %cst_201 = arith.constant 0.000000e+00 : f32
    %574 = vector.shape_cast %12 : vector<1x8xi1> to vector<1x8xi1>
    %575 = vector.broadcast %574 : vector<1x8xi1> to vector<8x8xi1>
    %576 = vector.broadcast %cst_201 : f32 to vector<8x8xf32>
    %577 = arith.select %575, %576, %144 : vector<8x8xi1>, vector<8x8xf32>
    %578 = arith.subf %573, %577 : vector<8x8xf32>
    %579 = vector.broadcast %8 : vector<8x1xf32> to vector<8x8xf32>
    %580 = vector.broadcast %10 : vector<1x8xf32> to vector<8x8xf32>
    %581 = arith.mulf %579, %580 : vector<8x8xf32>
    %582 = arith.mulf %551, %551 : vector<8x8xf32>
    %583 = arith.mulf %560, %560 : vector<8x8xf32>
    %584 = arith.addf %582, %583 : vector<8x8xf32>
    %585 = arith.mulf %569, %569 : vector<8x8xf32>
    %586 = arith.addf %584, %585 : vector<8x8xf32>
    %587 = arith.mulf %578, %578 : vector<8x8xf32>
    %588 = arith.addf %586, %587 : vector<8x8xf32>
    %cst_202 = arith.constant 1.000000e-10 : f32
    %589 = vector.broadcast %cst_202 : f32 to vector<8x8xf32>
    %590 = arith.addf %588, %589 : vector<8x8xf32>
    %591 = math.sqrt %590 : vector<8x8xf32>
    %cst_203 = arith.constant 2.000000e+00 : f32
    %592 = vector.broadcast %cst_203 : f32 to vector<8x8xf32>
    %593 = arith.subf %591, %592 : vector<8x8xf32>
    %594 = math.absf %593 : vector<8x8xf32>
    %cst_204 = arith.constant 1.000000e+00 : f32
    %595 = vector.broadcast %cst_204 : f32 to vector<8x8xf32>
    %596 = arith.subf %594, %595 : vector<8x8xf32>
    %cst_205 = arith.constant 0.000000e+00 : f32
    %597 = vector.broadcast %cst_205 : f32 to vector<8x8xf32>
    %598 = arith.maximumf %596, %597 : vector<8x8xf32>
    %599 = arith.mulf %581, %598 : vector<8x8xf32>
    %cst_206 = arith.constant dense<0.000000e+00> : vector<8xf32>
    %600 = vector.multi_reduction <add>, %599, %cst_206 [1] : vector<8x8xf32> to vector<8xf32>
    %601 = vector.shape_cast %600 : vector<8xf32> to vector<8x1xf32>
    %cst_207 = arith.constant dense<0.000000e+00> : vector<1xf32>
    %602 = vector.multi_reduction <add>, %601, %cst_207 [0] : vector<8x1xf32> to vector<1xf32>
    %603 = vector.shape_cast %602 : vector<1xf32> to vector<1x1xf32>
    %cst_208 = arith.constant dense<0.000000e+00> : vector<8xf32>
    %604 = vector.multi_reduction <add>, %581, %cst_208 [1] : vector<8x8xf32> to vector<8xf32>
    %605 = vector.shape_cast %604 : vector<8xf32> to vector<8x1xf32>
    %cst_209 = arith.constant dense<0.000000e+00> : vector<1xf32>
    %606 = vector.multi_reduction <add>, %605, %cst_209 [0] : vector<8x1xf32> to vector<1xf32>
    %607 = vector.shape_cast %606 : vector<1xf32> to vector<1x1xf32>
    %cst_210 = arith.constant 1.000000e-10 : f32
    %608 = vector.broadcast %cst_210 : f32 to vector<1x1xf32>
    %609 = arith.addf %608, %607 : vector<1x1xf32>
    %610 = arith.divf %603, %609 : vector<1x1xf32>
    %611 = arith.addf %551, %560 : vector<8x8xf32>
    %612 = arith.addf %611, %569 : vector<8x8xf32>
    %613 = arith.addf %612, %578 : vector<8x8xf32>
    %cst_211 = arith.constant 2.500000e-01 : f32
    %614 = vector.broadcast %cst_211 : f32 to vector<8x8xf32>
    %615 = arith.mulf %613, %614 : vector<8x8xf32>
    %616 = arith.subf %551, %615 : vector<8x8xf32>
    %617 = arith.subf %551, %615 : vector<8x8xf32>
    %618 = arith.mulf %616, %617 : vector<8x8xf32>
    %619 = arith.subf %560, %615 : vector<8x8xf32>
    %620 = arith.subf %560, %615 : vector<8x8xf32>
    %621 = arith.mulf %619, %620 : vector<8x8xf32>
    %622 = arith.addf %618, %621 : vector<8x8xf32>
    %623 = arith.subf %569, %615 : vector<8x8xf32>
    %624 = arith.subf %569, %615 : vector<8x8xf32>
    %625 = arith.mulf %623, %624 : vector<8x8xf32>
    %626 = arith.addf %622, %625 : vector<8x8xf32>
    %627 = arith.subf %578, %615 : vector<8x8xf32>
    %628 = arith.subf %578, %615 : vector<8x8xf32>
    %629 = arith.mulf %627, %628 : vector<8x8xf32>
    %630 = arith.addf %626, %629 : vector<8x8xf32>
    %cst_212 = arith.constant 2.500000e-01 : f32
    %631 = vector.broadcast %cst_212 : f32 to vector<8x8xf32>
    %632 = arith.mulf %630, %631 : vector<8x8xf32>
    %cst_213 = arith.constant 9.99999974E-6 : f32
    %633 = vector.broadcast %cst_213 : f32 to vector<8x8xf32>
    %634 = arith.addf %632, %633 : vector<8x8xf32>
    %635 = math.rsqrt %634 : vector<8x8xf32>
    %c624 = arith.constant 624 : index
    %c0_214 = arith.constant 0 : index
    %636 = vector.load %arg3[%c624, %c0_214] : memref<640x128xf32, #tpu.memory_space<vmem>>, vector<1x4xf32>
    %c632 = arith.constant 632 : index
    %c0_215 = arith.constant 0 : index
    %637 = vector.load %arg3[%c632, %c0_215] : memref<640x128xf32, #tpu.memory_space<vmem>>, vector<1x4xf32>
    %638 = arith.subf %551, %615 : vector<8x8xf32>
    %639 = arith.mulf %638, %635 : vector<8x8xf32>
    %640 = vector.extract_strided_slice %636 {offsets = [0, 0], sizes = [1, 1], strides = [1, 1]} : vector<1x4xf32> to vector<1x1xf32>
    %641 = vector.broadcast %640 : vector<1x1xf32> to vector<8x8xf32>
    %642 = arith.mulf %639, %641 : vector<8x8xf32>
    %643 = vector.extract_strided_slice %637 {offsets = [0, 0], sizes = [1, 1], strides = [1, 1]} : vector<1x4xf32> to vector<1x1xf32>
    %644 = vector.broadcast %643 : vector<1x1xf32> to vector<8x8xf32>
    %645 = arith.addf %642, %644 : vector<8x8xf32>
    %646 = arith.subf %560, %615 : vector<8x8xf32>
    %647 = arith.mulf %646, %635 : vector<8x8xf32>
    %648 = vector.extract_strided_slice %636 {offsets = [0, 1], sizes = [1, 1], strides = [1, 1]} : vector<1x4xf32> to vector<1x1xf32>
    %649 = vector.broadcast %648 : vector<1x1xf32> to vector<8x8xf32>
    %650 = arith.mulf %647, %649 : vector<8x8xf32>
    %651 = vector.extract_strided_slice %637 {offsets = [0, 1], sizes = [1, 1], strides = [1, 1]} : vector<1x4xf32> to vector<1x1xf32>
    %652 = vector.broadcast %651 : vector<1x1xf32> to vector<8x8xf32>
    %653 = arith.addf %650, %652 : vector<8x8xf32>
    %654 = arith.subf %569, %615 : vector<8x8xf32>
    %655 = arith.mulf %654, %635 : vector<8x8xf32>
    %656 = vector.extract_strided_slice %636 {offsets = [0, 2], sizes = [1, 1], strides = [1, 1]} : vector<1x4xf32> to vector<1x1xf32>
    %657 = vector.broadcast %656 : vector<1x1xf32> to vector<8x8xf32>
    %658 = arith.mulf %655, %657 : vector<8x8xf32>
    %659 = vector.extract_strided_slice %637 {offsets = [0, 2], sizes = [1, 1], strides = [1, 1]} : vector<1x4xf32> to vector<1x1xf32>
    %660 = vector.broadcast %659 : vector<1x1xf32> to vector<8x8xf32>
    %661 = arith.addf %658, %660 : vector<8x8xf32>
    %662 = arith.subf %578, %615 : vector<8x8xf32>
    %663 = arith.mulf %662, %635 : vector<8x8xf32>
    %664 = vector.extract_strided_slice %636 {offsets = [0, 3], sizes = [1, 1], strides = [1, 1]} : vector<1x4xf32> to vector<1x1xf32>
    %665 = vector.broadcast %664 : vector<1x1xf32> to vector<8x8xf32>
    %666 = arith.mulf %663, %665 : vector<8x8xf32>
    %667 = vector.extract_strided_slice %637 {offsets = [0, 3], sizes = [1, 1], strides = [1, 1]} : vector<1x4xf32> to vector<1x1xf32>
    %668 = vector.broadcast %667 : vector<1x1xf32> to vector<8x8xf32>
    %669 = arith.addf %666, %668 : vector<8x8xf32>
    %670 = tpu.iota {dimensions = array<i32: 0>} : vector<8x8xi32>
    %671 = tpu.iota {dimensions = array<i32: 1>} : vector<8x8xi32>
    %c0_i32_216 = arith.constant 0 : i32
    %672 = vector.broadcast %c0_i32_216 : i32 to vector<8x8xi32>
    %673 = arith.cmpi eq, %670, %672 : vector<8x8xi32>
    %c0_i32_217 = arith.constant 0 : i32
    %674 = vector.broadcast %c0_i32_217 : i32 to vector<8x8xi32>
    %675 = arith.cmpi eq, %671, %674 : vector<8x8xi32>
    %676 = arith.andi %673, %675 : vector<8x8xi1>
    %cst_218 = arith.constant 0.000000e+00 : f32
    %677 = vector.shape_cast %517 : vector<1x1xf32> to vector<1x1xf32>
    %678 = vector.broadcast %677 : vector<1x1xf32> to vector<8x8xf32>
    %679 = vector.broadcast %cst_218 : f32 to vector<8x8xf32>
    %680 = arith.select %676, %678, %679 : vector<8x8xi1>, vector<8x8xf32>
    %c0_i32_219 = arith.constant 0 : i32
    %681 = vector.broadcast %c0_i32_219 : i32 to vector<8x8xi32>
    %682 = arith.cmpi eq, %670, %681 : vector<8x8xi32>
    %c1_i32_220 = arith.constant 1 : i32
    %683 = vector.broadcast %c1_i32_220 : i32 to vector<8x8xi32>
    %684 = arith.cmpi eq, %671, %683 : vector<8x8xi32>
    %685 = arith.andi %682, %684 : vector<8x8xi1>
    %cst_221 = arith.constant 0.000000e+00 : f32
    %686 = vector.shape_cast %610 : vector<1x1xf32> to vector<1x1xf32>
    %687 = vector.broadcast %686 : vector<1x1xf32> to vector<8x8xf32>
    %688 = vector.broadcast %cst_221 : f32 to vector<8x8xf32>
    %689 = arith.select %685, %687, %688 : vector<8x8xi1>, vector<8x8xf32>
    %690 = arith.addf %680, %689 : vector<8x8xf32>
    %691 = tpu.concatenate %366, %387, %408, %429, %645, %653, %661, %669, %690 in 0 : vector<8x8xf32>, vector<8x8xf32>, vector<8x8xf32>, vector<8x8xf32>, vector<8x8xf32>, vector<8x8xf32>, vector<8x8xf32>, vector<8x8xf32>, vector<8x8xf32> -> vector<72x8xf32>
    %c0_222 = arith.constant 0 : index
    %c0_223 = arith.constant 0 : index
    %c0_224 = arith.constant 0 : index
    %692 = vector.load %arg6[%c0_222, %c0_223, %c0_224] : memref<1x72x8xf32, #tpu.memory_space<vmem>>, vector<1x72x8xf32>
    %693 = vector.shape_cast %692 : vector<1x72x8xf32> to vector<72x8xf32>
    %694 = vector.shape_cast %691 : vector<72x8xf32> to vector<1x72x8xf32>
    tpu.vector_store %arg6[%c0_222, %c0_223, %c0_224], %694 {strides = array<i32>} : memref<1x72x8xf32, #tpu.memory_space<vmem>>, vector<1x72x8xf32>,
    return
  }
  func.func @transform_0(%arg0: i32) -> (i32, i32, i32) {
    %c0_i32 = arith.constant 0 : i32
    %c0_i32_0 = arith.constant 0 : i32
    %c0_i32_1 = arith.constant 0 : i32
    return %arg0, %c0_i32, %c0_i32_0 : i32, i32, i32
  }
  func.func @transform_1(%arg0: i32) -> (i32, i32, i32) {
    %c0_i32 = arith.constant 0 : i32
    %c0_i32_0 = arith.constant 0 : i32
    %c0_i32_1 = arith.constant 0 : i32
    return %arg0, %c0_i32, %c0_i32_0 : i32, i32, i32
  }
  func.func @transform_2(%arg0: i32) -> (i32, i32) {
    %c0_i32 = arith.constant 0 : i32
    %c0_i32_0 = arith.constant 0 : i32
    %c0_i32_1 = arith.constant 0 : i32
    return %c0_i32, %c0_i32_0 : i32, i32
  }
  func.func @transform_3(%arg0: i32) -> (i32, i32, i32) {
    %c0_i32 = arith.constant 0 : i32
    %c0_i32_0 = arith.constant 0 : i32
    %c0_i32_1 = arith.constant 0 : i32
    return %arg0, %c0_i32, %c0_i32_0 : i32, i32, i32
  }
  func.func @transform_4(%arg0: i32) -> (i32, i32, i32) {
    %c0_i32 = arith.constant 0 : i32
    %c0_i32_0 = arith.constant 0 : i32
    %c0_i32_1 = arith.constant 0 : i32
    return %arg0, %c0_i32, %c0_i32_0 : i32, i32, i32
  }
  func.func @transform_5(%arg0: i32) -> (i32, i32, i32) {
    %c0_i32 = arith.constant 0 : i32
    %c0_i32_0 = arith.constant 0 : i32
    %c0_i32_1 = arith.constant 0 : i32
    return %arg0, %c0_i32, %c0_i32_0 : i32, i32, i32
  }
}

</mosaic_0001>

<bundles_post_ra>
// kernel: e3pifold_forward.1
= control target key start
LH: loop header
LB: loop body
LE: loop exit
PB: predicated region body
PF: predicated region fallthrough
CT: control target
= control target key end

     0   :  { %11 = vsyncpa [#allocation3], 0  ;;  %s5781_s0 = inlined_call_operand.vmem [shape: f32[2,8,25], index: 0, kind: input, shape index: {}]   ;;  %s5782_s1 = inlined_call_operand.vmem [shape: f32[2,1,8], index: 1, kind: input, shape index: {}]   ;;  %s5783_s2 = inlined_call_operand.hbm [shape: f32[640,128], index: 2, kind: input, shape index: {}]   ;;  %s5784_s3 = inlined_call_operand.hbm [shape: f32[2,8,33], index: 3, kind: output, shape index: {0}]   ;;  %s5785_s4 = inlined_call_operand.hbm [shape: f32[2,8,32], index: 4, kind: output, shape index: {1}]   ;;  %s5786_s5 = inlined_call_operand.vmem [shape: f32[2,72,8], index: 5, kind: output, shape index: {2}]  }
   0x1   :  { %12 = vsyncpa [#allocation4], 0 }
   0x2   :  { %14 = vsyncpa [#allocation4 + $0x1], 0 }
   0x3   :  { %15 = vsyncpa [#allocation7], 0 }
   0x4   :  { %17 = vsyncpa [#allocation7 + $0x1], 0  ;;  %s4886_s18 = smov 0   ;;  %s4888_s19 = smov 0  }
   0x5   :  { %s4890_s20 = smov 0   ;;  %s4892_s21 = smov 0  }
   0x6 LB: > { %s4907_s22 = sadd.s32 4294967295, %s4826_s21   ;;  %s4044_s23 = sadd.s32 4294967294, %s4826_s21   ;;  %s4826_s21 = sphi %s4892_s21, %s5801_s21   ;;  %s4822_s20 = sphi %s4890_s20, %s5800_s20   ;;  %s4818_s19 = sphi %s4888_s19, %s5799_s19   ;;  %s4814_s18 = sphi %s4886_s18, %s5798_s18  }
   0x7   : > { %s4911_s24 = sadd.s32 1, %s4826_s21   ;;  %s103_s25 = sadd.s32 1, %s4822_s20 }
   0x8   : > { %s100_s26 = ssub.s32 %s4826_s21, %s4911_s24  ;;  %p113_p0 = scmp.ne.s32.totalorder %s4822_s20, %s4818_s19 }
   0x9   : > { %p101_p1 = scmp.eq.s32.totalorder %s100_s26, 0  ;;  %p114_p2 = scmp.eq.s32.totalorder %s4907_s22, 1 }
   0xa   : > { %p119_p3 = scmp.ne.s32.totalorder %s4818_s19, %s4814_s18  ;;  %p120_p4 = scmp.eq.s32.totalorder %s4044_s23, 1 }
   0xb   : > { %s4922_s27 = scalar_select %p101_p1, %s4822_s20, %s103_s25  }
   0xc   : > { %p4924_p5 = por %p114_p2, %p113_p0  ;;  %p4928_p6 = por %p120_p4, %p119_p3 }
   0xd   : > { %p4045_p7 = scmp.ge.s32.totalorder %s4826_s21, 1  ;;  %p179_p8 = scmp.lt.s32.totalorder %s4826_s21, 3 }
   0xe   : > { %s5791_s29 = scalar_select %p4928_p6, 1, 0 }
   0xf   : > { %p4543_p9 = scmp.eq.s32.totalorder %s4907_s22, 0  ;;  %p4935_p10 = pnand %p4045_p7, %p179_p8 }
  0x10   : > { %s4828_s6 = smov [#allocation2]  }
  0x11   : > { %s191_s7 = sshll.u32 %s4828_s6, 4  ;;  %p4532_p11 = pneg %p4935_p10  ;;  %s192_s7 = int_to_ptr.vmem [resolvable:$true] %s191_s7 }
  0x12   : > { %s4717_s8 = scalar_lea.vmem %s192_s7, 10240  ;;  %p4725_p3 = scmp.lt.s32.totalorder %s192_s7, %s192_s7 }
  0x13   : > { %p4533_p12 = pnand %p4543_p9, %p4532_p11  ;;  %p4718_p0 = scmp.ne.s32.totalorder %s192_s7, %s4717_s8 }
  0x14   : > { %p4726_p4 = scmp.lt.s32.totalorder %s4717_s8, %s4717_s8 }
  0x15   : > { %p4708_p13 = pneg %p4533_p12 }
  0x16   : > { %p4727_p6 = por %p4726_p4, %p4725_p3 }
  0x17   : > { %p4720_p1 = pnand %p4718_p0, %p4708_p13 }
  0x19   : > { %p4721_p2 = pneg %p4720_p1 }
  0x1b   : > { %p4728_p7 = pnand %p4727_p6, %p4721_p2 }
  0x1d   : > { %4731 = shalt.err (!%p4728_p7)
}
  0x1e   : > { %s4829_s9 = smov 128   ;;  %s4830_s10 = smov 8  }
  0x1f   : > { %4535 = dma.hbm_to_vmem [thread:$0]  (!%p4533_p12), %s5783_s2, 10240, %s192_s7, [#allocation3], %s4829_s9, %s4829_s9, %s4830_s10  }
  0x20   : > { %220 = sbr.rel (%p4935_p10) target bundleno = 5691 (0x163b), region = 32 }
  0x25   : > { %4801 = dma.done.wait (%p4543_p9), [#allocation3], 10240  }
  0x26   : > { %4803 = vsyncadd (%p4543_p9), [#allocation3], 4294957056  ;;  %p260_p8 = scmp.lt.s32.totalorder %s4907_s22, 1  ;;  %v4831_v0 = vmov 0.0   ;;  %vm4832_vm0 = vmmov 0   ;;  %vm289_vm1 = vcmask 1044480   ;;  %v618_v34 = vlaneseq }
  0x27   : > { %4257 = vmatprep.subr.mxu0 %v4831_v0  ;;  %4263 = vmatprep.mubr.msk.f32.mxu0 %vm4832_vm0, %v4831_v0  ;;  %v279_v1 = vld [vmem:[#allocation2 + $0x10] sm:$0x1f]  ;;  %v278_v2 = vld [vmem:[#allocation2 + $0x8] sm:$0xff]  ;;  %v277_v4 = vld [vmem:[#allocation2] sm:$0xff]  ;;  %vm285_vm2 = vcmask 171008   ;;  %s4833_s23 = smov 107  }
  0x28   : > { %s4957_s13 = scalar_select %p260_p8, %s4907_s22, 1  ;;  %4282 = vmatprep.subr.mxu1 %v4831_v0  ;;  %4284 = vmatprep.mubr.msk.f32.mxu1 %vm4832_vm0, %v4831_v0  ;;  %v366_v6 = vld [vmem:[#allocation2 + $0x38] sm:$0xff]  ;;  %v365_v7 = vld [vmem:[#allocation2 + $0x30] sm:$0xff]  ;;  %v364_v8 = vld [vmem:[#allocation2 + $0x28] sm:$0xff]  ;;  %vm465_vm3 = vcmask 23552   ;;  %vm372_vm4 = vcmask 261120  }
  0x29   : > { %4258 = vmatpush3.msk.msra.mxu0 %vm289_vm1, %v279_v1  ;;  %v363_v9 = vld [vmem:[#allocation2 + $0x20] sm:$0xff]  ;;  %v4054_v12 = vld [vmem:[#allocation2 + $0x18] ss:$0 sm:$0xff]  ;;  %v4834_v17 = vmov 1.0   ;;  %s5787_s25 = smov 127   ;;  %v4836_v20 = vmov 24  }
  0x2a   : > { %s4052_s14 = sshll.u32 %s4957_s13, 3  ;;  %4259 = vmatprep.subr.mxu0 %v4831_v0  ;;  %v633_v18 = vld [vmem:[#allocation2 + $0x58] sm:$0x1]  ;;  %4604 = vset.pattern.permute.xlu0 %v4836_v20  ;;  %v4996_v35 = vshrl.u32 %v618_v34, 7  ;;  %vm783_vm7 = vcmask 130048   ;;  %s4837_s6 = smov 96  }
  0x2b   : > { %s263_s17 = scalar_lea.vmem %s5781_s0, %s4052_s14  ;;  %4260 = vmatpush3.msra.mxu0 %v278_v2  ;;  %4504 = vpush %v633_v18  ;;  %s4838_s7 = smov 88   ;;  %vm1132_vm10 = vcmask 31744   ;;  %vm1608_vm13 = vcmask 64512   ;;  %vm1203_vm14 = vcmask 1041409   ;;  %vm1205_vm15 = vcmask 1042434  }
  0x2c   : > { %v272_v3 = vld [vmem:[%s263_s17] sm:$0xff]  ;;  %4261 = vmatprep.subr.mxu0 %v4831_v0  ;;  %v4999_v36 = vsub.s32 0, %v4996_v35  ;;  %v658_v52 = vsub.s32 1, %v4996_v35  ;;  %v686_v56 = vsub.s32 5, %v4996_v35  ;;  %v665_v57 = vsub.s32 2, %v4996_v35  ;;  %s4839_s8 = smov 80   ;;  %s5286_s16 = scalar_lea.vmem %s5782_s1, %s4957_s13 }
  0x2d   : > { %v460_v5 = vmul.f32 %v272_v3, %v272_v3  ;;  %4262 = vmatpush3.msra.mxu0 %v277_v4  ;;  %v4984_v19 = vsub.f32 1.0, %v272_v3  ;;  %v672_v61 = vsub.s32 3, %v4996_v35  ;;  %v679_v1 = vsub.s32 4, %v4996_v35  ;;  %v777_v4 = vld [vmem:[#allocation2 + $0x68] sm:$0xff]  ;;  %s4840_s9 = smov 72   ;;  %s4841_s10 = smov 120  }
  0x2e   : > { %4264 = vmatmul.mubr.msk.f32.vlgmr.msra.gmra.mxu0 %vm285_vm2, %v272_v3  ;;  %4266 = vmatprep.subr.mxu0 %v4831_v0  ;;  %s4842_s11 = smov 112   ;;  %s4843_s12 = smov 104   ;;  %vm1207_vm1 = vcmask 1043459  }
  0x2f   : > { %462 = vrot.lane.b32.xlu0 %v460_v5, %s4833_s23  ;;  %4267 = vmatpush3.msra.mxu0 %v366_v6  ;;  %v776_v5 = vld [vmem:[#allocation2 + $0x60] sm:$0xff]  ;;  %s4845_s17 = smov 64   ;;  %s4849_s14 = smov 8  }
  0x30   : > { %4274 = vmatprep.mubr.msk.f32.mxu0 %vm4832_vm0, %v4831_v0  ;;  %4268 = vmatprep.subr.mxu0 %v4831_v0  ;;  %s4850_s15 = smov 16  }
  0x31   : > { %4269 = vmatpush3.msra.mxu0 %v365_v7 }
  0x32   : > { %4270 = vmatprep.subr.mxu0 %v4831_v0 }
  0x33   : > { %544 = vrot.lane.b32.xlu0 %v272_v3, %s4833_s23  ;;  %4271 = vmatpush3.msra.mxu0 %v364_v8  ;;  %v693_v3 = vsub.s32 6, %v4996_v35  ;;  %s4846_s23 = smov 48  }
  0x34   : > { %4272 = vmatprep.subr.mxu0 %v4831_v0 }
  0x35   : > { %4273 = vmatpush3.msra.mxu0 %v363_v9  ;;  %v4082_v9 = vld [vmem:[#allocation2 + $0x90] ss:$0 sm:$0xff] }
  0x36   : > { %4277 = vmatprep.subr.mxu0 %v4831_v0 }
  0x37   : > { %639 = vrot.lane.b32.xlu0 %v633_v18, %s5787_s25  ;;  %v646_v18 = vld [vmem:[#allocation2 + $0x50] sm:$0x1]  ;;  %s4851_s25 = smov 24  }
  0x38   : > { %v647_v20 = vand.u32 2147483647, %v646_v18 }
  0x3b   : > { %1493 = vperm.xlu0 %4604, %v4984_v19  }
  0x5c   : > { %s4505_s26 = spop %4504 }
  0x5d   : > { %v636_v47 = vstv %s4505_s26  ;;  %s4847_s26 = smov 40  }
  0xa1   : > { %v463_v10 = vpop.permute.xlu0 %462 }
  0xa2   : > { %v466_v29 = vsel %vm465_vm3, %v463_v10, 0.0 }
  0xa5   : > { %v545_v11 = vpop.permute.xlu0 %544 }
  0xa6   : > { %4283 = vmatpush3.xpose.msk.msra.mxu1 %vm465_vm3, %v545_v11 }
  0xa9   : > { %4285 = vmatmul.mubr.msk.f32.vlgmr.msra.gmra.mxu1 %vm465_vm3, %v545_v11  ;;  %v640_v23 = vpop.permute.xlu0 %639  ;;  %v4083_v11 = vld [vmem:[#allocation2 + $0x98] ss:$0 sm:$0xff] }
  0xaa   : > { %4506 = vpush %v640_v23  ;;  %v5020_v23 = vld [vmem:[#allocation2 + $0x48] ss:$0 sm:$0xff] }
  0xdb   : > { %s4507_s30 = spop %4506 }
  0xdc   : > { %v642_v50 = vstv %s4507_s30  ;;  %s4848_s30 = smov 56  }
  0xee   : > { %v359_v13 = vpop.f32.mrf.mxu0 }
  0xef   : > { %v360_v14 = vadd.f32 %v4054_v12, %v359_v13  ;;  %v5011_v13 = vpop.permute.xlu0 %1493 }
  0xf0   : > { %v4265_v15 = vpop.f32.mrf.mxu0 }
  0xf1   : > { %4275 = vmatmul.mubr.msk.f32.vlgmr.msra.gmra.mxu0 %vm372_vm4, %v360_v14  ;;  %v1467_v16 = vsel %vm372_vm4, %v360_v14, 0.0 }
  0xf2   : > { %1468 = vadd.xlane.f32.xlu1 %v1467_v16  ;;  %4278 = vmatpush3.xpose.msk.msra.mxu0 %vm465_vm3, %v463_v10  ;;  %v700_v16 = vsub.s32 7, %v4996_v35 }
  0xf3   : > { %4279 = vmatprep.mubr.msk.f32.mxu0 %vm4832_vm0, %v4831_v0  ;;  %4287 = vmatprep.subr.mxu0 %v777_v4 }
  0xf5   : > { %4280 = vmatmul.mubr.msk.f32.vlgmr.msra.gmra.mxu0 %vm465_vm3, %v4834_v17  ;;  %vm1209_vm3 = vcmask 1044484  }
  0xf6   : > { %4288 = vmatpush3.msra.mxu0 %v777_v4 }
  0xf7   : > { %4289 = vmatprep.subr.mxu0 %v776_v5 }
  0xf8   : > { %4290 = vmatpush3.msra.mxu0 %v776_v5 }
  0xf9   : > { %4319 = vmatprep.subr.mxu0 %v4831_v0 }
 0x169   : > { %v614_v21 = vpop.f32.mrf.mxu1 }
 0x16a   : > { %v623_v40 = vmul.f32 2.0, %v614_v21  ;;  %v648_v21 = vadd.f32 1e-05, %v647_v20 }
 0x16b   : > { %v4286_v22 = vpop.f32.mrf.mxu1 }
 0x16c   : > { %v720_v22 = vrot.slane %v648_v21, %v4999_v36 }
 0x17b   : > { %v1469_v24 = vpop.xlane.xlu1 %1468 }
 0x17c   : > { %v1471_v25 = vmul.f32 0.03125, %v1469_v24 }
 0x17e   : > { %v4987_v26 = vsub.f32 %v360_v14, %v1471_v25  ;;  %v762_v25 = vmul.f32 2.5066283, %v648_v21 }
 0x180   : > { %v1473_v27 = vmul.f32 %v4987_v26, %v4987_v26 }
 0x182   : > { %v1474_v28 = vsel %vm372_vm4, %v1473_v27, 0.0 }
 0x183   : > { %1475 = vadd.xlane.f32.xlu1 %v1474_v28 }
 0x187   : > { %467 = vadd.xlane.f32.xlu1 %v466_v29 }
 0x1b1   : > { %v4993_v30 = vpop.f32.mrf.mxu0 }
 0x1b3   : > { %v4276_v31 = vpop.f32.mrf.mxu0 }
 0x1b5   : > { %v540_v32 = vpop.f32.mrf.mxu0 }
 0x1b6   : > { %v621_v38 = vrot.slane %v540_v32, %v4999_v36 }
 0x1b7   : > { %v4281_v33 = vpop.f32.mrf.mxu0 }
 0x1b8   : > { %v766_v33 = vrot.slane %v762_v25, %v4999_v36 }
 0x20c   : > { %v1476_v37 = vpop.xlane.xlu1 %1475 }
 0x20d   : > { %v1477_v58 = vmul.f32 0.03125, %v1476_v37 }
 0x20f   : > { %v1478_v62 = vadd.f32 1e-05, %v1477_v58 }
 0x210   : > { %v468_v39 = vpop.xlane.xlu1 %467 }
 0x211   : > { %v622_v41 = vadd.f32 %v621_v38, %v468_v39 }
 0x213   : > { %v624_v42 = vsub.f32 %v622_v41, %v623_v40 }
 0x215   : > { %v625_v43 = vmax.f32 %v624_v42, 0.0 }
 0x217   : > { %4605 = vrsqrt.f32 %v625_v43  ;;  %vm628_vm5 = vcmp.eq.f32.partialorder %v625_v43, inf  ;;  %v631_v46 = vand.u32 2147483648, %v625_v43  ;;  %vm630_vm6 = vcmp.eq.f32.partialorder %v625_v43, 0.0 }
 0x218   : > { %4607 = vrsqrt.f32 %v1478_v62 }
 0x219   : > { %4609 = vrcp.f32 %v720_v22 }
 0x21a   : > { %4611 = vrcp.f32 %v766_v33 }
 0x224   : > { %v4606_v44 = vpop.eup %4605 }
 0x225   : > { %v627_v45 = vmul.f32 %v4606_v44, %v625_v43  ;;  %v4608_v7 = vpop.eup %4607 }
 0x226   : > { %v1480_v8 = vmul.f32 %v4608_v7, %v4987_v26  ;;  %v5022_v24 = vpop.eup %4609 }
 0x227   : > { %v629_v48 = vsel %vm628_vm5, %v625_v43, %v627_v45  ;;  %vm1211_vm5 = vcmask 1045509  }
 0x228   : > { %v632_v49 = vsel %vm630_vm6, %v631_v46, %v629_v48  ;;  %v1485_v10 = vmul.f32 %v4082_v9, %v1480_v8  ;;  %v4612_v8 = vpop.eup %4611  ;;  %vm1213_vm6 = vcmask 1046534  }
 0x229   : > { %v638_v51 = vmul.f32 %v636_v47, %v632_v49 }
 0x22a   : > { %v1490_v12 = vadd.f32 %v4083_v11, %v1485_v10 }
 0x22b   : > { %v644_v53 = vadd.f32 %v642_v50, %v638_v51 }
 0x22c   : > { %v5014_v14 = vmul.f32 %v5011_v13, %v1490_v12 }
 0x22d   : > { %v652_v54 = vrot.slane %v644_v53, %v4999_v36  ;;  %v659_v55 = vrot.slane %v644_v53, %v658_v52  ;;  %v687_v59 = vrot.slane %v644_v53, %v686_v56  ;;  %v666_v60 = vrot.slane %v644_v53, %v665_v57 }
 0x22e   : > { %v673_v63 = vrot.slane %v644_v53, %v672_v61  ;;  %v680_v2 = vrot.slane %v644_v53, %v679_v1  ;;  %v694_v6 = vrot.slane %v644_v53, %v693_v3  ;;  %v1499_v15 = vsel %vm372_vm4, %v5014_v14, 0.0 }
 0x22f   : > { %654 = vbcast.lane.b32.xlu1 %v652_v54, 256  ;;  %661 = vbcast.lane.b32.xlu0 %v659_v55, 256  ;;  %v701_v17 = vrot.slane %v644_v53, %v700_v16 }
 0x233   : > { %689 = vbcast.lane.b32.xlu1 %v687_v59, 256  ;;  %668 = vbcast.lane.b32.xlu0 %v666_v60, 256 }
 0x237   : > { %675 = vbcast.lane.b32.xlu0 %v673_v63, 256 }
 0x23b   : > { %682 = vbcast.lane.b32.xlu0 %v680_v2, 256 }
 0x23f   : > { %696 = vbcast.lane.b32.xlu0 %v694_v6, 256 }
 0x257   : > { %1500 = vadd.xlane.f32.xlu1 %v1499_v15 }
 0x268   : > { %703 = vbcast.lane.b32.xlu1 %v701_v17, 256 }
 0x2a1   : > { %v655_v26 = vpop.permute.xlu1 %654  ;;  %v662_v27 = vpop.permute.xlu0 %661 }
 0x2a2   : > { %v709_v28 = vsub.f32 %v655_v26, %v5020_v23  ;;  %v710_v29 = vsub.f32 %v662_v27, %v5020_v23 }
 0x2a4   : > { %v722_v31 = vmul.f32 %v5022_v24, %v709_v28  ;;  %v723_v32 = vmul.f32 %v5022_v24, %v710_v29 }
 0x2a5   : > { %v690_v37 = vpop.permute.xlu1 %689  ;;  %v669_v38 = vpop.permute.xlu0 %668 }
 0x2a6   : > { %v730_v39 = vmul.f32 -0.5, %v722_v31  ;;  %v731_v40 = vmul.f32 -0.5, %v723_v32  ;;  %v714_v41 = vsub.f32 %v690_v37, %v5020_v23  ;;  %v711_v42 = vsub.f32 %v669_v38, %v5020_v23 }
 0x2a8   : > { %v738_v43 = vmul.f32 %v730_v39, %v722_v31  ;;  %v739_v44 = vmul.f32 %v731_v40, %v723_v32  ;;  %v727_v45 = vmul.f32 %v5022_v24, %v714_v41  ;;  %v724_v46 = vmul.f32 %v5022_v24, %v711_v42 }
 0x2a9   : > { %v676_v47 = vpop.permute.xlu0 %675 }
 0x2aa   : > { %v746_v48 = vmul.f32 1.442695, %v738_v43  ;;  %v748_v49 = vmul.f32 1.442695, %v739_v44  ;;  %v732_v50 = vmul.f32 -0.5, %v724_v46  ;;  %v735_v51 = vmul.f32 -0.5, %v727_v45 }
 0x2ab   : > { %v712_v52 = vsub.f32 %v676_v47, %v5020_v23  ;;  %v1525_v47 = vld [vmem:[#allocation2 + $0xc8] sm:$0xff] }
 0x2ac   : > { %4613 = vpow2.f32 %v746_v48  ;;  %v740_v53 = vmul.f32 %v732_v50, %v724_v46  ;;  %v743_v58 = vmul.f32 %v735_v51, %v727_v45  ;;  %v1522_v48 = vld [vmem:[#allocation2 + $0xb0] sm:$0xff]  ;;  %v985_v50 = vld [vmem:[#allocation2 + $0x78] sm:$0xff] }
 0x2ad   : > { %4615 = vpow2.f32 %v748_v49  ;;  %v725_v54 = vmul.f32 %v5022_v24, %v712_v52  ;;  %v683_v55 = vpop.permute.xlu0 %682  ;;  %v986_v49 = vld [vmem:[#allocation2 + $0x80] sm:$0xff] }
 0x2ae   : > { %v750_v56 = vmul.f32 1.442695, %v740_v53  ;;  %v713_v57 = vsub.f32 %v683_v55, %v5020_v23  ;;  %v756_v2 = vmul.f32 1.442695, %v743_v58  ;;  %4303 = vmatprep.subr.mxu1 %v986_v49 }
 0x2af   : > { %v733_v59 = vmul.f32 -0.5, %v725_v54  ;;  %4304 = vmatpush3.msra.mxu1 %v986_v49 }
 0x2b0   : > { %v726_v60 = vmul.f32 %v5022_v24, %v713_v57  ;;  %4617 = vpow2.f32 %v750_v56  ;;  %4305 = vmatprep.subr.mxu1 %v985_v50 }
 0x2b1   : > { %v741_v61 = vmul.f32 %v733_v59, %v725_v54  ;;  %v697_v62 = vpop.permute.xlu0 %696  ;;  %4306 = vmatpush3.msra.mxu1 %v985_v50  ;;  %v5058_v54 = vld [vmem:[#allocation2 + $0x70] ss:$0 sm:$0xff] }
 0x2b2   : > { %v734_v63 = vmul.f32 -0.5, %v726_v60  ;;  %v715_v1 = vsub.f32 %v697_v62, %v5020_v23  ;;  %4330 = vmatprep.subr.mxu1 %v4831_v0 }
 0x2b3   : > { %v752_v3 = vmul.f32 1.442695, %v741_v61 }
 0x2b4   : > { %v742_v4 = vmul.f32 %v734_v63, %v726_v60  ;;  %v728_v5 = vmul.f32 %v5022_v24, %v715_v1  ;;  %v4084_v63 = vld [vmem:[#allocation2 + $0xa0] ss:$0 sm:$0xff] }
 0x2b5   : > { %4619 = vpow2.f32 %v752_v3 }
 0x2b6   : > { %v754_v6 = vmul.f32 1.442695, %v742_v4  ;;  %v736_v7 = vmul.f32 -0.5, %v728_v5  ;;  %4621 = vpow2.f32 %v756_v2 }
 0x2b8   : > { %4623 = vpow2.f32 %v754_v6  ;;  %v744_v9 = vmul.f32 %v736_v7, %v728_v5 }
 0x2b9   : > { %v4614_v10 = vpop.eup %4613 }
 0x2ba   : > { %v4616_v11 = vpop.eup %4615  ;;  %v758_v12 = vmul.f32 1.442695, %v744_v9  ;;  %v768_v15 = vmul.f32 %v4614_v10, %v4612_v8  ;;  %v4085_v9 = vld [vmem:[#allocation2 + $0xa8] ss:$0 sm:$0xff] }
 0x2bb   : > { %v769_v16 = vmul.f32 %v4616_v11, %v4612_v8 }
 0x2bc   : > { %4625 = vpow2.f32 %v758_v12  ;;  %4291 = vmatprep.mubr.msk.f32.mxu0 %vm783_vm7, %v768_v15 }
 0x2bd   : > { %4292 = vmatmul.mubr.msk.f32.vlgmr.msra.gmra.mxu0 %vm783_vm7, %v769_v16  ;;  %v4618_v17 = vpop.eup %4617 }
 0x2be   : > { %v770_v18 = vmul.f32 %v4618_v17, %v4612_v8  ;;  %4320 = vmatpush3.msra.mxu0 %v1525_v47 }
 0x2bf   : > { %4321 = vmatprep.subr.mxu0 %v4831_v0 }
 0x2c0   : > { %4294 = vmatprep.mubr.msk.f32.mxu0 %vm783_vm7, %v770_v18 }
 0x2c2   : > { %v4620_v20 = vpop.eup %4619 }
 0x2c3   : > { %v771_v21 = vmul.f32 %v4620_v20, %v4612_v8  ;;  %v4622_v22 = vpop.eup %4621 }
 0x2c4   : > { %v773_v27 = vmul.f32 %v4622_v22, %v4612_v8 }
 0x2c5   : > { %v4624_v25 = vpop.eup %4623  ;;  %4295 = vmatmul.mubr.msk.f32.gmra.mxu0 %vm783_vm7, %v771_v21 }
 0x2c6   : > { %v772_v26 = vmul.f32 %v4624_v25, %v4612_v8 }
 0x2c8   : > { %4297 = vmatprep.mubr.msk.f32.mxu0 %vm783_vm7, %v772_v26 }
 0x2c9   : > { %v4626_v28 = vpop.eup %4625  ;;  %4298 = vmatmul.mubr.msk.f32.gmra.mxu0 %vm783_vm7, %v773_v27 }
 0x2ca   : > { %v774_v29 = vmul.f32 %v4626_v28, %v4612_v8 }
 0x2cc   : > { %4300 = vmatprep.mubr.msk.f32.mxu0 %vm783_vm7, %v774_v29 }
 0x2e0   : > { %v1501_v31 = vpop.xlane.xlu1 %1500 }
 0x2e1   : > { %v1502_v32 = vmul.f32 0.03125, %v1501_v31 }
 0x2e3   : > { %v1503_v33 = vsub.f32 %v5014_v14, %v1502_v32 }
 0x2e4   : > { %v704_v37 = vpop.permute.xlu1 %703 }
 0x2e5   : > { %v716_v38 = vsub.f32 %v704_v37, %v5020_v23  ;;  %v1504_v39 = vmul.f32 %v1503_v33, %v1503_v33  ;;  %v1524_v23 = vld [vmem:[#allocation2 + $0xc0] sm:$0xff] }
 0x2e6   : > { %4322 = vmatpush3.msra.mxu0 %v1524_v23 }
 0x2e7   : > { %v729_v40 = vmul.f32 %v5022_v24, %v716_v38  ;;  %v1505_v41 = vsel %vm372_vm4, %v1504_v39, 0.0  ;;  %4323 = vmatprep.subr.mxu0 %v4831_v0  ;;  %v1523_v24 = vld [vmem:[#allocation2 + $0xb8] sm:$0xff] }
 0x2e8   : > { %1506 = vadd.xlane.f32.xlu0 %v1505_v41  ;;  %4324 = vmatpush3.msra.mxu0 %v1523_v24 }
 0x2e9   : > { %v737_v42 = vmul.f32 -0.5, %v729_v40  ;;  %4325 = vmatprep.subr.mxu0 %v4831_v0 }
 0x2ea   : > { %4326 = vmatpush3.msra.mxu0 %v1522_v48 }
 0x2eb   : > { %v745_v43 = vmul.f32 %v737_v42, %v729_v40  ;;  %4335 = vmatprep.subr.mxu0 %v4831_v0 }
 0x2ed   : > { %v760_v44 = vmul.f32 1.442695, %v745_v43 }
 0x2ef   : > { %4627 = vpow2.f32 %v760_v44 }
 0x2fc   : > { %v4628_v45 = vpop.eup %4627 }
 0x2fd   : > { %v775_v46 = vmul.f32 %v4628_v45, %v4612_v8 }
 0x2ff   : > { %4301 = vmatmul.mubr.msk.f32.gmra.mxu0 %vm783_vm7, %v775_v46 }
 0x300   : > { %4327 = vmatprep.mubr.msk.f32.mxu0 %vm4832_vm0, %v4831_v0 }
 0x371   : > { %v1507_v51 = vpop.xlane.xlu0 %1506 }
 0x372   : > { %v1508_v52 = vmul.f32 0.03125, %v1507_v51 }
 0x374   : > { %v1509_v53 = vadd.f32 1e-05, %v1508_v52 }
 0x376   : > { %4629 = vrsqrt.f32 %v1509_v53 }
 0x37d   : > { %v4293_v55 = vpop.f32.mrf.mxu0 }
 0x37e   : > { %v880_v56 = vadd.f32 %v4293_v55, %v5058_v54 }
 0x37f   : > { %v874_v57 = vpop.f32.mrf.mxu0 }
 0x380   : > { %v922_v58 = vmul.f32 0.044715, %v880_v56  ;;  %v875_v59 = vadd.f32 %v5058_v54, %v874_v57  ;;  %v914_v52 = vmul.f32 0.5, %v880_v56 }
 0x382   : > { %v930_v60 = vmul.f32 %v922_v58, %v880_v56  ;;  %v921_v61 = vmul.f32 0.044715, %v875_v59  ;;  %v913_v50 = vmul.f32 0.5, %v875_v59 }
 0x383   : > { %v4630_v62 = vpop.eup %4629 }
 0x384   : > { %v1511_v1 = vmul.f32 %v4630_v62, %v1503_v33  ;;  %v938_v2 = vmul.f32 %v930_v60, %v880_v56  ;;  %v929_v3 = vmul.f32 %v921_v61, %v875_v59 }
 0x385   : > { %v4296_v4 = vpop.f32.mrf.mxu0 }
 0x386   : > { %v1516_v5 = vmul.f32 %v4084_v63, %v1511_v1  ;;  %v946_v6 = vadd.f32 %v938_v2, %v880_v56  ;;  %v937_v7 = vmul.f32 %v929_v3, %v875_v59  ;;  %v890_v8 = vadd.f32 %v4296_v4, %v5058_v54 }
 0x387   : > { %v884_v10 = vpop.f32.mrf.mxu0 }
 0x388   : > { %v954_v11 = vmul.f32 0.7978846, %v946_v6  ;;  %v945_v12 = vadd.f32 %v937_v7, %v875_v59  ;;  %v924_v15 = vmul.f32 0.044715, %v890_v8  ;;  %v885_v16 = vadd.f32 %v5058_v54, %v884_v10 }
 0x389   : > { %v4299_v17 = vpop.f32.mrf.mxu0  ;;  %v1521_v18 = vadd.f32 %v4085_v9, %v1516_v5  ;;  %v916_v1 = vmul.f32 0.5, %v890_v8 }
 0x38a   : > { %4631 = vtanh.f32 %v954_v11  ;;  %v932_v20 = vmul.f32 %v924_v15, %v890_v8  ;;  %v923_v21 = vmul.f32 0.044715, %v885_v16  ;;  %v900_v22 = vadd.f32 %v4299_v17, %v5058_v54 }
 0x38b   : > { %4328 = vmatmul.mubr.msk.f32.vlgmr.msra.gmra.mxu0 %vm372_vm4, %v1521_v18  ;;  %v894_v25 = vpop.f32.mrf.mxu0  ;;  %v953_v26 = vmul.f32 0.7978846, %v945_v12  ;;  %v915_v61 = vmul.f32 0.5, %v885_v16 }
 0x38c   : > { %v940_v27 = vmul.f32 %v932_v20, %v890_v8  ;;  %v931_v28 = vmul.f32 %v923_v21, %v885_v16  ;;  %v926_v29 = vmul.f32 0.044715, %v900_v22  ;;  %v895_v31 = vadd.f32 %v5058_v54, %v894_v25  ;;  %4337 = vmatprep.mubr.msk.f32.mxu0 %vm4832_vm0, %v4831_v0 }
 0x38d   : > { %4633 = vtanh.f32 %v953_v26  ;;  %v918_v6 = vmul.f32 0.5, %v900_v22 }
 0x38e   : > { %v948_v32 = vadd.f32 %v940_v27, %v890_v8  ;;  %v939_v33 = vmul.f32 %v931_v28, %v885_v16  ;;  %v934_v37 = vmul.f32 %v926_v29, %v900_v22  ;;  %v925_v38 = vmul.f32 0.044715, %v895_v31 }
 0x38f   : > { %v917_v56 = vmul.f32 0.5, %v895_v31 }
 0x390   : > { %v947_v39 = vadd.f32 %v939_v33, %v885_v16  ;;  %v942_v40 = vmul.f32 %v934_v37, %v900_v22  ;;  %v933_v41 = vmul.f32 %v925_v38, %v895_v31  ;;  %v956_v42 = vmul.f32 0.7978846, %v948_v32 }
 0x392   : > { %v950_v43 = vadd.f32 %v942_v40, %v900_v22  ;;  %v941_v44 = vmul.f32 %v933_v41, %v895_v31  ;;  %v955_v45 = vmul.f32 0.7978846, %v947_v39  ;;  %4635 = vtanh.f32 %v956_v42 }
 0x394   : > { %v949_v46 = vadd.f32 %v941_v44, %v895_v31  ;;  %4637 = vtanh.f32 %v955_v45  ;;  %v958_v47 = vmul.f32 0.7978846, %v950_v43  ;;  %v5095_v44 = vand.u32 127, %v618_v34  ;;  %v4073_v45 = vld [vmem:[#allocation2 + $0x88] ss:$0 sm:$0xff] }
 0x396   : > { %v957_v23 = vmul.f32 0.7978846, %v949_v46  ;;  %4639 = vtanh.f32 %v958_v47  ;;  %vm1123_vm8 = vcmp.eq.s32.totalorder %v5095_v44, 0  ;;  %vm1301_vm9 = vcmp.eq.s32.totalorder %v5095_v44, 2 }
 0x397   : > { %v4632_v24 = vpop.eup %4631  ;;  %vm1383_vm11 = vcmp.eq.s32.totalorder %v5095_v44, 3  ;;  %vm1219_vm12 = vcmp.eq.s32.totalorder %v5095_v44, 1 }
 0x398   : > { %4641 = vtanh.f32 %v957_v23  ;;  %v970_v49 = vadd.f32 1.0, %v4632_v24 }
 0x39a   : > { %v4634_v48 = vpop.eup %4633  ;;  %v978_v55 = vmul.f32 %v970_v49, %v914_v52 }
 0x39b   : > { %v969_v51 = vadd.f32 1.0, %v4634_v48 }
 0x39d   : > { %v977_v53 = vmul.f32 %v969_v51, %v913_v50 }
 0x39f   : > { %v4636_v57 = vpop.eup %4635  ;;  %4307 = vmatprep.mubr.msk.f32.mxu1 %vm783_vm7, %v977_v53 }
 0x3a0   : > { %4308 = vmatmul.mubr.msk.f32.vlgmr.msra.gmra.mxu1 %vm783_vm7, %v978_v55  ;;  %v972_v60 = vadd.f32 1.0, %v4636_v57 }
 0x3a1   : > { %v4638_v58 = vpop.eup %4637 }
 0x3a2   : > { %v971_v62 = vadd.f32 1.0, %v4638_v58  ;;  %v980_v4 = vmul.f32 %v972_v60, %v916_v1 }
 0x3a3   : > { %v4640_v63 = vpop.eup %4639 }
 0x3a4   : > { %v979_v2 = vmul.f32 %v971_v62, %v915_v61  ;;  %v974_v5 = vadd.f32 1.0, %v4640_v63 }
 0x3a5   : > { %v4642_v3 = vpop.eup %4641 }
 0x3a6   : > { %4310 = vmatprep.mubr.msk.f32.mxu1 %vm783_vm7, %v979_v2  ;;  %v973_v59 = vadd.f32 1.0, %v4642_v3  ;;  %v982_v9 = vmul.f32 %v974_v5, %v918_v6 }
 0x3a7   : > { %4311 = vmatmul.mubr.msk.f32.gmra.mxu1 %vm783_vm7, %v980_v4 }
 0x3a8   : > { %v981_v7 = vmul.f32 %v973_v59, %v917_v56 }
 0x3aa   : > { %4313 = vmatprep.mubr.msk.f32.mxu1 %vm783_vm7, %v981_v7 }
 0x3ab   : > { %4314 = vmatmul.mubr.msk.f32.gmra.mxu1 %vm783_vm7, %v982_v9 }
 0x3bf   : > { %v4302_v10 = vpop.f32.mrf.mxu0 }
 0x3c0   : > { %v910_v8 = vadd.f32 %v4302_v10, %v5058_v54 }
 0x3c1   : > { %v904_v11 = vpop.f32.mrf.mxu0 }
 0x3c2   : > { %v928_v12 = vmul.f32 0.044715, %v910_v8  ;;  %v905_v15 = vadd.f32 %v5058_v54, %v904_v11  ;;  %v920_v37 = vmul.f32 0.5, %v910_v8  ;;  %v4086_v54 = vld [vmem:[#allocation2 + $0xd0] ss:$0 sm:$0xff] }
 0x3c4   : > { %v936_v16 = vmul.f32 %v928_v12, %v910_v8  ;;  %v927_v17 = vmul.f32 0.044715, %v905_v15  ;;  %v919_v32 = vmul.f32 0.5, %v905_v15 }
 0x3c6   : > { %v944_v18 = vmul.f32 %v936_v16, %v910_v8  ;;  %v935_v20 = vmul.f32 %v927_v17, %v905_v15 }
 0x3c8   : > { %v952_v21 = vadd.f32 %v944_v18, %v910_v8  ;;  %v943_v25 = vmul.f32 %v935_v20, %v905_v15 }
 0x3ca   : > { %v951_v22 = vadd.f32 %v943_v25, %v905_v15  ;;  %v960_v26 = vmul.f32 0.7978846, %v952_v21 }
 0x3cc   : > { %v959_v27 = vmul.f32 0.7978846, %v951_v22  ;;  %4643 = vtanh.f32 %v960_v26 }
 0x3ce   : > { %4645 = vtanh.f32 %v959_v27 }
 0x3d9   : > { %v4644_v28 = vpop.eup %4643 }
 0x3da   : > { %v976_v31 = vadd.f32 1.0, %v4644_v28 }
 0x3db   : > { %v4646_v29 = vpop.eup %4645 }
 0x3dc   : > { %v975_v33 = vadd.f32 1.0, %v4646_v29  ;;  %v984_v39 = vmul.f32 %v976_v31, %v920_v37 }
 0x3de   : > { %v983_v38 = vmul.f32 %v975_v33, %v919_v32 }
 0x3e0   : > { %4316 = vmatprep.mubr.msk.f32.mxu1 %vm783_vm7, %v983_v38 }
 0x3e1   : > { %4317 = vmatmul.mubr.msk.f32.gmra.mxu1 %vm783_vm7, %v984_v39 }
 0x3e2   : > { %4332 = vmatprep.mubr.msk.f32.mxu1 %vm4832_vm0, %v4831_v0 }
 0x44b   : > { %v1600_v40 = vpop.f32.mrf.mxu0 }
 0x44c   : > { %v5081_v41 = vadd.f32 %v4086_v54, %v1600_v40 }
 0x44d   : > { %v4329_v42 = vpop.f32.mrf.mxu0 }
 0x44e   : > { %1606 = vrot.lane.b32.xlu1 %v5081_v41, %s4837_s6  ;;  %v5092_v43 = vmul.f32 0.35355338, %v5081_v41 }
 0x452   : > { %1775 = vrot.lane.b32.xlu1 %v5081_v41, %s4838_s7 }
 0x456   : > { %1942 = vrot.lane.b32.xlu1 %v5081_v41, %s4839_s8 }
 0x45a   : > { %2109 = vrot.lane.b32.xlu1 %v5081_v41, %s4840_s9 }
 0x45e   : > { %1773 = vrot.lane.b32.xlu1 %v5092_v43, %s4841_s10 }
 0x460   : > { %v4309_v46 = vpop.f32.mrf.mxu1 }
 0x461   : > { %v1088_v47 = vadd.f32 %v4309_v46, %v4073_v45 }
 0x462   : > { %v1082_v23 = vpop.f32.mrf.mxu1  ;;  %1940 = vrot.lane.b32.xlu1 %v5092_v43, %s4842_s11 }
 0x463   : > { %v1083_v34 = vadd.f32 %v4073_v45, %v1082_v23  ;;  %v1125_v24 = vsel %vm1123_vm8, %v1088_v47, 0.0  ;;  %v5108_v48 = vsel %vm1301_vm9, %v1088_v47, 0.0  ;;  %v5113_v50 = vsel %vm1383_vm11, %v1088_v47, 0.0 }
 0x464   : > { %v1136_v49 = vsel %vm1132_vm10, %v1125_v24, 0.0  ;;  %v1221_v18 = vsel %vm1219_vm12, %v1088_v47, 0.0 }
 0x465   : > { %1137 = vadd.xlane.f32.xlu0 %v1136_v49  ;;  %v5117_v51 = vsel %vm1383_vm11, %v1083_v34, 0.0  ;;  %v1220_v16 = vsel %vm1219_vm12, %v1083_v34, 0.0  ;;  %v1231_v20 = vsel %vm1132_vm10, %v1221_v18, 0.0  ;;  %v1124_v21 = vsel %vm1123_vm8, %v1083_v34, 0.0 }
 0x466   : > { %2107 = vrot.lane.b32.xlu1 %v5092_v43, %s4843_s12  ;;  %v1228_v17 = vsel %vm1132_vm10, %v1220_v16, 0.0  ;;  %v1133_v25 = vsel %vm1132_vm10, %v1124_v21, 0.0  ;;  %v1302_v54 = vsel %vm1301_vm9, %v1083_v34, 0.0 }
 0x467   : > { %v4312_v52 = vpop.f32.mrf.mxu1 }
 0x468   : > { %v1098_v53 = vadd.f32 %v4312_v52, %v4073_v45 }
 0x469   : > { %v1092_v55 = vpop.f32.mrf.mxu1 }
 0x46a   : > { %v1093_v57 = vadd.f32 %v4073_v45, %v1092_v55  ;;  %v5123_v58 = vsel %vm1301_vm9, %v1098_v53, 0.0  ;;  %v5127_v61 = vsel %vm1383_vm11, %v1098_v53, 0.0  ;;  %v1127_v56 = vsel %vm1123_vm8, %v1098_v53, 0.0 }
 0x46b   : > { %v4315_v60 = vpop.f32.mrf.mxu1  ;;  %v1142_v9 = vsel %vm1132_vm10, %v1127_v56, 0.0  ;;  %v1223_v42 = vsel %vm1219_vm12, %v1098_v53, 0.0  ;;  %v1313_v53 = vsel %vm1132_vm10, %v5108_v48, 0.0 }
 0x46c   : > { %v1108_v62 = vadd.f32 %v4315_v60, %v4073_v45  ;;  %v1126_v63 = vsel %vm1123_vm8, %v1093_v57, 0.0  ;;  %v5133_v1 = vsel %vm1301_vm9, %v1093_v57, 0.0  ;;  %v5138_v4 = vsel %vm1383_vm11, %v1093_v57, 0.0 }
 0x46d   : > { %v1139_v2 = vsel %vm1132_vm10, %v1126_v63, 0.0  ;;  %v1102_v3 = vpop.f32.mrf.mxu1  ;;  %v1222_v38 = vsel %vm1219_vm12, %v1093_v57, 0.0  ;;  %v1237_v47 = vsel %vm1132_vm10, %v1223_v42, 0.0  ;;  %v1316_v57 = vsel %vm1132_vm10, %v5133_v1, 0.0 }
 0x46e   : > { %1140 = vadd.xlane.f32.xlu0 %v1139_v2  ;;  %v1103_v5 = vadd.f32 %v4073_v45, %v1102_v3  ;;  %v5144_v59 = vsel %vm1301_vm9, %v1108_v62, 0.0  ;;  %v5157_v8 = vsel %vm1383_vm11, %v1108_v62, 0.0  ;;  %v1129_v12 = vsel %vm1123_vm8, %v1108_v62, 0.0 }
 0x46f   : > { %v1148_v15 = vsel %vm1132_vm10, %v1129_v12, 0.0  ;;  %v1234_v40 = vsel %vm1132_vm10, %v1222_v38, 0.0  ;;  %v1225_v23 = vsel %vm1219_vm12, %v1108_v62, 0.0  ;;  %v1392_v60 = vsel %vm1132_vm10, %v5117_v51, 0.0 }
 0x470   : > { %v1306_v6 = vsel %vm1301_vm9, %v1103_v5, 0.0  ;;  %v5150_v7 = vsel %vm1383_vm11, %v1103_v5, 0.0  ;;  %v1128_v10 = vsel %vm1123_vm8, %v1103_v5, 0.0  ;;  %v1224_v33 = vsel %vm1219_vm12, %v1103_v5, 0.0 }
 0x471   : > { %v1145_v11 = vsel %vm1132_vm10, %v1128_v10, 0.0  ;;  %v1240_v39 = vsel %vm1132_vm10, %v1224_v33, 0.0  ;;  %v1243_v49 = vsel %vm1132_vm10, %v1225_v23, 0.0  ;;  %v1322_v55 = vsel %vm1132_vm10, %v1306_v6, 0.0 }
 0x472   : > { %1143 = vadd.xlane.f32.xlu0 %v1142_v9  ;;  %v1319_v63 = vsel %vm1132_vm10, %v5123_v58, 0.0  ;;  %v1325_v1 = vsel %vm1132_vm10, %v5144_v59, 0.0  ;;  %v1395_v5 = vsel %vm1132_vm10, %v5113_v50, 0.0  ;;  %v1404_v59 = vsel %vm1132_vm10, %v5150_v7, 0.0 }
 0x473   : > { %v1398_v6 = vsel %vm1132_vm10, %v5138_v4, 0.0  ;;  %v1401_v50 = vsel %vm1132_vm10, %v5127_v61, 0.0  ;;  %v1407_v4 = vsel %vm1132_vm10, %v5157_v8, 0.0 }
 0x476   : > { %1146 = vadd.xlane.f32.xlu0 %v1145_v11 }
 0x47a   : > { %1149 = vadd.xlane.f32.xlu0 %v1148_v15 }
 0x47e   : > { %1229 = vadd.xlane.f32.xlu0 %v1228_v17 }
 0x482   : > { %1232 = vadd.xlane.f32.xlu0 %v1231_v20 }
 0x48a   : > { %1134 = vadd.xlane.f32.xlu1 %v1133_v25 }
 0x4a1   : > { %v4318_v22 = vpop.f32.mrf.mxu1 }
 0x4a2   : > { %v5173_v26 = vadd.f32 %v4318_v22, %v4073_v45 }
 0x4a3   : > { %v1112_v27 = vpop.f32.mrf.mxu1 }
 0x4a4   : > { %v1113_v28 = vadd.f32 %v4073_v45, %v1112_v27  ;;  %v1131_v29 = vsel %vm1123_vm8, %v5173_v26, 0.0  ;;  %v1310_v45 = vsel %vm1132_vm10, %v1302_v54, 0.0  ;;  %v1227_v24 = vsel %vm1219_vm12, %v5173_v26, 0.0 }
 0x4a5   : > { %v1154_v31 = vsel %vm1132_vm10, %v1131_v29, 0.0  ;;  %v1249_v52 = vsel %vm1132_vm10, %v1227_v24, 0.0  ;;  %v1309_v51 = vsel %vm1301_vm9, %v5173_v26, 0.0  ;;  %v1391_v61 = vsel %vm1383_vm11, %v5173_v26, 0.0 }
 0x4a6   : > { %1155 = vadd.xlane.f32.xlu1 %v1154_v31  ;;  %v1130_v32 = vsel %vm1123_vm8, %v1113_v28, 0.0  ;;  %v1226_v46 = vsel %vm1219_vm12, %v1113_v28, 0.0  ;;  %v1308_v62 = vsel %vm1301_vm9, %v1113_v28, 0.0  ;;  %v1331_v58 = vsel %vm1132_vm10, %v1309_v51, 0.0 }
 0x4a7   : > { %v1151_v37 = vsel %vm1132_vm10, %v1130_v32, 0.0  ;;  %v1246_v34 = vsel %vm1132_vm10, %v1226_v46, 0.0  ;;  %v1328_v48 = vsel %vm1132_vm10, %v1308_v62, 0.0  ;;  %v1413_v12 = vsel %vm1132_vm10, %v1391_v61, 0.0 }
 0x4a8   : > { %1152 = vadd.xlane.f32.xlu0 %v1151_v37  ;;  %v5270_v54 = vsub.s32 %v5095_v44, %v4996_v35  ;;  %vm1215_vm9 = vcmask 1047559  }
 0x4aa   : > { %1241 = vadd.xlane.f32.xlu1 %v1240_v39 }
 0x4ac   : > { %1235 = vadd.xlane.f32.xlu0 %v1234_v40 }
 0x4ae   : > { %1311 = vadd.xlane.f32.xlu1 %v1310_v45 }
 0x4b0   : > { %1238 = vadd.xlane.f32.xlu0 %v1237_v47 }
 0x4b2   : > { %1247 = vadd.xlane.f32.xlu1 %v1246_v34 }
 0x4b4   : > { %1244 = vadd.xlane.f32.xlu0 %v1243_v49 }
 0x4b6   : > { %1250 = vadd.xlane.f32.xlu1 %v1249_v52 }
 0x4b8   : > { %1314 = vadd.xlane.f32.xlu0 %v1313_v53  ;;  %v273_v53 = vld [vmem:[%s5286_s16] sm:$0x1] }
 0x4b9   : > { %vm276_vm2 = vcmp.gt.f32.partialorder %v273_v53, 0.0 }
 0x4ba   : > { %1323 = vadd.xlane.f32.xlu1 %v1322_v55 }
 0x4bc   : > { %1317 = vadd.xlane.f32.xlu0 %v1316_v57 }
 0x4be   : > { %1393 = vadd.xlane.f32.xlu1 %v1392_v60 }
 0x4c0   : > { %v1607_v2 = vpop.permute.xlu1 %1606  ;;  %1320 = vadd.xlane.f32.xlu0 %v1319_v63  ;;  %v4844_v63 = vmov 0  }
 0x4c1   : > { %4331 = vmatpush3.xpose.msk.msra.mxu1 %vm1608_vm13, %v1607_v2  ;;  %v1157_v2 = vsel %vm276_vm2, 1, %v4844_v63 }
 0x4c2   : > { %1329 = vadd.xlane.f32.xlu1 %v1328_v48  ;;  %4340 = vmatprep.subr.mxu1 %v4831_v0 }
 0x4c4   : > { %v1776_v3 = vpop.permute.xlu1 %1775  ;;  %4333 = vmatmul.mubr.msk.f32.vlgmr.msra.gmra.mxu1 %vm1608_vm13, %v5092_v43  ;;  %1326 = vadd.xlane.f32.xlu0 %v1325_v1  ;;  %v1390_v43 = vsel %vm1383_vm11, %v1113_v28, 0.0  ;;  %vm2288_vm11 = vcmask 195584  }
 0x4c5   : > { %4341 = vmatpush3.xpose.msk.msra.mxu1 %vm1608_vm13, %v1776_v3  ;;  %4342 = vmatprep.mubr.msk.f32.mxu1 %vm4832_vm0, %v4831_v0  ;;  %v1410_v10 = vsel %vm1132_vm10, %v1390_v43, 0.0  ;;  %v1161_v3 = vrot.slane %v1157_v2, %v4999_v36 }
 0x4c6   : > { %1332 = vadd.xlane.f32.xlu1 %v1331_v58  ;;  %4350 = vmatprep.subr.mxu1 %v4831_v0 }
 0x4c7   : > { %vm5304_vm10 = vcmp.eq.s32.totalorder %v1161_v3, 1 }
 0x4c8   : > { %v1943_v56 = vpop.permute.xlu1 %1942  ;;  %1396 = vadd.xlane.f32.xlu0 %v1395_v5 }
 0x4ca   : > { %1405 = vadd.xlane.f32.xlu1 %v1404_v59 }
 0x4cc   : > { %v2110_v9 = vpop.permute.xlu1 %2109  ;;  %1399 = vadd.xlane.f32.xlu0 %v1398_v6 }
 0x4ce   : > { %1411 = vadd.xlane.f32.xlu1 %v1410_v10 }
 0x4d0   : > { %v1774_v11 = vpop.permute.xlu1 %1773  ;;  %1402 = vadd.xlane.f32.xlu0 %v1401_v50 }
 0x4d1   : > { %4343 = vmatmul.mubr.msk.f32.vlgmr.msra.gmra.mxu1 %vm1608_vm13, %v1774_v11 }
 0x4d2   : > { %4351 = vmatpush3.xpose.msk.msra.mxu1 %vm1608_vm13, %v1943_v56  ;;  %4352 = vmatprep.mubr.msk.f32.mxu1 %vm4832_vm0, %v4831_v0 }
 0x4d3   : > { %4360 = vmatprep.subr.mxu1 %v4831_v0 }
 0x4d4   : > { %v1941_v7 = vpop.permute.xlu1 %1940  ;;  %1408 = vadd.xlane.f32.xlu0 %v1407_v4 }
 0x4d5   : > { %4353 = vmatmul.mubr.msk.f32.vlgmr.msra.gmra.mxu1 %vm1608_vm13, %v1941_v7 }
 0x4d6   : > { %4361 = vmatpush3.xpose.msk.msra.mxu1 %vm1608_vm13, %v2110_v9  ;;  %4362 = vmatprep.mubr.msk.f32.mxu1 %vm4832_vm0, %v4831_v0 }
 0x4d7   : > { %4370 = vmatprep.subr.mxu1 %v4831_v0 }
 0x4d8   : > { %v2108_v15 = vpop.permute.xlu1 %2107  ;;  %1414 = vadd.xlane.f32.xlu0 %v1413_v12 }
 0x4d9   : > { %4363 = vmatmul.mubr.msk.f32.vlgmr.msra.gmra.mxu1 %vm1608_vm13, %v2108_v15 }
 0x4da   : > { %4378 = vmatprep.mubr.msk.f32.mxu1 %vm4832_vm0, %v4831_v0 }
 0x4ee   : > { %v1138_v8 = vpop.xlane.xlu0 %1137 }
 0x4ef   : > { %v1178_v46 = vrot.slane %v1138_v8, %v5270_v54 }
 0x4f7   : > { %v1141_v16 = vpop.xlane.xlu0 %1140 }
 0x4f8   : > { %v1182_v23 = vrot.slane %v1141_v16, %v5270_v54 }
 0x4fb   : > { %v1144_v17 = vpop.xlane.xlu0 %1143 }
 0x4fc   : > { %v1186_v52 = vrot.slane %v1144_v17, %v5270_v54 }
 0x4ff   : > { %v1147_v18 = vpop.xlane.xlu0 %1146 }
 0x500   : > { %v1190_v57 = vrot.slane %v1147_v18, %v5270_v54 }
 0x503   : > { %v1150_v20 = vpop.xlane.xlu0 %1149 }
 0x504   : > { %v1194_v1 = vrot.slane %v1150_v20, %v5270_v54 }
 0x507   : > { %v1230_v21 = vpop.xlane.xlu0 %1229 }
 0x508   : > { %v1263_v50 = vrot.slane %v1230_v21, %v5270_v54 }
 0x50b   : > { %v1233_v25 = vpop.xlane.xlu0 %1232 }
 0x50c   : > { %v1267_v59 = vrot.slane %v1233_v25, %v5270_v54 }
 0x50e   : > { %v1292_v7 = vsel %vm1203_vm14, %v1267_v59, %v1263_v50 }
 0x513   : > { %v1135_v27 = vpop.xlane.xlu1 %1134 }
 0x514   : > { %v1174_v42 = vrot.slane %v1135_v27, %v5270_v54 }
 0x516   : > { %v1204_v47 = vsel %vm1203_vm14, %v1178_v46, %v1174_v42 }
 0x517   : > { %v1206_v49 = vsel %vm1205_vm15, %v1182_v23, %v1204_v47 }
 0x518   : > { %v1208_v55 = vsel %vm1207_vm1, %v1186_v52, %v1206_v49 }
 0x519   : > { %v1210_v51 = vsel %vm1209_vm3, %v1190_v57, %v1208_v55 }
 0x51a   : > { %v1212_v58 = vsel %vm1211_vm5, %v1194_v1, %v1210_v51 }
 0x52f   : > { %v1156_v29 = vpop.xlane.xlu1 %1155 }
 0x530   : > { %v1202_v43 = vrot.slane %v1156_v29, %v5270_v54 }
 0x531   : > { %v1153_v22 = vpop.xlane.xlu0 %1152 }
 0x532   : > { %v1198_v48 = vrot.slane %v1153_v22, %v5270_v54 }
 0x533   : > { %v5262_v32 = vpop.xlane.xlu1 %1241 }
 0x534   : > { %v1214_v56 = vsel %vm1213_vm6, %v1198_v48, %v1212_v58 }
 0x535   : > { %v1236_v26 = vpop.xlane.xlu0 %1235  ;;  %v5311_v4 = vsel %vm1215_vm9, %v1202_v43, %v1214_v56 }
 0x536   : > { %v1271_v9 = vrot.slane %v1236_v26, %v5270_v54  ;;  %v1218_v16 = vsel %vm5304_vm10, -inf, %v5311_v4  ;;  %v1279_v26 = vrot.slane %v5262_v32, %v5270_v54 }
 0x537   : > { %v1312_v37 = vpop.xlane.xlu1 %1311 }
 0x538   : > { %v1293_v12 = vsel %vm1205_vm15, %v1271_v9, %v1292_v7  ;;  %v1345_v17 = vrot.slane %v1312_v37, %v5270_v54 }
 0x539   : > { %v1239_v28 = vpop.xlane.xlu0 %1238 }
 0x53a   : > { %v1275_v11 = vrot.slane %v1239_v28, %v5270_v54 }
 0x53b   : > { %v5266_v39 = vpop.xlane.xlu1 %1247 }
 0x53c   : > { %v1294_v18 = vsel %vm1207_vm1, %v1275_v11, %v1293_v12  ;;  %v1287_v46 = vrot.slane %v5266_v39, %v5270_v54 }
 0x53d   : > { %v5260_v31 = vpop.xlane.xlu0 %1244 }
 0x53e   : > { %v1283_v20 = vrot.slane %v5260_v31, %v5270_v54 }
 0x53f   : > { %v5275_v45 = vpop.xlane.xlu1 %1250 }
 0x540   : > { %v1291_v52 = vrot.slane %v5275_v45, %v5270_v54 }
 0x541   : > { %v1315_v33 = vpop.xlane.xlu0 %1314 }
 0x542   : > { %v1349_v61 = vrot.slane %v1315_v33, %v5270_v54  ;;  %v1295_v33 = vsel %vm1209_vm3, %v1279_v26, %v1294_v18 }
 0x543   : > { %v5288_v24 = vpop.xlane.xlu1 %1323 }
 0x544   : > { %v1374_v28 = vsel %vm1203_vm14, %v1349_v61, %v1345_v17  ;;  %v1361_v47 = vrot.slane %v5288_v24, %v5270_v54 }
 0x545   : > { %v5264_v38 = vpop.xlane.xlu0 %1317 }
 0x546   : > { %v1353_v15 = vrot.slane %v5264_v38, %v5270_v54  ;;  %v1296_v38 = vsel %vm1211_vm5, %v1283_v20, %v1295_v33 }
 0x547   : > { %v1394_v62 = vpop.xlane.xlu1 %1393 }
 0x548   : > { %v1375_v37 = vsel %vm1205_vm15, %v1353_v15, %v1374_v28  ;;  %v1427_v53 = vrot.slane %v1394_v62, %v5270_v54 }
 0x549   : > { %v5272_v40 = vpop.xlane.xlu0 %1320 }
 0x54a   : > { %v1357_v21 = vrot.slane %v5272_v40, %v5270_v54 }
 0x54b   : > { %v1330_v6 = vpop.xlane.xlu1 %1329 }
 0x54c   : > { %v1376_v40 = vsel %vm1207_vm1, %v1357_v21, %v1375_v37  ;;  %v1369_v24 = vrot.slane %v1330_v6, %v5270_v54 }
 0x54d   : > { %v5280_v34 = vpop.xlane.xlu0 %1326  ;;  %v1377_v57 = vsel %vm1209_vm3, %v1361_v47, %v1376_v40 }
 0x54e   : > { %v1365_v42 = vrot.slane %v5280_v34, %v5270_v54 }
 0x54f   : > { %v1333_v25 = vpop.xlane.xlu1 %1332 }
 0x550   : > { %v1378_v39 = vsel %vm1211_vm5, %v1365_v42, %v1377_v57  ;;  %v1373_v48 = vrot.slane %v1333_v25, %v5270_v54 }
 0x551   : > { %v1397_v60 = vpop.xlane.xlu0 %1396  ;;  %v1379_v58 = vsel %vm1213_vm6, %v1369_v24, %v1378_v39 }
 0x552   : > { %v1431_v32 = vrot.slane %v1397_v60, %v5270_v54  ;;  %v1297_v60 = vsel %vm1213_vm6, %v1287_v46, %v1296_v38  ;;  %v5373_v11 = vsel %vm1215_vm9, %v1373_v48, %v1379_v58 }
 0x553   : > { %v1406_v55 = vpop.xlane.xlu1 %1405  ;;  %v5360_v51 = vsel %vm1215_vm9, %v1291_v52, %v1297_v60  ;;  %v1382_v15 = vsel %vm5304_vm10, -inf, %v5373_v11 }
 0x554   : > { %v1456_v63 = vsel %vm1203_vm14, %v1431_v32, %v1427_v53  ;;  %v1443_v1 = vrot.slane %v1406_v55, %v5270_v54  ;;  %v1300_v59 = vsel %vm5304_vm10, -inf, %v5360_v51  ;;  %vm2502_vm14 = vcmask 523264  }
 0x555   : > { %v1400_v5 = vpop.xlane.xlu0 %1399 }
 0x556   : > { %v1435_v23 = vrot.slane %v1400_v5, %v5270_v54 }
 0x557   : > { %v1412_v5 = vpop.xlane.xlu1 %1411 }
 0x558   : > { %v1457_v2 = vsel %vm1205_vm15, %v1435_v23, %v1456_v63  ;;  %v1451_v7 = vrot.slane %v1412_v5, %v5270_v54 }
 0x559   : > { %v1403_v8 = vpop.xlane.xlu0 %1402 }
 0x55a   : > { %v1439_v34 = vrot.slane %v1403_v8, %v5270_v54 }
 0x55c   : > { %v1458_v45 = vsel %vm1207_vm1, %v1439_v34, %v1457_v2  ;;  %vm3671_vm1 = vcmask 203968  }
 0x55d   : > { %v1409_v49 = vpop.xlane.xlu0 %1408  ;;  %v1459_v56 = vsel %vm1209_vm3, %v1443_v1, %v1458_v45 }
 0x55e   : > { %v1447_v62 = vrot.slane %v1409_v49, %v5270_v54 }
 0x560   : > { %v1460_v6 = vsel %vm1211_vm5, %v1447_v62, %v1459_v56 }
 0x561   : > { %v1415_v3 = vpop.xlane.xlu0 %1414 }
 0x562   : > { %v1455_v9 = vrot.slane %v1415_v3, %v5270_v54 }
 0x584   : > { %v1680_v22 = vpop.f32.mrf.mxu1 }
 0x585   : > { %v5329_v27 = vadd.f32 %v1680_v22, %v1218_v16  ;;  %v1461_v16 = vsel %vm1213_vm6, %v1451_v7, %v1460_v6 }
 0x586   : > { %v4334_v29 = vpop.f32.mrf.mxu1  ;;  %v5385_v18 = vsel %vm1215_vm9, %v1455_v9, %v1461_v16 }
 0x587   : > { %v1684_v31 = vsel %vm1608_vm13, %v5329_v27, -inf  ;;  %v1464_v21 = vsel %vm5304_vm10, -inf, %v5385_v18 }
 0x588   : > { %1685 = vmax.xlane.f32.xlu1 %v1684_v31 }
 0x591   : > { %v1847_v43 = vpop.f32.mrf.mxu1 }
 0x592   : > { %v5370_v50 = vadd.f32 %v1847_v43, %v1300_v59 }
 0x593   : > { %v4344_v61 = vpop.f32.mrf.mxu1 }
 0x594   : > { %v1851_v12 = vsel %vm1608_vm13, %v5370_v50, -inf }
 0x595   : > { %v2014_v8 = vpop.f32.mrf.mxu1  ;;  %1852 = vmax.xlane.f32.xlu0 %v1851_v12 }
 0x596   : > { %v5382_v17 = vadd.f32 %v2014_v8, %v1382_v15 }
 0x597   : > { %v4354_v20 = vpop.f32.mrf.mxu1 }
 0x598   : > { %v2018_v54 = vsel %vm1608_vm13, %v5382_v17, -inf }
 0x599   : > { %v2181_v25 = vpop.f32.mrf.mxu1  ;;  %2019 = vmax.xlane.f32.xlu1 %v2018_v54 }
 0x59a   : > { %v5392_v22 = vadd.f32 %v2181_v25, %v1464_v21 }
 0x59b   : > { %v4364_v26 = vpop.f32.mrf.mxu1 }
 0x59c   : > { %v2185_v28 = vsel %vm1608_vm13, %v5392_v22, -inf  ;;  %v2293_v26 = vld [vmem:[#allocation2 + $0xf0] sm:$0xff] }
 0x59d   : > { %2186 = vmax.xlane.f32.xlu0 %v2185_v28  ;;  %4371 = vmatpush3.msra.mxu1 %v2293_v26  ;;  %v2489_v26 = vld [vmem:[#allocation2 + $0x138] sm:$0xff] }
 0x59e   : > { %4372 = vmatprep.subr.mxu1 %v4831_v0 }
 0x5aa   : > { %1697 = vrot.lane.b32.xlu1 %v5081_v41, %s4845_s17 }
 0x611   : > { %v1686_v29 = vpop.xlane.xlu1 %1685 }
 0x612   : > { %v1687_v33 = vmax.f32 %v1686_v29, -1e+30  ;;  %v2292_v29 = vld [vmem:[#allocation2 + $0xe8] sm:$0xff] }
 0x613   : > { %4373 = vmatpush3.msra.mxu1 %v2292_v29 }
 0x614   : > { %v1688_v37 = vsub.f32 %v5329_v27, %v1687_v33  ;;  %v2291_v33 = vld [vmem:[#allocation2 + $0xe0] sm:$0xff]  ;;  %4374 = vmatprep.subr.mxu1 %v4831_v0 }
 0x615   : > { %4375 = vmatpush3.msra.mxu1 %v2291_v33 }
 0x616   : > { %v1689_v31 = vmul.f32 1.442695, %v1688_v37  ;;  %4376 = vmatprep.subr.mxu1 %v4831_v0  ;;  %v2290_v37 = vld [vmem:[#allocation2 + $0xd8] sm:$0xff] }
 0x617   : > { %4377 = vmatpush3.msra.mxu1 %v2290_v37 }
 0x618   : > { %4647 = vpow2.f32 %v1689_v31  ;;  %4392 = vmatprep.subr.mxu1 %v4831_v0 }
 0x61e   : > { %v1853_v38 = vpop.xlane.xlu0 %1852 }
 0x61f   : > { %v1854_v40 = vmax.f32 %v1853_v38, -1e+30 }
 0x621   : > { %v1855_v42 = vsub.f32 %v5370_v50, %v1854_v40 }
 0x622   : > { %v2020_v32 = vpop.xlane.xlu1 %2019 }
 0x623   : > { %v1856_v46 = vmul.f32 1.442695, %v1855_v42  ;;  %v2021_v47 = vmax.f32 %v2020_v32, -1e+30 }
 0x625   : > { %v4648_v23 = vpop.eup %4647  ;;  %4649 = vpow2.f32 %v1856_v46  ;;  %v2022_v49 = vsub.f32 %v5382_v17, %v2021_v47 }
 0x626   : > { %v1698_v52 = vpop.permute.xlu1 %1697  ;;  %v2187_v53 = vpop.xlane.xlu0 %2186  ;;  %v1691_v55 = vsel %vm1608_vm13, %v4648_v23, 0.0 }
 0x627   : > { %v2023_v34 = vmul.f32 1.442695, %v2022_v49  ;;  %v2188_v57 = vmax.f32 %v2187_v53, -1e+30  ;;  %1692 = vadd.xlane.f32.xlu1 %v1691_v55  ;;  %4336 = vmatpush3.msra.mxu0 %v1698_v52 }
 0x628   : > { %4345 = vmatprep.subr.mxu0 %v4831_v0 }
 0x629   : > { %4651 = vpow2.f32 %v2023_v34  ;;  %v2189_v60 = vsub.f32 %v5392_v22, %v2188_v57  ;;  %v4100_v34 = vld [vmem:[#allocation2 + $0xf8] ss:$0 sm:$0xff] }
 0x62b   : > { %v2190_v39 = vmul.f32 1.442695, %v2189_v60 }
 0x62d   : > { %4653 = vpow2.f32 %v2190_v39 }
 0x632   : > { %v4650_v63 = vpop.eup %4649 }
 0x633   : > { %v1858_v24 = vsel %vm1608_vm13, %v4650_v63, 0.0 }
 0x634   : > { %1859 = vadd.xlane.f32.xlu0 %v1858_v24 }
 0x636   : > { %v4652_v2 = vpop.eup %4651 }
 0x637   : > { %v2025_v48 = vsel %vm1608_vm13, %v4652_v2, 0.0 }
 0x638   : > { %2026 = vadd.xlane.f32.xlu1 %v2025_v48 }
 0x63a   : > { %v4654_v45 = vpop.eup %4653 }
 0x63b   : > { %v2192_v62 = vsel %vm1608_vm13, %v4654_v45, 0.0 }
 0x63c   : > { %2193 = vadd.xlane.f32.xlu0 %v2192_v62 }
 0x649   : > { %2031 = vrot.lane.b32.xlu1 %v5081_v41, %s4846_s23 }
 0x64d   : > { %2198 = vrot.lane.b32.xlu1 %v5081_v41, %s4847_s26 }
 0x652   : > { %1864 = vrot.lane.b32.xlu0 %v5081_v41, %s4848_s30 }
 0x6b0   : > { %v1693_v1 = vpop.xlane.xlu1 %1692 }
 0x6b1   : > { %v1694_v3 = vadd.f32 1e-30, %v1693_v1 }
 0x6b3   : > { %4655 = vrcp.f32 %v1694_v3  ;;  %v2401_v3 = vld [vmem:[#allocation2 + $0x128] sm:$0xff] }
 0x6bd   : > { %v1860_v58 = vpop.xlane.xlu0 %1859 }
 0x6be   : > { %v1861_v5 = vadd.f32 1e-30, %v1860_v58  ;;  %v2400_v58 = vld [vmem:[#allocation2 + $0x120] sm:$0xff] }
 0x6c0   : > { %v4656_v56 = vpop.eup %4655  ;;  %4657 = vrcp.f32 %v1861_v5  ;;  %v2399_v5 = vld [vmem:[#allocation2 + $0x118] sm:$0xff] }
 0x6c1   : > { %v2027_v59 = vpop.xlane.xlu1 %2026  ;;  %v1696_v43 = vmul.f32 %v4656_v56, %v4648_v23 }
 0x6c2   : > { %v2028_v6 = vadd.f32 1e-30, %v2027_v59 }
 0x6c3   : > { %4338 = vmatmul.mubr.msk.f32.vlgmr.msra.gmra.mxu0 %vm1608_vm13, %v1696_v43 }
 0x6c4   : > { %4659 = vrcp.f32 %v2028_v6  ;;  %4347 = vmatprep.mubr.msk.f32.mxu0 %vm4832_vm0, %v4831_v0 }
 0x6c5   : > { %v2194_v9 = vpop.xlane.xlu0 %2193  ;;  %v2032_v12 = vpop.permute.xlu1 %2031 }
 0x6c6   : > { %v2195_v7 = vadd.f32 1e-30, %v2194_v9  ;;  %v4102_v9 = vld [vmem:[#allocation2 + $0x100] ss:$0 sm:$0xff] }
 0x6c8   : > { %4661 = vrcp.f32 %v2195_v7 }
 0x6c9   : > { %v1865_v41 = vpop.permute.xlu0 %1864  ;;  %v2199_v20 = vpop.permute.xlu1 %2198 }
 0x6ca   : > { %4346 = vmatpush3.msra.mxu0 %v1865_v41  ;;  %v4103_v41 = vld [vmem:[#allocation2 + $0x108] ss:$0 sm:$0xff] }
 0x6cb   : > { %4355 = vmatprep.subr.mxu0 %v4831_v0 }
 0x6cd   : > { %v4658_v61 = vpop.eup %4657 }
 0x6ce   : > { %v1863_v15 = vmul.f32 %v4658_v61, %v4650_v63 }
 0x6d0   : > { %4348 = vmatmul.mubr.msk.f32.vlgmr.msra.gmra.mxu0 %vm1608_vm13, %v1863_v15  ;;  %v2496_v15 = vld [vmem:[#allocation2 + $0x170] sm:$0xff] }
 0x6d1   : > { %v4660_v8 = vpop.eup %4659  ;;  %4356 = vmatpush3.msra.mxu0 %v2032_v12  ;;  %4357 = vmatprep.mubr.msk.f32.mxu0 %vm4832_vm0, %v4831_v0 }
 0x6d2   : > { %4365 = vmatprep.subr.mxu0 %v4831_v0  ;;  %v2030_v16 = vmul.f32 %v4660_v8, %v4652_v2  ;;  %v2495_v8 = vld [vmem:[#allocation2 + $0x168] sm:$0xff] }
 0x6d4   : > { %4358 = vmatmul.mubr.msk.f32.vlgmr.msra.gmra.mxu0 %vm1608_vm13, %v2030_v16  ;;  %v2494_v16 = vld [vmem:[#allocation2 + $0x160] sm:$0xff] }
 0x6d5   : > { %v4662_v54 = vpop.eup %4661  ;;  %4366 = vmatpush3.msra.mxu0 %v2199_v20  ;;  %4367 = vmatprep.mubr.msk.f32.mxu0 %vm4832_vm0, %v4831_v0  ;;  %v2493_v20 = vld [vmem:[#allocation2 + $0x158] sm:$0xff] }
 0x6d6   : > { %v2197_v21 = vmul.f32 %v4662_v54, %v4654_v45  ;;  %4381 = vmatprep.subr.mxu0 %v4831_v0  ;;  %v2492_v54 = vld [vmem:[#allocation2 + $0x150] sm:$0xff] }
 0x6d8   : > { %4368 = vmatmul.mubr.msk.f32.vlgmr.msra.gmra.mxu0 %vm1608_vm13, %v2197_v21  ;;  %v2491_v21 = vld [vmem:[#allocation2 + $0x148] sm:$0xff] }
 0x6d9   : > { %4389 = vmatprep.mubr.msk.f32.mxu0 %vm4832_vm0, %v4831_v0  ;;  %4382 = vmatpush3.msra.mxu0 %v2401_v3  ;;  %v2603_v3 = vld [vmem:[#allocation2 + $0x198] sm:$0xff] }
 0x6da   : > { %4383 = vmatprep.subr.mxu0 %v4831_v0 }
 0x6db   : > { %4384 = vmatpush3.msra.mxu0 %v2400_v58 }
 0x6dc   : > { %4385 = vmatprep.subr.mxu0 %v4831_v0 }
 0x6dd   : > { %4386 = vmatpush3.msra.mxu0 %v2399_v5 }
 0x6de   : > { %4387 = vmatprep.subr.mxu0 %v4831_v0 }
 0x783   : > { %v1769_v25 = vpop.f32.mrf.mxu0 }
 0x785   : > { %v4339_v28 = vpop.f32.mrf.mxu0 }
 0x786   : > { %v4104_v28 = vld [vmem:[#allocation2 + $0x130] ss:$0 sm:$0xff] }
 0x790   : > { %v1936_v31 = vpop.f32.mrf.mxu0 }
 0x791   : > { %2275 = vrot.lane.b32.xlu0 %v1936_v31, %s4849_s14 }
 0x792   : > { %v4349_v38 = vpop.f32.mrf.mxu0 }
 0x794   : > { %v2103_v40 = vpop.f32.mrf.mxu0 }
 0x795   : > { %2279 = vrot.lane.b32.xlu1 %v2103_v40, %s4850_s15 }
 0x796   : > { %v4359_v42 = vpop.f32.mrf.mxu0 }
 0x798   : > { %v2270_v32 = vpop.f32.mrf.mxu0 }
 0x799   : > { %2283 = vrot.lane.b32.xlu0 %v2270_v32, %s4851_s25 }
 0x79a   : > { %v4369_v46 = vpop.f32.mrf.mxu0 }
 0x803   : > { %v2276_v47 = vpop.permute.xlu0 %2275 }
 0x804   : > { %v2286_v49 = vsel %vm1608_vm13, %v1769_v25, %v2276_v47  ;;  %v2490_v25 = vld [vmem:[#allocation2 + $0x140] sm:$0xff] }
 0x807   : > { %v2280_v23 = vpop.permute.xlu1 %2279 }
 0x808   : > { %v2287_v52 = vsel %vm783_vm7, %v2286_v49, %v2280_v23 }
 0x80b   : > { %v2284_v53 = vpop.permute.xlu0 %2283 }
 0x80c   : > { %v2289_v55 = vsel %vm2288_vm11, %v2287_v52, %v2284_v53  ;;  %v4106_v52 = vld [vmem:[#allocation2 + $0x178] ss:$0 sm:$0xff] }
 0x80d   : > { %4379 = vmatmul.mubr.msk.f32.vlgmr.msra.gmra.mxu1 %vm372_vm4, %v2289_v55 }
 0x80e   : > { %4408 = vmatprep.mubr.msk.f32.mxu1 %vm4832_vm0, %v4831_v0  ;;  %4393 = vmatpush3.msra.mxu1 %v2496_v15 }
 0x80f   : > { %4394 = vmatprep.subr.mxu1 %v4831_v0 }
 0x810   : > { %4395 = vmatpush3.msra.mxu1 %v2495_v8  ;;  %v5482_v8 = vld [vmem:[#allocation2 + $0x270] sm:$0x1] }
 0x811   : > { %4396 = vmatprep.subr.mxu1 %v4831_v0  ;;  %4508 = vpush %v5482_v8 }
 0x812   : > { %4397 = vmatpush3.msra.mxu1 %v2494_v16 }
 0x813   : > { %4398 = vmatprep.subr.mxu1 %v4831_v0 }
 0x814   : > { %4399 = vmatpush3.msra.mxu1 %v2493_v20 }
 0x815   : > { %4400 = vmatprep.subr.mxu1 %v4831_v0 }
 0x816   : > { %4401 = vmatpush3.msra.mxu1 %v2492_v54 }
 0x817   : > { %4402 = vmatprep.subr.mxu1 %v4831_v0 }
 0x818   : > { %4403 = vmatpush3.msra.mxu1 %v2491_v21 }
 0x819   : > { %4404 = vmatprep.subr.mxu1 %v4831_v0 }
 0x81a   : > { %4405 = vmatpush3.msra.mxu1 %v2490_v25 }
 0x81b   : > { %4406 = vmatprep.subr.mxu1 %v4831_v0 }
 0x81c   : > { %4407 = vmatpush3.msra.mxu1 %v2489_v26 }
 0x81d   : > { %4432 = vmatprep.subr.mxu1 %v4831_v0 }
 0x8cd   : > { %v2368_v57 = vpop.f32.mrf.mxu1 }
 0x8ce   : > { %v2369_v60 = vadd.f32 %v4100_v34, %v2368_v57 }
 0x8cf   : > { %v4380_v39 = vpop.f32.mrf.mxu1 }
 0x8d0   : > { %v5442_v63 = vadd.f32 %v2369_v60, %v5014_v14  ;;  %v2398_v14 = vld [vmem:[#allocation2 + $0x110] sm:$0xff] }
 0x8d1   : > { %4388 = vmatpush3.msra.mxu0 %v2398_v14 }
 0x8d2   : > { %v2375_v24 = vsel %vm372_vm4, %v5442_v63, 0.0  ;;  %4411 = vmatprep.subr.mxu0 %v4831_v0 }
 0x8d3   : > { %2376 = vadd.xlane.f32.xlu1 %v2375_v24 }
 0x95c   : > { %v2377_v2 = vpop.xlane.xlu1 %2376 }
 0x95d   : > { %v2378_v48 = vmul.f32 0.03125, %v2377_v2 }
 0x95f   : > { %v2379_v45 = vsub.f32 %v5442_v63, %v2378_v48 }
 0x961   : > { %v2380_v62 = vmul.f32 %v2379_v45, %v2379_v45 }
 0x963   : > { %v2381_v1 = vsel %vm372_vm4, %v2380_v62, 0.0  ;;  %v2605_v62 = vld [vmem:[#allocation2 + $0x1a8] sm:$0xff] }
 0x964   : > { %2382 = vadd.xlane.f32.xlu0 %v2381_v1  ;;  %v2604_v1 = vld [vmem:[#allocation2 + $0x1a0] sm:$0xff] }
 0x9ed   : > { %v2383_v56 = vpop.xlane.xlu0 %2382 }
 0x9ee   : > { %v2384_v59 = vmul.f32 0.03125, %v2383_v56 }
 0x9f0   : > { %v2385_v43 = vadd.f32 1e-05, %v2384_v59  ;;  %v4108_v59 = vld [vmem:[#allocation2 + $0x180] ss:$0 sm:$0xff] }
 0x9f2   : > { %4663 = vrsqrt.f32 %v2385_v43 }
 0x9ff   : > { %v4664_v6 = vpop.eup %4663 }
 0xa00   : > { %v2387_v7 = vmul.f32 %v4664_v6, %v2379_v45  ;;  %v4109_v6 = vld [vmem:[#allocation2 + $0x188] ss:$0 sm:$0xff] }
 0xa02   : > { %v2392_v61 = vmul.f32 %v4102_v9, %v2387_v7 }
 0xa04   : > { %v2397_v12 = vadd.f32 %v4103_v41, %v2392_v61  ;;  %v4110_v41 = vld [vmem:[#allocation2 + $0x1b0] ss:$0 sm:$0xff] }
 0xa06   : > { %4390 = vmatmul.mubr.msk.f32.vlgmr.msra.gmra.mxu0 %vm372_vm4, %v2397_v12 }
 0xa07   : > { %4419 = vmatprep.mubr.msk.f32.mxu0 %vm4832_vm0, %v4831_v0  ;;  %4412 = vmatpush3.msra.mxu0 %v2605_v62 }
 0xa08   : > { %4413 = vmatprep.subr.mxu0 %v4831_v0 }
 0xa09   : > { %4414 = vmatpush3.msra.mxu0 %v2604_v1 }
 0xa0a   : > { %4415 = vmatprep.subr.mxu0 %v4831_v0 }
 0xa0b   : > { %4416 = vmatpush3.msra.mxu0 %v2603_v3 }
 0xa0c   : > { %4417 = vmatprep.subr.mxu0 %v4831_v0 }
 0xac6   : > { %v2476_v29 = vpop.f32.mrf.mxu0 }
 0xac7   : > { %v2477_v33 = vadd.f32 %v4104_v28, %v2476_v29 }
 0xac8   : > { %v4391_v37 = vpop.f32.mrf.mxu0 }
 0xac9   : > { %v2481_v31 = vmul.f32 0.044715, %v2477_v33  ;;  %v2480_v47 = vmul.f32 0.5, %v2477_v33 }
 0xacb   : > { %v2482_v38 = vmul.f32 %v2481_v31, %v2477_v33 }
 0xacd   : > { %v2483_v40 = vmul.f32 %v2482_v38, %v2477_v33 }
 0xacf   : > { %v2484_v42 = vadd.f32 %v2483_v40, %v2477_v33  ;;  %v5517_v33 = vld [vmem:[#allocation2 + $0x278] sm:$0x1] }
 0xad0   : > { %4510 = vpush %v5517_v33 }
 0xad1   : > { %v2485_v32 = vmul.f32 0.7978846, %v2484_v42 }
 0xad3   : > { %4665 = vtanh.f32 %v2485_v32  ;;  %v3716_v32 = vsel %vm5304_vm10, 0.0, %v5311_v4 }
 0xae0   : > { %v4666_v46 = vpop.eup %4665 }
 0xae1   : > { %v2487_v23 = vadd.f32 1.0, %v4666_v46 }
 0xae3   : > { %v2488_v49 = vmul.f32 %v2487_v23, %v2480_v47 }
 0xae5   : > { %4409 = vmatmul.mubr.msk.f32.vlgmr.msra.gmra.mxu1 %vm2502_vm14, %v2488_v49 }
 0xae6   : > { %4434 = vmatprep.mubr.msk.f32.mxu1 %vm4832_vm0, %v4831_v0 }
 0xba5   : > { %v2572_v53 = vpop.f32.mrf.mxu1 }
 0xba6   : > { %v2573_v55 = vadd.f32 %v4106_v52, %v2572_v53 }
 0xba7   : > { %v4410_v34 = vpop.f32.mrf.mxu1 }
 0xba8   : > { %v5467_v57 = vadd.f32 %v2573_v55, %v5442_v63  ;;  %v2602_v63 = vld [vmem:[#allocation2 + $0x190] sm:$0xff] }
 0xba9   : > { %4418 = vmatpush3.msra.mxu0 %v2602_v63 }
 0xbaa   : > { %v2579_v60 = vsel %vm372_vm4, %v5467_v57, 0.0  ;;  %4422 = vmatprep.subr.mxu0 %v4831_v0 }
 0xbab   : > { %2580 = vadd.xlane.f32.xlu0 %v2579_v60 }
 0xc34   : > { %v2581_v39 = vpop.xlane.xlu0 %2580 }
 0xc35   : > { %v2582_v24 = vmul.f32 0.03125, %v2581_v39 }
 0xc37   : > { %v2583_v2 = vsub.f32 %v5467_v57, %v2582_v24  ;;  %v3722_v24 = vsel %vm5304_vm10, 0.0, %v5373_v11  ;;  %v3725_v11 = vsel %vm5304_vm10, 0.0, %v5385_v18 }
 0xc39   : > { %v2584_v48 = vmul.f32 %v2583_v2, %v2583_v2 }
 0xc3b   : > { %v2585_v45 = vsel %vm372_vm4, %v2584_v48, 0.0 }
 0xc3c   : > { %2586 = vadd.xlane.f32.xlu1 %v2585_v45 }
 0xcc5   : > { %v2587_v58 = vpop.xlane.xlu1 %2586 }
 0xcc6   : > { %v2588_v5 = vmul.f32 0.03125, %v2587_v58 }
 0xcc8   : > { %v2589_v14 = vadd.f32 1e-05, %v2588_v5 }
 0xcca   : > { %4667 = vrsqrt.f32 %v2589_v14 }
 0xcd7   : > { %v4668_v56 = vpop.eup %4667 }
 0xcd8   : > { %v2591_v43 = vmul.f32 %v4668_v56, %v2583_v2 }
 0xcda   : > { %v2596_v9 = vmul.f32 %v4108_v59, %v2591_v43 }
 0xcdc   : > { %v2601_v7 = vadd.f32 %v4109_v6, %v2596_v9 }
 0xcde   : > { %4420 = vmatmul.mubr.msk.f32.vlgmr.msra.gmra.mxu0 %vm372_vm4, %v2601_v7 }
 0xcdf   : > { %4424 = vmatprep.mubr.msk.f32.mxu0 %vm4832_vm0, %v4831_v0 }
 0xd9e   : > { %v2680_v61 = vpop.f32.mrf.mxu0 }
 0xd9f   : > { %v5480_v12 = vadd.f32 %v4110_v41, %v2680_v61 }
 0xda0   : > { %v4421_v15 = vpop.f32.mrf.mxu0 }
 0xda1   : > { %2854 = vrot.lane.b32.xlu1 %v5480_v12, %s4838_s7  ;;  %2686 = vrot.lane.b32.xlu0 %v5480_v12, %s4837_s6  ;;  %v2684_v16 = vmul.f32 0.35355338, %v5480_v12  ;;  %s4503_s6 = smul.u32 72, %s4957_s13  ;;  %s4509_s13 = spop %4508 }
 0xda5   : > { %3021 = vrot.lane.b32.xlu0 %v5480_v12, %s4839_s8  ;;  %2852 = vrot.lane.b32.xlu1 %v2684_v16, %s4841_s10  ;;  %s4511_s10 = spop %4510 }
 0xda9   : > { %3188 = vrot.lane.b32.xlu0 %v5480_v12, %s4840_s9  ;;  %3019 = vrot.lane.b32.xlu1 %v2684_v16, %s4842_s11  ;;  %s5524_s9 = scalar_lea.vmem %s5786_s5, %s4503_s6  ;;  %s5658_s11 = sand.u32 1, %s4818_s19  }
 0xdaa   : > { %s3868_s7 = scalar_lea.sflag [#allocation4], %s5658_s11 }
 0xdad   : > { %3186 = vrot.lane.b32.xlu1 %v2684_v16, %s4843_s12  ;;  %s4050_s12 = sshll.u32 %s5658_s11, 3 }
 0xe13   : > { %v2855_v20 = vpop.permute.xlu1 %2854  ;;  %v2687_v54 = vpop.permute.xlu0 %2686 }
 0xe14   : > { %4423 = vmatpush3.xpose.msk.msra.mxu0 %vm1608_vm13, %v2687_v54  ;;  %4433 = vmatpush3.xpose.msk.msra.mxu1 %vm1608_vm13, %v2855_v20 }
 0xe15   : > { %4442 = vmatprep.subr.mxu1 %v4831_v0  ;;  %4427 = vmatprep.subr.mxu0 %v4831_v0 }
 0xe17   : > { %v3022_v21 = vpop.permute.xlu0 %3021  ;;  %v2853_v25 = vpop.permute.xlu1 %2852  ;;  %4425 = vmatmul.mubr.msk.f32.vlgmr.msra.gmra.mxu0 %vm1608_vm13, %v2684_v16 }
 0xe18   : > { %4435 = vmatmul.mubr.msk.f32.vlgmr.msra.gmra.mxu1 %vm1608_vm13, %v2853_v25  ;;  %4429 = vmatprep.mubr.msk.f32.mxu0 %vm4832_vm0, %v4831_v0 }
 0xe19   : > { %4443 = vmatpush3.xpose.msk.msra.mxu1 %vm1608_vm13, %v3022_v21  ;;  %4444 = vmatprep.mubr.msk.f32.mxu1 %vm4832_vm0, %v4831_v0 }
 0xe1a   : > { %4452 = vmatprep.subr.mxu1 %v4831_v0 }
 0xe1b   : > { %v3189_v26 = vpop.permute.xlu0 %3188  ;;  %v3020_v28 = vpop.permute.xlu1 %3019 }
 0xe1c   : > { %4445 = vmatmul.mubr.msk.f32.vlgmr.msra.gmra.mxu1 %vm1608_vm13, %v3020_v28 }
 0xe1d   : > { %4453 = vmatpush3.xpose.msk.msra.mxu1 %vm1608_vm13, %v3189_v26  ;;  %4454 = vmatprep.mubr.msk.f32.mxu1 %vm4832_vm0, %v4831_v0 }
 0xe1e   : > { %4462 = vmatprep.subr.mxu1 %v4831_v0 }
 0xe1f   : > { %v3187_v29 = vpop.permute.xlu1 %3186 }
 0xe20   : > { %4455 = vmatmul.mubr.msk.f32.vlgmr.msra.gmra.mxu1 %vm1608_vm13, %v3187_v29 }
 0xe21   : > { %4470 = vmatprep.mubr.msk.f32.mxu1 %vm4832_vm0, %v4831_v0 }
 0xed7   : > { %v2759_v37 = vpop.f32.mrf.mxu0 }
 0xed8   : > { %v5527_v31 = vadd.f32 %v2759_v37, %v5329_v27  ;;  %v2926_v38 = vpop.f32.mrf.mxu1  ;;  %v3798_v37 = vstv %s4509_s13  ;;  %s4854_s13 = smov [#allocation5]  }
 0xed9   : > { %v5530_v40 = vadd.f32 %v2926_v38, %v5370_v50  ;;  %v4426_v42 = vpop.f32.mrf.mxu0  ;;  %v3719_v50 = vsel %vm5304_vm10, 0.0, %v5360_v51 }
 0xeda   : > { %v3715_v46 = vsel %vm5304_vm10, 0.0, %v5527_v31  ;;  %3858 = vst.msk [vmem:[%s5524_s9] sm:$0xff] %vm1608_vm13, %v5527_v31  ;;  %v4436_v47 = vpop.f32.mrf.mxu1  ;;  %v2763_v27 = vsel %vm1608_vm13, %v5527_v31, -inf }
 0xedb   : > { %v3717_v23 = vsub.f32 %v3715_v46, %v3716_v32  ;;  %v3718_v4 = vsel %vm5304_vm10, 0.0, %v5530_v40  ;;  %3859 = vst.msk [vmem:[%s5524_s9 + $0x8] sm:$0xff] %vm1608_vm13, %v5530_v40  ;;  %2764 = vmax.xlane.f32.xlu0 %v2763_v27  ;;  %v2930_v49 = vsel %vm1608_vm13, %v5530_v40, -inf  ;;  %v3803_v47 = vstv %s4511_s10  ;;  %s4736_s10 = sshll.u32 %s4854_s13, 4  ;;  %s4737_s10 = int_to_ptr.vmem [resolvable:$false] %s4736_s10 }
 0xedc   : > { %v3720_v52 = vsub.f32 %v3718_v4, %v3719_v50  ;;  %2931 = vmax.xlane.f32.xlu1 %v2930_v49  ;;  %v3093_v53 = vpop.f32.mrf.mxu1 }
 0xedd   : > { %v3734_v55 = vmul.f32 %v3717_v23, %v3717_v23  ;;  %v5555_v34 = vadd.f32 %v3093_v53, %v5382_v17 }
 0xede   : > { %v3735_v51 = vmul.f32 %v3720_v52, %v3720_v52  ;;  %v3775_v60 = vadd.f32 %v3720_v52, %v3717_v23  ;;  %v4446_v39 = vpop.f32.mrf.mxu1 }
 0xedf   : > { %v3721_v2 = vsel %vm5304_vm10, 0.0, %v5555_v34  ;;  %3860 = vst.msk [vmem:[%s5524_s9 + $0x10] sm:$0xff] %vm1608_vm13, %v5555_v34  ;;  %v3097_v48 = vsel %vm1608_vm13, %v5555_v34, -inf }
 0xee0   : > { %v3736_v17 = vadd.f32 %v3735_v51, %v3734_v55  ;;  %v3723_v45 = vsub.f32 %v3721_v2, %v3722_v24  ;;  %v3260_v62 = vpop.f32.mrf.mxu1  ;;  %3098 = vmax.xlane.f32.xlu0 %v3097_v48 }
 0xee1   : > { %v3261_v1 = vadd.f32 %v3260_v62, %v5392_v22 }
 0xee2   : > { %v3737_v3 = vmul.f32 %v3723_v45, %v3723_v45  ;;  %v3776_v63 = vadd.f32 %v3775_v60, %v3723_v45  ;;  %v4456_v58 = vpop.f32.mrf.mxu1 }
 0xee3   : > { %v3724_v5 = vsel %vm5304_vm10, 0.0, %v3261_v1  ;;  %3861 = vst.msk [vmem:[%s5524_s9 + $0x18] sm:$0xff] %vm1608_vm13, %v3261_v1  ;;  %v3264_v14 = vsel %vm1608_vm13, %v3261_v1, -inf }
 0xee4   : > { %v3738_v56 = vadd.f32 %v3737_v3, %v3736_v17  ;;  %v3726_v59 = vsub.f32 %v3724_v5, %v3725_v11  ;;  %3265 = vmax.xlane.f32.xlu0 %v3264_v14 }
 0xee6   : > { %v3739_v43 = vmul.f32 %v3726_v59, %v3726_v59  ;;  %v3777_v6 = vadd.f32 %v3776_v63, %v3726_v59 }
 0xee8   : > { %v5577_v22 = vadd.f32 %v3739_v43, %v3738_v56  ;;  %v3778_v9 = vmul.f32 0.25, %v3777_v6 }
 0xeea   : > { %v3781_v7 = vsub.f32 %v3720_v52, %v3778_v9  ;;  %v3784_v41 = vsub.f32 %v3723_v45, %v3778_v9  ;;  %v3787_v61 = vsub.f32 %v3726_v59, %v3778_v9  ;;  %v3779_v15 = vsub.f32 %v3717_v23, %v3778_v9 }
 0xeec   : > { %v3782_v18 = vmul.f32 %v3781_v7, %v3781_v7  ;;  %v3780_v10 = vmul.f32 %v3779_v15, %v3779_v15  ;;  %v3785_v20 = vmul.f32 %v3784_v41, %v3784_v41  ;;  %v3788_v21 = vmul.f32 %v3787_v61, %v3787_v61 }
 0xeed   : > { %2776 = vrot.lane.b32.xlu1 %v5480_v12, %s4845_s17  ;;  %s4852_s17 = smov 126  }
 0xeee   : > { %v3783_v16 = vadd.f32 %v3782_v18, %v3780_v10 }
 0xef0   : > { %v3786_v54 = vadd.f32 %v3785_v20, %v3783_v16 }
 0xef2   : > { %v3789_v25 = vadd.f32 %v3788_v21, %v3786_v54 }
 0xef4   : > { %v3790_v26 = vmul.f32 0.25, %v3789_v25 }
 0xef6   : > { %v3791_v28 = vadd.f32 1e-05, %v3790_v26 }
 0xef8   : > { %4669 = vrsqrt.f32 %v3791_v28 }
 0xf05   : > { %v4670_v29 = vpop.eup %4669 }
 0xf06   : > { %v3795_v38 = vmul.f32 %v4670_v29, %v3779_v15  ;;  %v5581_v42 = vmul.f32 %v4670_v29, %v3781_v7  ;;  %v5583_v32 = vmul.f32 %v4670_v29, %v3784_v41  ;;  %v5585_v46 = vmul.f32 %v4670_v29, %v3787_v61  ;;  %v3371_v29 = vld [vmem:[#allocation2 + $0x1d0] sm:$0xff] }
 0xf07   : > { %4463 = vmatpush3.msra.mxu1 %v3371_v29  ;;  %v3479_v29 = vld [vmem:[#allocation2 + $0x208] sm:$0xff] }
 0xf08   : > { %v3800_v27 = vmul.f32 %v3798_v37, %v3795_v38  ;;  %4464 = vmatprep.subr.mxu1 %v4831_v0  ;;  %v3370_v37 = vld [vmem:[#allocation2 + $0x1c8] sm:$0xff]  ;;  %v3369_v38 = vld [vmem:[#allocation2 + $0x1c0] sm:$0xff] }
 0xf09   : > { %4465 = vmatpush3.msra.mxu1 %v3370_v37  ;;  %v3478_v37 = vld [vmem:[#allocation2 + $0x200] sm:$0xff] }
 0xf0a   : > { %v3805_v50 = vadd.f32 %v3803_v47, %v3800_v27  ;;  %4466 = vmatprep.subr.mxu1 %v4831_v0  ;;  %v3368_v27 = vld [vmem:[#allocation2 + $0x1b8] sm:$0xff] }
 0xf0b   : > { %4467 = vmatpush3.msra.mxu1 %v3369_v38 }
 0xf0c   : > { %3862 = vst.msk [vmem:[%s5524_s9 + $0x20] sm:$0xff] %vm1608_vm13, %v3805_v50  ;;  %4468 = vmatprep.subr.mxu1 %v4831_v0 }
 0xf0d   : > { %4469 = vmatpush3.msra.mxu1 %v3368_v27 }
 0xf0e   : > { %4484 = vmatprep.subr.mxu1 %v4831_v0 }
 0xf64   : > { %v2765_v23 = vpop.xlane.xlu0 %2764 }
 0xf65   : > { %v2766_v4 = vmax.f32 %v2765_v23, -1e+30  ;;  %v2932_v49 = vpop.xlane.xlu1 %2931 }
 0xf66   : > { %v2933_v52 = vmax.f32 %v2932_v49, -1e+30 }
 0xf67   : > { %v2767_v53 = vsub.f32 %v5527_v31, %v2766_v4 }
 0xf68   : > { %v2934_v55 = vsub.f32 %v5530_v40, %v2933_v52 }
 0xf69   : > { %v2768_v51 = vmul.f32 1.442695, %v2767_v53  ;;  %v2777_v60 = vpop.permute.xlu1 %2776  ;;  %v3099_v39 = vpop.xlane.xlu0 %3098 }
 0xf6a   : > { %v2935_v24 = vmul.f32 1.442695, %v2934_v55  ;;  %v3100_v2 = vmax.f32 %v3099_v39, -1e+30  ;;  %4428 = vmatpush3.msra.mxu0 %v2777_v60 }
 0xf6b   : > { %4671 = vpow2.f32 %v2768_v51  ;;  %4437 = vmatprep.subr.mxu0 %v4831_v0 }
 0xf6c   : > { %4673 = vpow2.f32 %v2935_v24  ;;  %v3101_v48 = vsub.f32 %v5555_v34, %v3100_v2 }
 0xf6d   : > { %v3266_v17 = vpop.xlane.xlu0 %3265 }
 0xf6e   : > { %v3102_v45 = vmul.f32 1.442695, %v3101_v48  ;;  %v3267_v62 = vmax.f32 %v3266_v17, -1e+30  ;;  %v4124_v17 = vld [vmem:[#allocation2 + $0x1d8] ss:$0 sm:$0xff] }
 0xf70   : > { %4675 = vpow2.f32 %v3102_v45  ;;  %v3268_v3 = vsub.f32 %v3261_v1, %v3267_v62 }
 0xf72   : > { %v3269_v31 = vmul.f32 1.442695, %v3268_v3  ;;  %v4057_v3 = vld [vmem:[#allocation2 + $0x40] ss:$0 sm:$0xff] }
 0xf74   : > { %4677 = vpow2.f32 %v3269_v31 }
 0xf78   : > { %v4672_v40 = vpop.eup %4671 }
 0xf79   : > { %v4674_v63 = vpop.eup %4673  ;;  %v2770_v58 = vsel %vm1608_vm13, %v4672_v40, 0.0 }
 0xf7a   : > { %2771 = vadd.xlane.f32.xlu1 %v2770_v58  ;;  %v2937_v11 = vsel %vm1608_vm13, %v4674_v63, 0.0 }
 0xf7b   : > { %2938 = vadd.xlane.f32.xlu0 %v2937_v11 }
 0xf7d   : > { %v4676_v5 = vpop.eup %4675 }
 0xf7e   : > { %v3104_v14 = vsel %vm1608_vm13, %v4676_v5, 0.0 }
 0xf7f   : > { %3105 = vadd.xlane.f32.xlu1 %v3104_v14 }
 0xf81   : > { %v4678_v34 = vpop.eup %4677 }
 0xf82   : > { %v3271_v56 = vsel %vm1608_vm13, %v4678_v34, 0.0 }
 0xf83   : > { %3272 = vadd.xlane.f32.xlu0 %v3271_v56 }
 0xf90   : > { %3110 = vrot.lane.b32.xlu1 %v5480_v12, %s4846_s23  ;;  %s4853_s23 = smov 125  }
 0xf94   : > { %3277 = vrot.lane.b32.xlu1 %v5480_v12, %s4847_s26  ;;  %s5789_s26 = sshll.u32 %s4907_s22, 7 }
 0xf99   : > { %2943 = vrot.lane.b32.xlu0 %v5480_v12, %s4848_s30 }
0x1003   : > { %v2772_v1 = vpop.xlane.xlu1 %2771 }
0x1004   : > { %v2773_v59 = vadd.f32 1e-30, %v2772_v1  ;;  %v2939_v43 = vpop.xlane.xlu0 %2938 }
0x1005   : > { %v2940_v6 = vadd.f32 1e-30, %v2939_v43 }
0x1006   : > { %4679 = vrcp.f32 %v2773_v59 }
0x1007   : > { %4681 = vrcp.f32 %v2940_v6 }
0x1008   : > { %v3106_v9 = vpop.xlane.xlu1 %3105 }
0x1009   : > { %v3107_v7 = vadd.f32 1e-30, %v3106_v9 }
0x100b   : > { %4683 = vrcp.f32 %v3107_v7 }
0x100c   : > { %v3273_v41 = vpop.xlane.xlu0 %3272  ;;  %v3111_v12 = vpop.permute.xlu1 %3110 }
0x100d   : > { %v3274_v61 = vadd.f32 1e-30, %v3273_v41 }
0x100f   : > { %4685 = vrcp.f32 %v3274_v61 }
0x1010   : > { %v2944_v16 = vpop.permute.xlu0 %2943  ;;  %v3278_v26 = vpop.permute.xlu1 %3277 }
0x1013   : > { %v4680_v15 = vpop.eup %4679 }
0x1014   : > { %v2775_v18 = vmul.f32 %v4680_v15, %v4672_v40  ;;  %v4682_v10 = vpop.eup %4681 }
0x1015   : > { %v2942_v20 = vmul.f32 %v4682_v10, %v4674_v63  ;;  %v443_v63 = vadd.f32 %v4057_v3, %v4993_v30  ;;  %v3570_v3 = vld [vmem:[#allocation2 + $0x230] sm:$0xff] }
0x1016   : > { %4430 = vmatmul.mubr.msk.f32.vlgmr.msra.gmra.mxu0 %vm1608_vm13, %v2775_v18  ;;  %v4705_v18 = vld [vmem:[%s5286_s16] sm:$0x1]  ;;  %s5663_s16 = scalar_lea.vmem [#allocation5], %s4050_s12 }
0x1017   : > { %4438 = vmatpush3.msra.mxu0 %v2944_v16  ;;  %4439 = vmatprep.mubr.msk.f32.mxu0 %vm4832_vm0, %v4831_v0  ;;  %v275_v10 = vsub.f32 1.0, %v4705_v18  ;;  %s3891_s6 = sshll.u32 %s5663_s16, 4  ;;  %s3892_s6 = int_to_ptr.vmem [resolvable:$true] %s3891_s6 }
0x1018   : > { %4447 = vmatprep.subr.mxu0 %v4831_v0  ;;  %v4684_v54 = vpop.eup %4683  ;;  %s4732_s8 = scalar_lea.vmem %s3892_s6, 128  ;;  %p4739_p11 = scmp.lt.s32.totalorder %s3892_s6, %s4737_s10 }
0x1019   : > { %v3109_v21 = vmul.f32 %v4684_v54, %v4676_v5  ;;  %v3741_v5 = vadd.f32 1e-10, %v5577_v22  ;;  %p4733_p6 = scmp.ne.s32.totalorder %s3892_s6, %s4732_s8 }
0x101a   : > { %4440 = vmatmul.mubr.msk.f32.vlgmr.msra.gmra.mxu0 %vm1608_vm13, %v2942_v20 }
0x101b   : > { %4448 = vmatpush3.msra.mxu0 %v3111_v12  ;;  %4449 = vmatprep.mubr.msk.f32.mxu0 %vm4832_vm0, %v4831_v0  ;;  %4687 = vrsqrt.f32 %v3741_v5  ;;  %v3747_v59 = vand.u32 2147483648, %v3741_v5  ;;  %vm3746_vm15 = vcmp.eq.f32.partialorder %v3741_v5, 0.0  ;;  %v3731_v12 = vrot.slane %v275_v10, %v4999_v36  ;;  %v3477_v36 = vld [vmem:[#allocation2 + $0x1f8] sm:$0xff]  ;;  %p4734_p9 = pnand %p4733_p6, %p4924_p5 }
0x101c   : > { %4457 = vmatprep.subr.mxu0 %v4831_v0  ;;  %v4686_v25 = vpop.eup %4685 }
0x101d   : > { %v3276_v28 = vmul.f32 %v4686_v25, %v4678_v34  ;;  %v5644_v54 = vmul.f32 %v3731_v12, %v5011_v13  ;;  %v3476_v13 = vld [vmem:[#allocation2 + $0x1f0] sm:$0xff]  ;;  %p4735_p10 = pneg %p4734_p9 }
0x101e   : > { %4450 = vmatmul.mubr.msk.f32.vlgmr.msra.gmra.mxu0 %vm1608_vm13, %v3109_v21 }
0x101f   : > { %4458 = vmatpush3.msra.mxu0 %v3278_v26  ;;  %4459 = vmatprep.mubr.msk.f32.mxu0 %vm4832_vm0, %v4831_v0  ;;  %v3763_v12 = vsel %vm1608_vm13, %v5644_v54, 0.0 }
0x1020   : > { %4473 = vmatprep.subr.mxu0 %v4831_v0 }
0x1022   : > { %4460 = vmatmul.mubr.msk.f32.vlgmr.msra.gmra.mxu0 %vm1608_vm13, %v3276_v28 }
0x1023   : > { %4481 = vmatprep.mubr.msk.f32.mxu0 %vm4832_vm0, %v4831_v0  ;;  %4474 = vmatpush3.msra.mxu0 %v3479_v29 }
0x1024   : > { %4475 = vmatprep.subr.mxu0 %v4831_v0 }
0x1025   : > { %4476 = vmatpush3.msra.mxu0 %v3478_v37 }
0x1026   : > { %4477 = vmatprep.subr.mxu0 %v4831_v0 }
0x1027   : > { %4478 = vmatpush3.msra.mxu0 %v3477_v36 }
0x1028   : > { %v4688_v14 = vpop.eup %4687  ;;  %4479 = vmatprep.subr.mxu0 %v4831_v0 }
0x1029   : > { %v3743_v34 = vmul.f32 %v4688_v14, %v3741_v5  ;;  %4480 = vmatpush3.msra.mxu0 %v3476_v13 }
0x10d6   : > { %v2848_v47 = vpop.f32.mrf.mxu0 }
0x10d8   : > { %v4431_v50 = vpop.f32.mrf.mxu0 }
0x10da   : > { %v3015_v23 = vpop.f32.mrf.mxu0 }
0x10db   : > { %3354 = vrot.lane.b32.xlu0 %v3015_v23, %s4849_s14 }
0x10dc   : > { %v4441_v4 = vpop.f32.mrf.mxu0 }
0x10dd   : > { %v4126_v4 = vld [vmem:[#allocation2 + $0x1e0] ss:$0 sm:$0xff] }
0x10de   : > { %v3182_v49 = vpop.f32.mrf.mxu0 }
0x10df   : > { %3358 = vrot.lane.b32.xlu1 %v3182_v49, %s4850_s15  ;;  %s3889_s15 = scalar_lea.hbm %s5784_s3, %s5789_s26 }
0x10e0   : > { %v4451_v52 = vpop.f32.mrf.mxu0 }
0x10e2   : > { %v3349_v53 = vpop.f32.mrf.mxu0 }
0x10e3   : > { %3362 = vrot.lane.b32.xlu0 %v3349_v53, %s4851_s25  ;;  %s5795_s25 = smov 127   ;;  %v4127_v53 = vld [vmem:[#allocation2 + $0x1e8] ss:$0 sm:$0xff] }
0x10e4   : > { %v4461_v55 = vpop.f32.mrf.mxu0 }
0x114d   : > { %v3355_v51 = vpop.permute.xlu0 %3354 }
0x114e   : > { %v3365_v39 = vsel %vm1608_vm13, %v2848_v47, %v3355_v51 }
0x1151   : > { %v3359_v60 = vpop.permute.xlu1 %3358 }
0x1152   : > { %v3366_v24 = vsel %vm783_vm7, %v3365_v39, %v3359_v60  ;;  %vm446_vm7 = vcmask 269312  }
0x1153   : > { %v447_v11 = vsel %vm446_vm7, %v443_v63, -inf }
0x1155   : > { %v3363_v2 = vpop.permute.xlu0 %3362 }
0x1156   : > { %v3367_v48 = vsel %vm2288_vm11, %v3366_v24, %v3363_v2 }
0x1157   : > { %4471 = vmatmul.mubr.msk.f32.vlgmr.msra.gmra.mxu1 %vm372_vm4, %v3367_v48  ;;  %v3574_v48 = vld [vmem:[#allocation2 + $0x250] sm:$0xff] }
0x1158   : > { %4500 = vmatprep.mubr.msk.f32.mxu1 %vm4832_vm0, %v4831_v0  ;;  %vm3744_vm0 = vcmp.eq.f32.partialorder %v3741_v5, inf  ;;  %4485 = vmatpush3.msra.mxu1 %v3574_v48 }
0x1159   : > { %v3745_v1 = vsel %vm3744_vm0, %v3741_v5, %v3743_v34  ;;  %4486 = vmatprep.subr.mxu1 %v4831_v0 }
0x115a   : > { %v3748_v6 = vsel %vm3746_vm15, %v3747_v59, %v3745_v1 }
0x115b   : > { %v4136_v22 = vadd.f32 -2.0, %v3748_v6 }
0x115d   : > { %v3750_v15 = vand.u32 2147483647, %v4136_v22 }
0x115f   : > { %v4137_v16 = vadd.f32 -1.0, %v3750_v15 }
0x1161   : > { %v3752_v20 = vmax.f32 %v4137_v16, 0.0 }
0x1163   : > { %v3753_v26 = vmul.f32 %v3752_v20, %v5644_v54 }
0x1165   : > { %v3754_v28 = vsel %vm1608_vm13, %v3753_v26, 0.0 }
0x1217   : > { %v3446_v45 = vpop.f32.mrf.mxu1 }
0x1218   : > { %v3447_v62 = vadd.f32 %v4124_v17, %v3446_v45  ;;  %v3573_v17 = vld [vmem:[#allocation2 + $0x248] sm:$0xff]  ;;  %v3572_v45 = vld [vmem:[#allocation2 + $0x240] sm:$0xff] }
0x1219   : > { %v4472_v31 = vpop.f32.mrf.mxu1  ;;  %4487 = vmatpush3.msra.mxu1 %v3573_v17 }
0x121a   : > { %v5632_v40 = vadd.f32 %v3447_v62, %v5467_v57  ;;  %4488 = vmatprep.subr.mxu1 %v4831_v0  ;;  %v3571_v62 = vld [vmem:[#allocation2 + $0x238] sm:$0xff]  ;;  %v3569_v31 = vld [vmem:[#allocation2 + $0x228] sm:$0xff] }
0x121b   : > { %4489 = vmatpush3.msra.mxu1 %v3572_v45 }
0x121c   : > { %v3453_v58 = vsel %vm372_vm4, %v5632_v40, 0.0  ;;  %4490 = vmatprep.subr.mxu1 %v4831_v0 }
0x121d   : > { %3454 = vadd.xlane.f32.xlu1 %v3453_v58  ;;  %4491 = vmatpush3.msra.mxu1 %v3571_v62  ;;  %v3567_v58 = vld [vmem:[#allocation2 + $0x218] sm:$0xff] }
0x121e   : > { %4492 = vmatprep.subr.mxu1 %v4831_v0 }
0x121f   : > { %4493 = vmatpush3.msra.mxu1 %v3570_v3 }
0x1220   : > { %4494 = vmatprep.subr.mxu1 %v4831_v0 }
0x1221   : > { %448 = vmax.xlane.f32.xlu1 %v447_v11  ;;  %4495 = vmatpush3.msra.mxu1 %v3569_v31  ;;  %v4128_v11 = vld [vmem:[#allocation2 + $0x210] ss:$0 sm:$0xff] }
0x1222   : > { %4496 = vmatprep.subr.mxu1 %v4831_v0 }
0x12a6   : > { %v3455_v56 = vpop.xlane.xlu1 %3454 }
0x12a7   : > { %v3456_v57 = vmul.f32 0.03125, %v3455_v56 }
0x12a9   : > { %v3457_v30 = vsub.f32 %v5632_v40, %v3456_v57 }
0x12aa   : > { %v449_v43 = vpop.xlane.xlu1 %448 }
0x12ab   : > { %v450_v9 = vsub.f32 %v443_v63, %v449_v43  ;;  %v3458_v7 = vmul.f32 %v3457_v30, %v3457_v30  ;;  %v3568_v63 = vld [vmem:[#allocation2 + $0x220] sm:$0xff] }
0x12ac   : > { %4497 = vmatpush3.msra.mxu1 %v3568_v63 }
0x12ad   : > { %v451_v41 = vmul.f32 1.442695, %v450_v9  ;;  %v3459_v61 = vsel %vm372_vm4, %v3458_v7, 0.0  ;;  %4498 = vmatprep.subr.mxu1 %v4831_v0  ;;  %v4130_v0 = vld [vmem:[#allocation2 + $0x258] ss:$0 sm:$0xff] }
0x12ae   : > { %3460 = vadd.xlane.f32.xlu0 %v3459_v61  ;;  %4499 = vmatpush3.msra.mxu1 %v3567_v58 }
0x12af   : > { %4689 = vpow2.f32 %v451_v41 }
0x12bc   : > { %v4690_v21 = vpop.eup %4689 }
0x12bd   : > { %v453_v25 = vsel %vm446_vm7, %v4690_v21, 0.0 }
0x12be   : > { %454 = vadd.xlane.f32.xlu1 %v453_v25 }
0x12c2   : > { %3755 = vadd.xlane.f32.xlu1 %v3754_v28 }
0x12d3   : > { %3807 = vrot.lane.b32.xlu1 %v5482_v8, %s5795_s25 }
0x12d7   : > { %3820 = vrot.lane.b32.xlu1 %v5482_v8, %s4852_s17 }
0x12db   : > { %3826 = vrot.lane.b32.xlu1 %v5517_v33, %s4852_s17 }
0x12df   : > { %3839 = vrot.lane.b32.xlu1 %v5517_v33, %s4853_s23 }
0x1337   : > { %v3461_v38 = vpop.xlane.xlu0 %3460 }
0x1338   : > { %v3462_v47 = vmul.f32 0.03125, %v3461_v38 }
0x133a   : > { %v3463_v27 = vadd.f32 1e-05, %v3462_v47 }
0x133c   : > { %4691 = vrsqrt.f32 %v3463_v27 }
0x1347   : > { %v455_v50 = vpop.xlane.xlu1 %454 }
0x1348   : > { %4693 = vlog2.f32 %v455_v50 }
0x1349   : > { %v4692_v23 = vpop.eup %4691 }
0x134a   : > { %v3465_v49 = vmul.f32 %v4692_v23, %v3457_v30 }
0x134b   : > { %v5654_v52 = vpop.xlane.xlu1 %3755 }
0x134c   : > { %v3470_v55 = vmul.f32 %v4126_v4, %v3465_v49  ;;  %v3757_v49 = vrot.slane %v5654_v52, 4 }
0x134e   : > { %v3475_v51 = vadd.f32 %v4127_v53, %v3470_v55  ;;  %v3758_v17 = vadd.f32 %v3757_v49, %v5654_v52 }
0x134f   : > { %v3808_v60 = vpop.permute.xlu1 %3807 }
0x1350   : > { %4482 = vmatmul.mubr.msk.f32.vlgmr.msra.gmra.mxu0 %vm372_vm4, %v3475_v51  ;;  %4512 = vpush %v3808_v60 }
0x1353   : > { %v3821_v26 = vpop.permute.xlu1 %3820 }
0x1355   : > { %v4694_v39 = vpop.eup %4693 }
0x1356   : > { %v457_v24 = vmul.f32 0.6931472, %v4694_v39 }
0x1358   : > { %v458_v2 = vsub.f32 %v450_v9, %v457_v24 }
0x135a   : > { %459 = vst.msk [vmem:[%s5663_s16] sm:$0xff] %vm446_vm7, %v458_v2 }
0x1410   : > { %v3554_v5 = vpop.f32.mrf.mxu0 }
0x1411   : > { %v3555_v14 = vadd.f32 %v4128_v11, %v3554_v5  ;;  %v3759_v11 = vrot.slane %v3758_v17, 2 }
0x1412   : > { %v4483_v34 = vpop.f32.mrf.mxu0 }
0x1413   : > { %v3559_v56 = vmul.f32 0.044715, %v3555_v14  ;;  %v3558_v6 = vmul.f32 0.5, %v3555_v14 }
0x1415   : > { %v3560_v57 = vmul.f32 %v3559_v56, %v3555_v14  ;;  %v3760_v56 = vadd.f32 %v3759_v11, %v3758_v17 }
0x1417   : > { %v3561_v1 = vmul.f32 %v3560_v57, %v3555_v14  ;;  %v3761_v52 = vrot.slane %v3760_v56, 1 }
0x1419   : > { %v3562_v59 = vadd.f32 %v3561_v1, %v3555_v14 }
0x141b   : > { %v3563_v30 = vmul.f32 0.7978846, %v3562_v59 }
0x141d   : > { %4695 = vtanh.f32 %v3563_v30 }
0x142a   : > { %v4696_v43 = vpop.eup %4695 }
0x142b   : > { %v3565_v9 = vadd.f32 1.0, %v4696_v43 }
0x142d   : > { %v3566_v7 = vmul.f32 %v3565_v9, %v3558_v6  ;;  %v3762_v6 = vadd.f32 %v3761_v52, %v3760_v56 }
0x142f   : > { %4501 = vmatmul.mubr.msk.f32.vlgmr.msra.gmra.mxu1 %vm2502_vm14, %v3566_v7 }
0x14ef   : > { %v3649_v41 = vpop.f32.mrf.mxu1 }
0x14f0   : > { %v3650_v61 = vadd.f32 %v4130_v0, %v3649_v41 }
0x14f1   : > { %v4502_v22 = vpop.f32.mrf.mxu1 }
0x14f2   : > { %v3653_v15 = vadd.f32 %v3650_v61, %v5632_v40  ;;  %v3679_v40 = vsel %vm3671_vm1, %v4984_v19, 0.0 }
0x14f3   : > { %v3680_v20 = vrot.slane %v3679_v40, 4 }
0x14f4   : > { %v3654_v18 = vmul.f32 %v3653_v15, %v3653_v15  ;;  %v3691_v16 = vsel %vm372_vm4, %v3653_v15, 0.0 }
0x14f5   : > { %v3681_v28 = vadd.f32 %v3680_v20, %v3679_v40 }
0x14f6   : > { %v3655_v10 = vsel %vm372_vm4, %v3654_v18, 0.0 }
0x14f7   : > { %3656 = vadd.xlane.f32.xlu0 %v3655_v10  ;;  %v3682_v54 = vrot.slane %v3681_v28, 2 }
0x14f9   : > { %v3683_v50 = vadd.f32 %v3682_v54, %v3681_v28 }
0x14fb   : > { %3692 = vadd.xlane.f32.xlu0 %v3691_v16  ;;  %v3684_v60 = vrot.slane %v3683_v50, 1 }
0x14fd   : > { %v3685_v3 = vadd.f32 %v3684_v60, %v3683_v50 }
0x14ff   : > { %3764 = vadd.xlane.f32.xlu0 %v3763_v12  ;;  %v3686_v14 = vadd.f32 1e-10, %v3685_v3 }
0x1515   : > { %3813 = vrot.lane.b32.xlu0 %v5517_v33, %s5795_s25  ;;  %v3827_v33 = vpop.permute.xlu1 %3826  ;;  %s4738_s25 = scalar_lea.vmem %s4737_s10, 256 }
0x1516   : > { %p4740_p12 = scmp.lt.s32.totalorder %s4738_s25, %s4732_s8 }
0x1518   : > { %p4741_p13 = por %p4740_p12, %p4739_p11 }
0x1519   : > { %3833 = vrot.lane.b32.xlu0 %v5482_v8, %s4853_s23  ;;  %v3840_v55 = vpop.permute.xlu1 %3839 }
0x151a   : > { %p4742_p0 = pnand %p4741_p13, %p4735_p10 }
0x1580   : > { %v3657_v21 = vpop.xlane.xlu0 %3656 }
0x1581   : > { %v3658_v25 = vadd.f32 1e-10, %v3657_v21 }
0x1583   : > { %4697 = vrsqrt.f32 %v3658_v25  ;;  %vm3661_vm2 = vcmp.eq.f32.partialorder %v3658_v25, inf  ;;  %v3664_v48 = vand.u32 2147483648, %v3658_v25  ;;  %vm3663_vm3 = vcmp.eq.f32.partialorder %v3658_v25, 0.0 }
0x1584   : > { %v3693_v29 = vpop.xlane.xlu0 %3692 }
0x1585   : > { %v3694_v37 = vmul.f32 0.03125, %v3693_v29 }
0x1587   : > { %v5688_v36 = vsub.f32 %v3653_v15, %v3694_v37 }
0x1588   : > { %v3765_v13 = vpop.xlane.xlu0 %3764 }
0x1589   : > { %v3766_v38 = vrot.slane %v3765_v13, 4  ;;  %v3696_v8 = vmul.f32 %v5688_v36, %v5688_v36 }
0x158b   : > { %v3767_v47 = vadd.f32 %v3766_v38, %v3765_v13  ;;  %v3697_v27 = vsel %vm372_vm4, %v3696_v8, 0.0 }
0x158c   : > { %3698 = vadd.xlane.f32.xlu0 %v3697_v27  ;;  %v3814_v23 = vpop.permute.xlu0 %3813 }
0x158d   : > { %v3768_v4 = vrot.slane %v3767_v47, 2  ;;  %4514 = vpush %v3814_v23 }
0x158e   : > { %4516 = vpush %v3821_v26 }
0x158f   : > { %v3769_v53 = vadd.f32 %v3768_v4, %v3767_v47  ;;  %4518 = vpush %v3827_v33 }
0x1590   : > { %v4698_v51 = vpop.eup %4697  ;;  %v3834_v39 = vpop.permute.xlu0 %3833 }
0x1591   : > { %v3660_v24 = vmul.f32 %v4698_v51, %v3658_v25  ;;  %v3770_v2 = vrot.slane %v3769_v53, 1  ;;  %4520 = vpush %v3834_v39 }
0x1592   : > { %4522 = vpush %v3840_v55 }
0x1593   : > { %v3662_v45 = vsel %vm3661_vm2, %v3658_v25, %v3660_v24  ;;  %v3771_v62 = vadd.f32 %v3770_v2, %v3769_v53 }
0x1594   : > { %v3665_v31 = vsel %vm3663_vm3, %v3664_v48, %v3662_v45 }
0x1595   : > { %v3772_v63 = vadd.f32 1e-10, %v3771_v62  ;;  %v4132_v58 = vadd.f32 -5.656854, %v3665_v31 }
0x1597   : > { %4699 = vrcp.f32 %v3772_v63  ;;  %v3667_v5 = vand.u32 2147483647, %v4132_v58 }
0x1598   : > { %4701 = vrcp.f32 %v3686_v14 }
0x1599   : > { %v4133_v34 = vadd.f32 -1.0, %v3667_v5 }
0x159b   : > { %v3669_v57 = vmax.f32 %v4133_v34, 0.0 }
0x159d   : > { %v3670_v1 = vmul.f32 %v3669_v57, %v4984_v19 }
0x159f   : > { %v3672_v59 = vsel %vm3671_vm1, %v3670_v1, 0.0 }
0x15a0   : > { %v3673_v30 = vrot.slane %v3672_v59, 4 }
0x15a2   : > { %v3674_v43 = vadd.f32 %v3673_v30, %v3672_v59 }
0x15a4   : > { %v4700_v9 = vpop.eup %4699  ;;  %v3675_v7 = vrot.slane %v3674_v43, 2 }
0x15a5   : > { %v5697_v0 = vmul.f32 %v4700_v9, %v3762_v6  ;;  %v4702_v22 = vpop.eup %4701 }
0x15a6   : > { %v3676_v41 = vadd.f32 %v3675_v7, %v3674_v43 }
0x15a8   : > { %v3677_v61 = vrot.slane %v3676_v41, 1 }
0x15aa   : > { %v3678_v15 = vadd.f32 %v3677_v61, %v3676_v41 }
0x15ac   : > { %v3688_v18 = vmul.f32 %v4702_v22, %v3678_v15 }
0x15ae   : > { %3851 = vperm.xlu0 %4604, %v3688_v18  }
0x15af   : > { %4745 = shalt.err (!%p4742_p0)
}
0x15b0   : > { %s4746_s17 = scalar_lea.hbm %s3889_s15, 128  ;;  %s4750_s30 = scalar_lea.hbm %s5784_s3, 256 }
0x15b1   : > { %p4747_p1 = scmp.ne.s32.totalorder %s3889_s15, %s4746_s17  ;;  %p4751_p4 = scmp.lt.s32.totalorder %s3889_s15, %s5784_s3 }
0x15b2   : > { %p4752_p7 = scmp.lt.s32.totalorder %s4750_s30, %s4746_s17 }
0x15b3   : > { %p4748_p2 = pnand %p4747_p1, %p4924_p5 }
0x15b4   : > { %p4753_p8 = por %p4752_p7, %p4751_p4 }
0x15b5   : > { %p4749_p3 = pneg %p4748_p2 }
0x15b7   : > { %p4754_p6 = pnand %p4753_p8, %p4749_p3 }
0x15b9   : > { %4757 = shalt.err (!%p4754_p6)
}
0x15ba   : > { %4528 = dma.vmem_to_hbm [thread:$0]  (%p4924_p5), %s3892_s6, 128, %s3889_s15, %s3868_s7   ;;  %vm3847_vm5 = vcmp.eq.s32.totalorder %v4996_v35, 0  ;;  %v4135_v33 = vld [vmem:[#allocation2 + $0x268] ss:$0 sm:$0xff] }
0x15bb   : > { %s4513_s8 = spop %4512  ;;  %vm3855_vm6 = vmand %vm3847_vm5, %vm1219_vm12  ;;  %s252_s6 = scalar_lea.vmem [#allocation6], %s4050_s12 }
0x15bc   : > { %v3810_v19 = vstv %s4513_s8  ;;  %vm3848_vm9 = vmand %vm3847_vm5, %vm1123_vm8  ;;  %s3904_s7 = sshll.u32 %s252_s6, 4  ;;  %v3856_v35 = vsel %vm3855_vm6, %v5697_v0, 0.0  ;;  %s5796_s17 = sshll.u32 %s4907_s22, 7  ;;  %s3905_s7 = int_to_ptr.vmem [resolvable:$true] %s3904_s7 }
0x15bd   : > { %v3812_v10 = vmul.f32 %v3810_v19, %v5581_v42  ;;  %s5742_s30 = scalar_lea.hbm %s5785_s4, %s5796_s17  ;;  %s3873_s14 = scalar_lea.sflag [#allocation7], %s5658_s11 }
0x15be   : > { %s4515_s13 = spop %4514  ;;  %s4758_s12 = scalar_lea.vmem %s3905_s7, 128 }
0x15bf   : > { %v3816_v16 = vstv %s4515_s13  ;;  %s4517_s10 = spop %4516  ;;  %p4759_p9 = scmp.ne.s32.totalorder %s3905_s7, %s4758_s12 }
0x15c0   : > { %v3818_v12 = vadd.f32 %v3816_v16, %v3812_v10  ;;  %v3823_v40 = vstv %s4517_s10  ;;  %s4519_s26 = spop %4518  ;;  %s4855_s8 = smov [#allocation6]  }
0x15c1   : > { %v3825_v20 = vmul.f32 %v3823_v40, %v5583_v32  ;;  %v3829_v21 = vstv %s4519_s26  ;;  %p4760_p10 = pnand %p4759_p9, %p4924_p5  ;;  %s4762_s13 = sshll.u32 %s4855_s8, 4  ;;  %s4763_s13 = int_to_ptr.vmem [resolvable:$false] %s4762_s13 }
0x15c2   : > { %3863 = vst.msk [vmem:[%s5524_s9 + $0x28] sm:$0xff] %vm1608_vm13, %v3818_v12  ;;  %s4521_s25 = spop %4520  ;;  %s4764_s22 = scalar_lea.vmem %s4763_s13, 256 }
0x15c3   : > { %v3831_v25 = vadd.f32 %v3829_v21, %v3825_v20  ;;  %v3836_v26 = vstv %s4521_s25  ;;  %s4523_s15 = spop %4522  ;;  %p4761_p11 = pneg %p4760_p10 }
0x15c4   : > { %v3838_v28 = vmul.f32 %v3836_v26, %v5585_v46  ;;  %v3842_v42 = vstv %s4523_s15  ;;  %v4134_v46 = vld [vmem:[#allocation2 + $0x260] ss:$0 sm:$0xff]  ;;  %p4765_p12 = scmp.lt.s32.totalorder %s3905_s7, %s4763_s13  ;;  %p4766_p13 = scmp.lt.s32.totalorder %s4764_s22, %s4758_s12 }
0x15c5   : > { %3864 = vst.msk [vmem:[%s5524_s9 + $0x30] sm:$0xff] %vm1608_vm13, %v3831_v25 }
0x15c6   : > { %v3844_v29 = vadd.f32 %v3842_v42, %v3838_v28  ;;  %p4767_p0 = por %p4766_p13, %p4765_p12 }
0x15c8   : > { %3865 = vst.msk [vmem:[%s5524_s9 + $0x38] sm:$0xff] %vm1608_vm13, %v3844_v29  ;;  %p4768_p1 = pnand %p4767_p0, %p4761_p11 }
0x1615   : > { %v3699_v37 = vpop.xlane.xlu0 %3698 }
0x1616   : > { %v3700_v54 = vmul.f32 0.03125, %v3699_v37 }
0x1618   : > { %v3701_v13 = vadd.f32 1e-05, %v3700_v54 }
0x161a   : > { %4703 = vrsqrt.f32 %v3701_v13 }
0x1627   : > { %v4704_v32 = vpop.eup %4703 }
0x1628   : > { %v3703_v38 = vmul.f32 %v4704_v32, %v5688_v36 }
0x1629   : > { %v3852_v8 = vpop.permute.xlu0 %3851 }
0x162a   : > { %v3854_v47 = vsel %vm3848_vm9, %v3852_v8, 0.0  ;;  %v3708_v27 = vmul.f32 %v4134_v46, %v3703_v38 }
0x162b   : > { %v3857_v50 = vadd.f32 %v3856_v35, %v3854_v47 }
0x162c   : > { %v3713_v23 = vadd.f32 %v4135_v33, %v3708_v27 }
0x162d   : > { %3866 = vst.msk [vmem:[%s5524_s9 + $0x40] sm:$0xff] %vm1608_vm13, %v3857_v50 }
0x162e   : > { %3714 = vst.msk [vmem:[%s252_s6] sm:$0xff] %vm372_vm4, %v3713_v23 }
0x162f   : > { %4771 = shalt.err (!%p4768_p1)
}
0x1630   : > { %s4772_s9 = scalar_lea.hbm %s5742_s30, 128  ;;  %s4776_s26 = scalar_lea.hbm %s5785_s4, 256 }
0x1631   : > { %p4773_p2 = scmp.ne.s32.totalorder %s5742_s30, %s4772_s9  ;;  %p4777_p7 = scmp.lt.s32.totalorder %s5742_s30, %s5785_s4 }
0x1632   : > { %p4778_p8 = scmp.lt.s32.totalorder %s4776_s26, %s4772_s9 }
0x1633   : > { %p4774_p3 = pnand %p4773_p2, %p4924_p5 }
0x1634   : > { %p4779_p6 = por %p4778_p8, %p4777_p7 }
0x1635   : > { %p4775_p4 = pneg %p4774_p3 }
0x1637   : > { %p4780_p9 = pnand %p4779_p6, %p4775_p4 }
0x1639   : > { %4783 = shalt.err (!%p4780_p9)
}
0x163a   : > { %4529 = dma.vmem_to_hbm [thread:$0]  (%p4924_p5), %s3905_s7, 128, %s5742_s30, %s3873_s14  }
0x163b PF: > { %p4545_p10 = scmp.ge.s32.totalorder %s4826_s21, 2  ;;  %s3919_s6 = sand.u32 1, %s4814_s18  }
0x163c   : > { %p5797_p11 = scmp.ne.s32.totalorder %s5791_s29, 0  ;;  %s3920_s17 = scalar_lea.sflag [#allocation4], %s3919_s6 }
0x163e   : > { %p4537_p12 = pnand %p4545_p10, %p5797_p11 }
0x1640   : > { %p4538_p13 = pneg %p4537_p12 }
0x1642   : > { %4805 = dma.done.wait (%p4538_p13), %s3920_s17, 128  }
0x1643   : > { %4807 = vsyncadd (%p4538_p13), %s3920_s17, 4294967168  ;;  %s3929_s16 = scalar_lea.sflag [#allocation7], %s3919_s6 }
0x1644   : > { %4809 = dma.done.wait (%p4538_p13), %s3929_s16, 128  }
0x1645   : > { %4811 = vsyncadd (%p4538_p13), %s3929_s16, 4294967168  ;;  %p20_p5 = scmp.ge.s32.totalorder %s4911_s24, 4   ;;  %s5798_s18 = smov %s4818_s19 }
0x1646   : > { %s5799_s19 = smov %s4822_s20  ;;  %s5800_s20 = smov %s4922_s27 }
0x1647   : > { %s5801_s21 = smov %s4911_s24  ;;  %22 = sbr.rel (!%p20_p5) target bundleno = 6 (0x6), region = 104 }
0x164c   :  { %3942 = vsyncpa [#allocation3], 1 }
0x164d   :  { %3944 = vsyncpa [#allocation3 + $0x1], 1 }
0x164e   :  { %3945 = vsyncpa [#allocation4], 1 }
0x164f   :  { %3947 = vsyncpa [#allocation4 + $0x1], 1 }
0x1650   :  { %3948 = vsyncpa [#allocation7], 1 }
0x1651   :  { %3950 = vsyncpa [#allocation7 + $0x1], 1 }

</bundles_post_ra>
